<compile_context>
chip_gen: v7x
topology: tpu7x:2x2x1
jax: 0.10.0
libtpu: 0.0.40
codegen_flags: <defaults>
</compile_context>

<pallas_src>
import functools
import math

import jax
import jax.numpy as jnp
from jax.experimental import pallas as pl
from jax.experimental.pallas import tpu as pltpu


def _layernorm_f32(x, gamma, beta, eps=1e-5):
    # torch.nn.LayerNorm over the last dim: biased variance, eps=1e-5.
    mean = jnp.mean(x, axis=-1, keepdims=True)
    var = jnp.mean((x - mean) ** 2, axis=-1, keepdims=True)
    return (x - mean) * jax.lax.rsqrt(var + eps) * gamma + beta


def decoder_layer_kernel(n_heads,
                         xq_ref, xkv_ref, mask_ref,
                         wq_ref, wk_ref, wv_ref, wo_ref,
                         ln1_g_ref, ln1_b_ref,
                         w1_ref, w2_ref,
                         ln2_g_ref, ln2_b_ref,
                         out_ref, attn_ref,
                         k_scr, v_scr, q_scr, ctx_scr):
    bf16 = jnp.bfloat16
    f32 = jnp.float32

    H = n_heads
    TQ, D = q_scr.shape
    S = k_scr.shape[0]
    dk = D // H

    # ---- K/V projections: once per batch row (qi == 0), cached in VMEM ----
    # Full-width (S, D) @ (D, D) lane-dense matmuls, reused across every query
    # tile of this batch row instead of being recomputed NQ times.
    @pl.when(pl.program_id(1) == 0)
    def _project_kv():
        xkv = xkv_ref[0]                                        # (S, D) bf16
        k_scr[...] = jnp.dot(xkv, wk_ref[...],
                             preferred_element_type=f32).astype(bf16)
        v_scr[...] = jnp.dot(xkv, wv_ref[...],
                             preferred_element_type=f32).astype(bf16)

    # ---- Q projection: one full-width (TQ, D) @ (D, D) matmul.  1/sqrt(dk)
    # is folded into Wq on the host, so no per-score scaling is needed. ----
    q_scr[...] = jnp.dot(xq_ref[0].astype(bf16), wq_ref[...],
                         preferred_element_type=f32).astype(bf16)

    # int8 compare, hoisted out of the per-head loop (no f32 cast).
    mask_bool = mask_ref[0] != 0                                # (TQ, S) bool

    # ---- attention core: per head, so only one (TQ, S) f32 score matrix is
    # live at a time.  Heads are static lane slices of the full-width
    # projections -- no broadcast copies, no in-kernel transposes. ----
    for h in range(H):
        sl = slice(h * dk, (h + 1) * dk)
        qh = q_scr[:, sl]                                       # (TQ, dk) bf16
        kh = k_scr[:, sl]                                       # (S,  dk) bf16
        vh = v_scr[:, sl]                                       # (S,  dk) bf16

        s = jnp.einsum('td,sd->ts', qh, kh,
                       preferred_element_type=f32)              # (TQ, S) f32
        s = jnp.where(mask_bool, jnp.float32(-1e9), s)          # masked_fill

        m = jnp.max(s, axis=-1, keepdims=True)
        e = jnp.exp(s - m)
        l = jnp.sum(e, axis=-1, keepdims=True)
        # exact reciprocal: returned attention rows sum to 1 (per review).
        attn_h = e * pl.reciprocal(l)                           # (TQ, S) f32
        attn_ref[0, h] = attn_h.astype(attn_ref.dtype)

        ctx_scr[:, sl] = jnp.dot(attn_h.astype(bf16), vh,
                                 preferred_element_type=f32).astype(bf16)

    # ---- head merge folded into one (TQ, D) @ (D, D) matmul with Wo ----
    atten_out = jnp.dot(ctx_scr[...], wo_ref[...], preferred_element_type=f32)

    # residual + LayerNorm (attention block), f32
    y = _layernorm_f32(atten_out + xq_ref[0], ln1_g_ref[...], ln1_b_ref[...])

    # ---- FeedForward: Linear -> ReLU -> Linear, residual + LayerNorm ----
    h1 = jnp.maximum(
        jnp.dot(y.astype(bf16), w1_ref[...], preferred_element_type=f32), 0.0)
    z = jnp.dot(h1.astype(bf16), w2_ref[...], preferred_element_type=f32)
    out = _layernorm_f32(z + y, ln2_g_ref[...], ln2_b_ref[...])

    out_ref[0] = out.astype(out_ref.dtype)


def _vmem_limit_bytes():
    """Generation-aware VMEM budget: ~75% of physical, capped at 96 MiB
    (-> ~48 MiB on v7x's 64 MiB, 96 MiB on v5e/v6e's 128 MiB)."""
    try:
        cap = int(pltpu.get_tpu_info().vmem_capacity_bytes)
    except Exception:
        cap = 64 * 1024 * 1024          # assume the smallest (v7x-class) VMEM
    return min((cap * 3) // 4, 96 * 1024 * 1024)


def decoder_layer(x, mask, params, n_heads, *, attn_dtype=jnp.bfloat16):
    B, S, D = x.shape
    H = n_heads
    dk = D // H
    ff_dim = params["w1"].shape[1]
    bf16 = jnp.bfloat16

    vmem_limit = _vmem_limit_bytes()

    # Query/output row tile: 256 on big-VMEM chips (v6e-class, matches the
    # 256-wide MXU) when S allows, 128 otherwise; whole S for short sequences.
    # Sequences that are not a multiple of the tile are padded; padded key
    # columns are masked and padded rows sliced off afterwards.
    if S <= 128:
        TQ = S
    elif S % 256 == 0 and vmem_limit >= 72 * 1024 * 1024:
        TQ = 256
    else:
        TQ = 128
    NQ = pl.cdiv(S, TQ)
    S_pad = NQ * TQ

    mask_i8 = (mask > 0).astype(jnp.int8)        # 1 byte/elem, 1 => masked
    if S_pad != S:
        p = S_pad - S
        x_in = jnp.pad(x, ((0, 0), (0, p), (0, 0)))
        mask_i8 = jnp.pad(mask_i8, ((0, 0), (0, p), (0, p)), constant_values=1)
    else:
        x_in = x
    xkv_bf16 = x_in.astype(bf16)                 # K/V operand pre-cast to bf16

    scale = 1.0 / math.sqrt(dk)
    wq = (params["wq"] * scale).astype(bf16)     # fold 1/sqrt(dk) into Wq
    wk = params["wk"].astype(bf16)
    wv = params["wv"].astype(bf16)
    wo = params["wo"].astype(bf16)
    w1 = params["w1"].astype(bf16)
    w2 = params["w2"].astype(bf16)

    kernel = functools.partial(decoder_layer_kernel, H)

    def build(single_buffer_weights):
        def const(shape):
            nd = len(shape)
            idx = lambda b, qi, _nd=nd: (0,) * _nd
            if single_buffer_weights:
                # constant-index blocks need no double buffering -> halves the
                # weight VMEM footprint (matters most on v7x's 64 MiB VMEM).
                return pl.BlockSpec(shape, idx, pipeline_mode=pl.Buffered(1))
            return pl.BlockSpec(shape, idx)

        in_specs = [
            pl.BlockSpec((1, TQ, D), lambda b, qi: (b, qi, 0)),      # query rows / residual (f32)
            pl.BlockSpec((1, S_pad, D), lambda b, qi: (b, 0, 0)),    # full seq (bf16) for K/V
            pl.BlockSpec((1, TQ, S_pad), lambda b, qi: (b, qi, 0)),  # mask tile (int8)
            const((D, D)), const((D, D)), const((D, D)),             # Wq Wk Wv
            const((D, D)),                                            # Wo
            const((1, D)), const((1, D)),                             # ln1 gamma/beta
            const((D, ff_dim)), const((ff_dim, D)),                   # W1 W2
            const((1, D)), const((1, D)),                             # ln2 gamma/beta
        ]
        out_specs = (
            pl.BlockSpec((1, TQ, D), lambda b, qi: (b, qi, 0)),
            pl.BlockSpec((1, H, TQ, S_pad), lambda b, qi: (b, 0, qi, 0)),
        )
        out_shape = (
            jax.ShapeDtypeStruct((B, S_pad, D), x.dtype),
            jax.ShapeDtypeStruct((B, H, S_pad, S_pad), attn_dtype),
        )
        scratch_shapes = [
            pltpu.VMEM((S_pad, D), bf16),   # K cache (one batch row)
            pltpu.VMEM((S_pad, D), bf16),   # V cache
            pltpu.VMEM((TQ, D), bf16),      # Q tile
            pltpu.VMEM((TQ, D), bf16),      # merged per-head context
        ]
        return pl.pallas_call(
            kernel,
            out_shape=out_shape,
            grid=(B, NQ),
            in_specs=in_specs,
            out_specs=out_specs,
            scratch_shapes=scratch_shapes,
            compiler_params=pltpu.CompilerParams(
                # qi must be "arbitrary": K/V are computed at qi == 0 and
                # reused by later qi steps of the same batch row.
                dimension_semantics=("parallel", "arbitrary"),
                vmem_limit_bytes=vmem_limit,
            ),
        )

    args = (x_in, xkv_bf16, mask_i8,
            wq, wk, wv, wo,
            params["ln1_g"], params["ln1_b"],
            w1, w2,
            params["ln2_g"], params["ln2_b"])

    try:
        outputs, attention = build(True)(*args)
    except Exception:
        # pl.Buffered(1) not accepted by this jax/libtpu combination: retry the
        # identical kernel with default (double-buffered) weight blocks.
        outputs, attention = build(False)(*args)

    if S_pad != S:
        outputs = outputs[:, :S, :]
        attention = attention[:, :, :S, :S]
    return outputs, attention


def init_params(key, dim, ff_dim):
    ks = jax.random.split(key, 6)
    s = 0.05
    return {
        "wq": jax.random.normal(ks[0], (dim, dim), jnp.float32) * s,
        "wk": jax.random.normal(ks[1], (dim, dim), jnp.float32) * s,
        "wv": jax.random.normal(ks[2], (dim, dim), jnp.float32) * s,
        "wo": jax.random.normal(ks[3], (dim, dim), jnp.float32) * s,
        "ln1_g": jnp.ones((1, dim), jnp.float32),
        "ln1_b": jnp.zeros((1, dim), jnp.float32),
        "w1": jax.random.normal(ks[4], (dim, ff_dim), jnp.float32) * s,
        "w2": jax.random.normal(ks[5], (ff_dim, dim), jnp.float32) * s,
        "ln2_g": jnp.ones((1, dim), jnp.float32),
        "ln2_b": jnp.zeros((1, dim), jnp.float32),
    }


if __name__ == "__main__":
    B, S, D, H, FF = 2, 8, 32, 4, 64   # batch, seq, dim, n_heads, ff_dim

    key = jax.random.PRNGKey(0)
    k_x, k_p = jax.random.split(key)
    x = jax.random.normal(k_x, (B, S, D), jnp.float32)

    # causal (subsequent-position) mask, broadcast over batch: >0 => masked
    causal = jnp.triu(jnp.ones((S, S), jnp.float32), k=1)
    mask = jnp.broadcast_to(causal, (B, S, S))

    params = init_params(k_p, D, FF)

    outputs, attention = decoder_layer(x, mask, params, H)
    jax.block_until_ready((outputs, attention))

    assert outputs.shape == (B, S, D)
    assert attention.shape == (B, H, S, S)
    assert bool(jnp.all(jnp.isfinite(outputs)))
    assert bool(jnp.all(jnp.isfinite(attention.astype(jnp.float32))))
    print("KERNEL_OK")
</pallas_src>

<mosaic_0001>
module attributes {stable_mosaic.version = 11 : i64} {
  func.func @decoder_layer_kernel(%arg0: i32, %arg1: i32, %arg2: memref<1x8x32xf32, #tpu.memory_space<vmem>>, %arg3: memref<1x8x32xbf16, #tpu.memory_space<vmem>>, %arg4: memref<1x8x8xi8, #tpu.memory_space<vmem>>, %arg5: memref<32x32xbf16, #tpu.memory_space<vmem>>, %arg6: memref<32x32xbf16, #tpu.memory_space<vmem>>, %arg7: memref<32x32xbf16, #tpu.memory_space<vmem>>, %arg8: memref<32x32xbf16, #tpu.memory_space<vmem>>, %arg9: memref<1x32xf32, #tpu.memory_space<vmem>>, %arg10: memref<1x32xf32, #tpu.memory_space<vmem>>, %arg11: memref<32x64xbf16, #tpu.memory_space<vmem>>, %arg12: memref<64x32xbf16, #tpu.memory_space<vmem>>, %arg13: memref<1x32xf32, #tpu.memory_space<vmem>>, %arg14: memref<1x32xf32, #tpu.memory_space<vmem>>, %arg15: memref<1x8x32xf32, #tpu.memory_space<vmem>>, %arg16: memref<1x4x8x8xbf16, #tpu.memory_space<vmem>>, %arg17: memref<8x32xbf16, #tpu.memory_space<vmem>>, %arg18: memref<8x32xbf16, #tpu.memory_space<vmem>>, %arg19: memref<8x32xbf16, #tpu.memory_space<vmem>>, %arg20: memref<8x32xbf16, #tpu.memory_space<vmem>>) attributes {dimension_semantics = [#tpu.dimension_semantics<parallel>, #tpu.dimension_semantics<arbitrary>], iteration_bounds = array<i64: 2, 1>, scalar_prefetch = 0 : i64, scratch_operands = 4 : i64, tpu.core_type = #tpu.core_type<tc>, window_params = [{transform_indices = @transform_0, window_bounds = array<i64: 1, 8, 32>}, {transform_indices = @transform_1, window_bounds = array<i64: 1, 8, 32>}, {transform_indices = @transform_2, window_bounds = array<i64: 1, 8, 8>}, {pipeline_mode = #tpu.pipeline_mode<synchronous>, transform_indices = @transform_3, window_bounds = array<i64: 32, 32>}, {pipeline_mode = #tpu.pipeline_mode<synchronous>, transform_indices = @transform_4, window_bounds = array<i64: 32, 32>}, {pipeline_mode = #tpu.pipeline_mode<synchronous>, transform_indices = @transform_5, window_bounds = array<i64: 32, 32>}, {pipeline_mode = #tpu.pipeline_mode<synchronous>, transform_indices = @transform_6, window_bounds = array<i64: 32, 32>}, {pipeline_mode = #tpu.pipeline_mode<synchronous>, transform_indices = @transform_7, window_bounds = array<i64: 1, 32>}, {pipeline_mode = #tpu.pipeline_mode<synchronous>, transform_indices = @transform_8, window_bounds = array<i64: 1, 32>}, {pipeline_mode = #tpu.pipeline_mode<synchronous>, transform_indices = @transform_9, window_bounds = array<i64: 32, 64>}, {pipeline_mode = #tpu.pipeline_mode<synchronous>, transform_indices = @transform_10, window_bounds = array<i64: 64, 32>}, {pipeline_mode = #tpu.pipeline_mode<synchronous>, transform_indices = @transform_11, window_bounds = array<i64: 1, 32>}, {pipeline_mode = #tpu.pipeline_mode<synchronous>, transform_indices = @transform_12, window_bounds = array<i64: 1, 32>}, {transform_indices = @transform_13, window_bounds = array<i64: 1, 8, 32>}, {transform_indices = @transform_14, window_bounds = array<i64: 1, 4, 8, 8>}]} {
    %c0_i32 = arith.constant 0 : i32
    %0 = arith.cmpi eq, %arg1, %c0_i32 : i32
    %1 = arith.extui %0 : i1 to i32
    %c0_i32_0 = arith.constant 0 : i32
    %2 = arith.cmpi ne, %1, %c0_i32_0 : i32
    scf.if %2 {
      %c0_108 = arith.constant 0 : index
      %c0_109 = arith.constant 0 : index
      %c0_110 = arith.constant 0 : index
      %176 = vector.load %arg3[%c0_108, %c0_109, %c0_110] : memref<1x8x32xbf16, #tpu.memory_space<vmem>>, vector<1x8x32xbf16>
      %177 = vector.shape_cast %176 : vector<1x8x32xbf16> to vector<8x32xbf16>
      %c0_111 = arith.constant 0 : index
      %c0_112 = arith.constant 0 : index
      %178 = vector.load %arg6[%c0_111, %c0_112] : memref<32x32xbf16, #tpu.memory_space<vmem>>, vector<32x32xbf16>
      %cst_113 = arith.constant dense<0.000000e+00> : vector<8x32xf32>
      %179 = tpu.matmul %177, %178, %cst_113 {dimension_numbers = #tpu.dot_dimension_numbers<[1], [0], [0], [1], [0, 0, 1, 1], [], []>} : vector<8x32xbf16>, vector<32x32xbf16>, vector<8x32xf32> -> vector<8x32xf32>
      %180 = arith.truncf %179 : vector<8x32xf32> to vector<8x32xbf16>
      %c0_114 = arith.constant 0 : index
      %c0_115 = arith.constant 0 : index
      %181 = vector.load %arg17[%c0_114, %c0_115] : memref<8x32xbf16, #tpu.memory_space<vmem>>, vector<8x32xbf16>
      tpu.vector_store %arg17[%c0_114, %c0_115], %180 {strides = array<i32>} : memref<8x32xbf16, #tpu.memory_space<vmem>>, vector<8x32xbf16>,
      %c0_116 = arith.constant 0 : index
      %c0_117 = arith.constant 0 : index
      %182 = vector.load %arg7[%c0_116, %c0_117] : memref<32x32xbf16, #tpu.memory_space<vmem>>, vector<32x32xbf16>
      %cst_118 = arith.constant dense<0.000000e+00> : vector<8x32xf32>
      %183 = tpu.matmul %177, %182, %cst_118 {dimension_numbers = #tpu.dot_dimension_numbers<[1], [0], [0], [1], [0, 0, 1, 1], [], []>} : vector<8x32xbf16>, vector<32x32xbf16>, vector<8x32xf32> -> vector<8x32xf32>
      %184 = arith.truncf %183 : vector<8x32xf32> to vector<8x32xbf16>
      %c0_119 = arith.constant 0 : index
      %c0_120 = arith.constant 0 : index
      %185 = vector.load %arg18[%c0_119, %c0_120] : memref<8x32xbf16, #tpu.memory_space<vmem>>, vector<8x32xbf16>
      tpu.vector_store %arg18[%c0_119, %c0_120], %184 {strides = array<i32>} : memref<8x32xbf16, #tpu.memory_space<vmem>>, vector<8x32xbf16>,
    } else {
    }
    %c0 = arith.constant 0 : index
    %c0_1 = arith.constant 0 : index
    %c0_2 = arith.constant 0 : index
    %3 = vector.load %arg2[%c0, %c0_1, %c0_2] : memref<1x8x32xf32, #tpu.memory_space<vmem>>, vector<1x8x32xf32>
    %4 = vector.shape_cast %3 : vector<1x8x32xf32> to vector<8x32xf32>
    %5 = arith.truncf %4 : vector<8x32xf32> to vector<8x32xbf16>
    %c0_3 = arith.constant 0 : index
    %c0_4 = arith.constant 0 : index
    %6 = vector.load %arg5[%c0_3, %c0_4] : memref<32x32xbf16, #tpu.memory_space<vmem>>, vector<32x32xbf16>
    %cst = arith.constant dense<0.000000e+00> : vector<8x32xf32>
    %7 = tpu.matmul %5, %6, %cst {dimension_numbers = #tpu.dot_dimension_numbers<[1], [0], [0], [1], [0, 0, 1, 1], [], []>} : vector<8x32xbf16>, vector<32x32xbf16>, vector<8x32xf32> -> vector<8x32xf32>
    %8 = arith.truncf %7 : vector<8x32xf32> to vector<8x32xbf16>
    %c0_5 = arith.constant 0 : index
    %c0_6 = arith.constant 0 : index
    %9 = vector.load %arg19[%c0_5, %c0_6] : memref<8x32xbf16, #tpu.memory_space<vmem>>, vector<8x32xbf16>
    tpu.vector_store %arg19[%c0_5, %c0_6], %8 {strides = array<i32>} : memref<8x32xbf16, #tpu.memory_space<vmem>>, vector<8x32xbf16>,
    %c0_7 = arith.constant 0 : index
    %c0_8 = arith.constant 0 : index
    %c0_9 = arith.constant 0 : index
    %10 = vector.load %arg4[%c0_7, %c0_8, %c0_9] : memref<1x8x8xi8, #tpu.memory_space<vmem>>, vector<1x8x8xi8>
    %11 = vector.shape_cast %10 : vector<1x8x8xi8> to vector<8x8xi8>
    %c0_i8 = arith.constant 0 : i8
    %12 = vector.broadcast %c0_i8 : i8 to vector<8x8xi8>
    %13 = arith.cmpi ne, %11, %12 : vector<8x8xi8>
    %c0_10 = arith.constant 0 : index
    %c0_11 = arith.constant 0 : index
    %14 = vector.load %arg19[%c0_10, %c0_11] : memref<8x32xbf16, #tpu.memory_space<vmem>>, vector<8x8xbf16>
    %c0_12 = arith.constant 0 : index
    %c0_13 = arith.constant 0 : index
    %15 = vector.load %arg17[%c0_12, %c0_13] : memref<8x32xbf16, #tpu.memory_space<vmem>>, vector<8x8xbf16>
    %c0_14 = arith.constant 0 : index
    %c0_15 = arith.constant 0 : index
    %16 = vector.load %arg18[%c0_14, %c0_15] : memref<8x32xbf16, #tpu.memory_space<vmem>>, vector<8x8xbf16>
    "tpu.trace_start"() <{level = 10 : i32, message = "td,sd->ts"}> : () -> ()
    %cst_16 = arith.constant dense<0.000000e+00> : vector<8x8xf32>
    %17 = tpu.matmul %14, %15, %cst_16 {dimension_numbers = #tpu.dot_dimension_numbers<[1], [1], [0], [0], [0, 0, 1, 0], [], []>} : vector<8x8xbf16>, vector<8x8xbf16>, vector<8x8xf32> -> vector<8x8xf32>
    %cst_17 = arith.constant -1.000000e+09 : f32
    "tpu.trace_stop"() : () -> ()
    %18 = vector.broadcast %cst_17 : f32 to vector<8x8xf32>
    %19 = arith.select %13, %18, %17 : vector<8x8xi1>, vector<8x8xf32>
    %cst_18 = arith.constant dense<0xFF800000> : vector<8xf32>
    %20 = vector.multi_reduction <maximumf>, %19, %cst_18 [1] : vector<8x8xf32> to vector<8xf32>
    %21 = vector.shape_cast %20 : vector<8xf32> to vector<8x1xf32>
    %22 = vector.broadcast %21 : vector<8x1xf32> to vector<8x8xf32>
    %23 = arith.subf %19, %22 : vector<8x8xf32>
    %24 = math.exp %23 : vector<8x8xf32>
    %cst_19 = arith.constant dense<0.000000e+00> : vector<8xf32>
    %25 = vector.multi_reduction <add>, %24, %cst_19 [1] : vector<8x8xf32> to vector<8xf32>
    %26 = vector.shape_cast %25 : vector<8xf32> to vector<8x1xf32>
    %27 = tpu.reciprocal %26 : vector<8x1xf32> -> vector<8x1xf32>
    %28 = vector.broadcast %27 : vector<8x1xf32> to vector<8x8xf32>
    %29 = arith.mulf %24, %28 : vector<8x8xf32>
    %30 = arith.truncf %29 : vector<8x8xf32> to vector<8x8xbf16>
    %c0_20 = arith.constant 0 : index
    %c0_21 = arith.constant 0 : index
    %c0_22 = arith.constant 0 : index
    %c0_23 = arith.constant 0 : index
    %31 = vector.load %arg16[%c0_20, %c0_21, %c0_22, %c0_23] : memref<1x4x8x8xbf16, #tpu.memory_space<vmem>>, vector<1x1x8x8xbf16>
    %32 = vector.shape_cast %31 : vector<1x1x8x8xbf16> to vector<8x8xbf16>
    %33 = vector.shape_cast %30 : vector<8x8xbf16> to vector<1x1x8x8xbf16>
    tpu.vector_store %arg16[%c0_20, %c0_21, %c0_22, %c0_23], %33 {strides = array<i32>} : memref<1x4x8x8xbf16, #tpu.memory_space<vmem>>, vector<1x1x8x8xbf16>,
    %34 = arith.truncf %29 : vector<8x8xf32> to vector<8x8xbf16>
    %cst_24 = arith.constant dense<0.000000e+00> : vector<8x8xf32>
    %35 = tpu.matmul %34, %16, %cst_24 {dimension_numbers = #tpu.dot_dimension_numbers<[1], [0], [0], [1], [0, 0, 1, 1], [], []>} : vector<8x8xbf16>, vector<8x8xbf16>, vector<8x8xf32> -> vector<8x8xf32>
    %36 = arith.truncf %35 : vector<8x8xf32> to vector<8x8xbf16>
    %c0_25 = arith.constant 0 : index
    %c0_26 = arith.constant 0 : index
    %37 = vector.load %arg20[%c0_25, %c0_26] : memref<8x32xbf16, #tpu.memory_space<vmem>>, vector<8x8xbf16>
    tpu.vector_store %arg20[%c0_25, %c0_26], %36 {strides = array<i32>} : memref<8x32xbf16, #tpu.memory_space<vmem>>, vector<8x8xbf16>,
    %c0_27 = arith.constant 0 : index
    %c8 = arith.constant 8 : index
    %38 = vector.load %arg19[%c0_27, %c8] : memref<8x32xbf16, #tpu.memory_space<vmem>>, vector<8x8xbf16>
    %c0_28 = arith.constant 0 : index
    %c8_29 = arith.constant 8 : index
    %39 = vector.load %arg17[%c0_28, %c8_29] : memref<8x32xbf16, #tpu.memory_space<vmem>>, vector<8x8xbf16>
    %c0_30 = arith.constant 0 : index
    %c8_31 = arith.constant 8 : index
    %40 = vector.load %arg18[%c0_30, %c8_31] : memref<8x32xbf16, #tpu.memory_space<vmem>>, vector<8x8xbf16>
    "tpu.trace_start"() <{level = 10 : i32, message = "td,sd->ts"}> : () -> ()
    %cst_32 = arith.constant dense<0.000000e+00> : vector<8x8xf32>
    %41 = tpu.matmul %38, %39, %cst_32 {dimension_numbers = #tpu.dot_dimension_numbers<[1], [1], [0], [0], [0, 0, 1, 0], [], []>} : vector<8x8xbf16>, vector<8x8xbf16>, vector<8x8xf32> -> vector<8x8xf32>
    %cst_33 = arith.constant -1.000000e+09 : f32
    "tpu.trace_stop"() : () -> ()
    %42 = vector.broadcast %cst_33 : f32 to vector<8x8xf32>
    %43 = arith.select %13, %42, %41 : vector<8x8xi1>, vector<8x8xf32>
    %cst_34 = arith.constant dense<0xFF800000> : vector<8xf32>
    %44 = vector.multi_reduction <maximumf>, %43, %cst_34 [1] : vector<8x8xf32> to vector<8xf32>
    %45 = vector.shape_cast %44 : vector<8xf32> to vector<8x1xf32>
    %46 = vector.broadcast %45 : vector<8x1xf32> to vector<8x8xf32>
    %47 = arith.subf %43, %46 : vector<8x8xf32>
    %48 = math.exp %47 : vector<8x8xf32>
    %cst_35 = arith.constant dense<0.000000e+00> : vector<8xf32>
    %49 = vector.multi_reduction <add>, %48, %cst_35 [1] : vector<8x8xf32> to vector<8xf32>
    %50 = vector.shape_cast %49 : vector<8xf32> to vector<8x1xf32>
    %51 = tpu.reciprocal %50 : vector<8x1xf32> -> vector<8x1xf32>
    %52 = vector.broadcast %51 : vector<8x1xf32> to vector<8x8xf32>
    %53 = arith.mulf %48, %52 : vector<8x8xf32>
    %54 = arith.truncf %53 : vector<8x8xf32> to vector<8x8xbf16>
    %c0_36 = arith.constant 0 : index
    %c1 = arith.constant 1 : index
    %c0_37 = arith.constant 0 : index
    %c0_38 = arith.constant 0 : index
    %55 = vector.load %arg16[%c0_36, %c1, %c0_37, %c0_38] : memref<1x4x8x8xbf16, #tpu.memory_space<vmem>>, vector<1x1x8x8xbf16>
    %56 = vector.shape_cast %55 : vector<1x1x8x8xbf16> to vector<8x8xbf16>
    %57 = vector.shape_cast %54 : vector<8x8xbf16> to vector<1x1x8x8xbf16>
    tpu.vector_store %arg16[%c0_36, %c1, %c0_37, %c0_38], %57 {strides = array<i32>} : memref<1x4x8x8xbf16, #tpu.memory_space<vmem>>, vector<1x1x8x8xbf16>,
    %58 = arith.truncf %53 : vector<8x8xf32> to vector<8x8xbf16>
    %cst_39 = arith.constant dense<0.000000e+00> : vector<8x8xf32>
    %59 = tpu.matmul %58, %40, %cst_39 {dimension_numbers = #tpu.dot_dimension_numbers<[1], [0], [0], [1], [0, 0, 1, 1], [], []>} : vector<8x8xbf16>, vector<8x8xbf16>, vector<8x8xf32> -> vector<8x8xf32>
    %60 = arith.truncf %59 : vector<8x8xf32> to vector<8x8xbf16>
    %c0_40 = arith.constant 0 : index
    %c8_41 = arith.constant 8 : index
    %61 = vector.load %arg20[%c0_40, %c8_41] : memref<8x32xbf16, #tpu.memory_space<vmem>>, vector<8x8xbf16>
    tpu.vector_store %arg20[%c0_40, %c8_41], %60 {strides = array<i32>} : memref<8x32xbf16, #tpu.memory_space<vmem>>, vector<8x8xbf16>,
    %c0_42 = arith.constant 0 : index
    %c16 = arith.constant 16 : index
    %62 = vector.load %arg19[%c0_42, %c16] : memref<8x32xbf16, #tpu.memory_space<vmem>>, vector<8x8xbf16>
    %c0_43 = arith.constant 0 : index
    %c16_44 = arith.constant 16 : index
    %63 = vector.load %arg17[%c0_43, %c16_44] : memref<8x32xbf16, #tpu.memory_space<vmem>>, vector<8x8xbf16>
    %c0_45 = arith.constant 0 : index
    %c16_46 = arith.constant 16 : index
    %64 = vector.load %arg18[%c0_45, %c16_46] : memref<8x32xbf16, #tpu.memory_space<vmem>>, vector<8x8xbf16>
    "tpu.trace_start"() <{level = 10 : i32, message = "td,sd->ts"}> : () -> ()
    %cst_47 = arith.constant dense<0.000000e+00> : vector<8x8xf32>
    %65 = tpu.matmul %62, %63, %cst_47 {dimension_numbers = #tpu.dot_dimension_numbers<[1], [1], [0], [0], [0, 0, 1, 0], [], []>} : vector<8x8xbf16>, vector<8x8xbf16>, vector<8x8xf32> -> vector<8x8xf32>
    %cst_48 = arith.constant -1.000000e+09 : f32
    "tpu.trace_stop"() : () -> ()
    %66 = vector.broadcast %cst_48 : f32 to vector<8x8xf32>
    %67 = arith.select %13, %66, %65 : vector<8x8xi1>, vector<8x8xf32>
    %cst_49 = arith.constant dense<0xFF800000> : vector<8xf32>
    %68 = vector.multi_reduction <maximumf>, %67, %cst_49 [1] : vector<8x8xf32> to vector<8xf32>
    %69 = vector.shape_cast %68 : vector<8xf32> to vector<8x1xf32>
    %70 = vector.broadcast %69 : vector<8x1xf32> to vector<8x8xf32>
    %71 = arith.subf %67, %70 : vector<8x8xf32>
    %72 = math.exp %71 : vector<8x8xf32>
    %cst_50 = arith.constant dense<0.000000e+00> : vector<8xf32>
    %73 = vector.multi_reduction <add>, %72, %cst_50 [1] : vector<8x8xf32> to vector<8xf32>
    %74 = vector.shape_cast %73 : vector<8xf32> to vector<8x1xf32>
    %75 = tpu.reciprocal %74 : vector<8x1xf32> -> vector<8x1xf32>
    %76 = vector.broadcast %75 : vector<8x1xf32> to vector<8x8xf32>
    %77 = arith.mulf %72, %76 : vector<8x8xf32>
    %78 = arith.truncf %77 : vector<8x8xf32> to vector<8x8xbf16>
    %c0_51 = arith.constant 0 : index
    %c2 = arith.constant 2 : index
    %c0_52 = arith.constant 0 : index
    %c0_53 = arith.constant 0 : index
    %79 = vector.load %arg16[%c0_51, %c2, %c0_52, %c0_53] : memref<1x4x8x8xbf16, #tpu.memory_space<vmem>>, vector<1x1x8x8xbf16>
    %80 = vector.shape_cast %79 : vector<1x1x8x8xbf16> to vector<8x8xbf16>
    %81 = vector.shape_cast %78 : vector<8x8xbf16> to vector<1x1x8x8xbf16>
    tpu.vector_store %arg16[%c0_51, %c2, %c0_52, %c0_53], %81 {strides = array<i32>} : memref<1x4x8x8xbf16, #tpu.memory_space<vmem>>, vector<1x1x8x8xbf16>,
    %82 = arith.truncf %77 : vector<8x8xf32> to vector<8x8xbf16>
    %cst_54 = arith.constant dense<0.000000e+00> : vector<8x8xf32>
    %83 = tpu.matmul %82, %64, %cst_54 {dimension_numbers = #tpu.dot_dimension_numbers<[1], [0], [0], [1], [0, 0, 1, 1], [], []>} : vector<8x8xbf16>, vector<8x8xbf16>, vector<8x8xf32> -> vector<8x8xf32>
    %84 = arith.truncf %83 : vector<8x8xf32> to vector<8x8xbf16>
    %c0_55 = arith.constant 0 : index
    %c16_56 = arith.constant 16 : index
    %85 = vector.load %arg20[%c0_55, %c16_56] : memref<8x32xbf16, #tpu.memory_space<vmem>>, vector<8x8xbf16>
    tpu.vector_store %arg20[%c0_55, %c16_56], %84 {strides = array<i32>} : memref<8x32xbf16, #tpu.memory_space<vmem>>, vector<8x8xbf16>,
    %c0_57 = arith.constant 0 : index
    %c24 = arith.constant 24 : index
    %86 = vector.load %arg19[%c0_57, %c24] : memref<8x32xbf16, #tpu.memory_space<vmem>>, vector<8x8xbf16>
    %c0_58 = arith.constant 0 : index
    %c24_59 = arith.constant 24 : index
    %87 = vector.load %arg17[%c0_58, %c24_59] : memref<8x32xbf16, #tpu.memory_space<vmem>>, vector<8x8xbf16>
    %c0_60 = arith.constant 0 : index
    %c24_61 = arith.constant 24 : index
    %88 = vector.load %arg18[%c0_60, %c24_61] : memref<8x32xbf16, #tpu.memory_space<vmem>>, vector<8x8xbf16>
    "tpu.trace_start"() <{level = 10 : i32, message = "td,sd->ts"}> : () -> ()
    %cst_62 = arith.constant dense<0.000000e+00> : vector<8x8xf32>
    %89 = tpu.matmul %86, %87, %cst_62 {dimension_numbers = #tpu.dot_dimension_numbers<[1], [1], [0], [0], [0, 0, 1, 0], [], []>} : vector<8x8xbf16>, vector<8x8xbf16>, vector<8x8xf32> -> vector<8x8xf32>
    %cst_63 = arith.constant -1.000000e+09 : f32
    "tpu.trace_stop"() : () -> ()
    %90 = vector.broadcast %cst_63 : f32 to vector<8x8xf32>
    %91 = arith.select %13, %90, %89 : vector<8x8xi1>, vector<8x8xf32>
    %cst_64 = arith.constant dense<0xFF800000> : vector<8xf32>
    %92 = vector.multi_reduction <maximumf>, %91, %cst_64 [1] : vector<8x8xf32> to vector<8xf32>
    %93 = vector.shape_cast %92 : vector<8xf32> to vector<8x1xf32>
    %94 = vector.broadcast %93 : vector<8x1xf32> to vector<8x8xf32>
    %95 = arith.subf %91, %94 : vector<8x8xf32>
    %96 = math.exp %95 : vector<8x8xf32>
    %cst_65 = arith.constant dense<0.000000e+00> : vector<8xf32>
    %97 = vector.multi_reduction <add>, %96, %cst_65 [1] : vector<8x8xf32> to vector<8xf32>
    %98 = vector.shape_cast %97 : vector<8xf32> to vector<8x1xf32>
    %99 = tpu.reciprocal %98 : vector<8x1xf32> -> vector<8x1xf32>
    %100 = vector.broadcast %99 : vector<8x1xf32> to vector<8x8xf32>
    %101 = arith.mulf %96, %100 : vector<8x8xf32>
    %102 = arith.truncf %101 : vector<8x8xf32> to vector<8x8xbf16>
    %c0_66 = arith.constant 0 : index
    %c3 = arith.constant 3 : index
    %c0_67 = arith.constant 0 : index
    %c0_68 = arith.constant 0 : index
    %103 = vector.load %arg16[%c0_66, %c3, %c0_67, %c0_68] : memref<1x4x8x8xbf16, #tpu.memory_space<vmem>>, vector<1x1x8x8xbf16>
    %104 = vector.shape_cast %103 : vector<1x1x8x8xbf16> to vector<8x8xbf16>
    %105 = vector.shape_cast %102 : vector<8x8xbf16> to vector<1x1x8x8xbf16>
    tpu.vector_store %arg16[%c0_66, %c3, %c0_67, %c0_68], %105 {strides = array<i32>} : memref<1x4x8x8xbf16, #tpu.memory_space<vmem>>, vector<1x1x8x8xbf16>,
    %106 = arith.truncf %101 : vector<8x8xf32> to vector<8x8xbf16>
    %cst_69 = arith.constant dense<0.000000e+00> : vector<8x8xf32>
    %107 = tpu.matmul %106, %88, %cst_69 {dimension_numbers = #tpu.dot_dimension_numbers<[1], [0], [0], [1], [0, 0, 1, 1], [], []>} : vector<8x8xbf16>, vector<8x8xbf16>, vector<8x8xf32> -> vector<8x8xf32>
    %108 = arith.truncf %107 : vector<8x8xf32> to vector<8x8xbf16>
    %c0_70 = arith.constant 0 : index
    %c24_71 = arith.constant 24 : index
    %109 = vector.load %arg20[%c0_70, %c24_71] : memref<8x32xbf16, #tpu.memory_space<vmem>>, vector<8x8xbf16>
    tpu.vector_store %arg20[%c0_70, %c24_71], %108 {strides = array<i32>} : memref<8x32xbf16, #tpu.memory_space<vmem>>, vector<8x8xbf16>,
    %c0_72 = arith.constant 0 : index
    %c0_73 = arith.constant 0 : index
    %110 = vector.load %arg20[%c0_72, %c0_73] : memref<8x32xbf16, #tpu.memory_space<vmem>>, vector<8x32xbf16>
    %c0_74 = arith.constant 0 : index
    %c0_75 = arith.constant 0 : index
    %111 = vector.load %arg8[%c0_74, %c0_75] : memref<32x32xbf16, #tpu.memory_space<vmem>>, vector<32x32xbf16>
    %cst_76 = arith.constant dense<0.000000e+00> : vector<8x32xf32>
    %112 = tpu.matmul %110, %111, %cst_76 {dimension_numbers = #tpu.dot_dimension_numbers<[1], [0], [0], [1], [0, 0, 1, 1], [], []>} : vector<8x32xbf16>, vector<32x32xbf16>, vector<8x32xf32> -> vector<8x32xf32>
    %c0_77 = arith.constant 0 : index
    %c0_78 = arith.constant 0 : index
    %c0_79 = arith.constant 0 : index
    %113 = vector.load %arg2[%c0_77, %c0_78, %c0_79] : memref<1x8x32xf32, #tpu.memory_space<vmem>>, vector<1x8x32xf32>
    %114 = vector.shape_cast %113 : vector<1x8x32xf32> to vector<8x32xf32>
    %115 = arith.addf %112, %114 : vector<8x32xf32>
    %c0_80 = arith.constant 0 : index
    %c0_81 = arith.constant 0 : index
    %116 = vector.load %arg9[%c0_80, %c0_81] : memref<1x32xf32, #tpu.memory_space<vmem>>, vector<1x32xf32>
    %c0_82 = arith.constant 0 : index
    %c0_83 = arith.constant 0 : index
    %117 = vector.load %arg10[%c0_82, %c0_83] : memref<1x32xf32, #tpu.memory_space<vmem>>, vector<1x32xf32>
    %cst_84 = arith.constant dense<0.000000e+00> : vector<8xf32>
    %118 = vector.multi_reduction <add>, %115, %cst_84 [1] : vector<8x32xf32> to vector<8xf32>
    %119 = vector.shape_cast %118 : vector<8xf32> to vector<8x1xf32>
    %cst_85 = arith.constant 3.200000e+01 : f32
    %120 = vector.broadcast %cst_85 : f32 to vector<8x1xf32>
    %121 = arith.divf %119, %120 : vector<8x1xf32>
    %122 = vector.broadcast %121 : vector<8x1xf32> to vector<8x32xf32>
    %123 = arith.subf %115, %122 : vector<8x32xf32>
    %124 = arith.mulf %123, %123 : vector<8x32xf32>
    %cst_86 = arith.constant dense<0.000000e+00> : vector<8xf32>
    %125 = vector.multi_reduction <add>, %124, %cst_86 [1] : vector<8x32xf32> to vector<8xf32>
    %126 = vector.shape_cast %125 : vector<8xf32> to vector<8x1xf32>
    %cst_87 = arith.constant 3.200000e+01 : f32
    %127 = vector.broadcast %cst_87 : f32 to vector<8x1xf32>
    %128 = arith.divf %126, %127 : vector<8x1xf32>
    %129 = vector.broadcast %121 : vector<8x1xf32> to vector<8x32xf32>
    %130 = arith.subf %115, %129 : vector<8x32xf32>
    %cst_88 = arith.constant 9.99999974E-6 : f32
    %131 = vector.broadcast %cst_88 : f32 to vector<8x1xf32>
    %132 = arith.addf %128, %131 : vector<8x1xf32>
    %133 = math.rsqrt %132 : vector<8x1xf32>
    %134 = vector.broadcast %133 : vector<8x1xf32> to vector<8x32xf32>
    %135 = arith.mulf %130, %134 : vector<8x32xf32>
    %136 = vector.broadcast %116 : vector<1x32xf32> to vector<8x32xf32>
    %137 = arith.mulf %135, %136 : vector<8x32xf32>
    %138 = vector.broadcast %117 : vector<1x32xf32> to vector<8x32xf32>
    %139 = arith.addf %137, %138 : vector<8x32xf32>
    %140 = arith.truncf %139 : vector<8x32xf32> to vector<8x32xbf16>
    %c0_89 = arith.constant 0 : index
    %c0_90 = arith.constant 0 : index
    %141 = vector.load %arg11[%c0_89, %c0_90] : memref<32x64xbf16, #tpu.memory_space<vmem>>, vector<32x64xbf16>
    %cst_91 = arith.constant dense<0.000000e+00> : vector<8x64xf32>
    %142 = tpu.matmul %140, %141, %cst_91 {dimension_numbers = #tpu.dot_dimension_numbers<[1], [0], [0], [1], [0, 0, 1, 1], [], []>} : vector<8x32xbf16>, vector<32x64xbf16>, vector<8x64xf32> -> vector<8x64xf32>
    %cst_92 = arith.constant 0.000000e+00 : f32
    %143 = vector.broadcast %cst_92 : f32 to vector<8x64xf32>
    %144 = arith.maximumf %142, %143 : vector<8x64xf32>
    %145 = arith.truncf %144 : vector<8x64xf32> to vector<8x64xbf16>
    %c0_93 = arith.constant 0 : index
    %c0_94 = arith.constant 0 : index
    %146 = vector.load %arg12[%c0_93, %c0_94] : memref<64x32xbf16, #tpu.memory_space<vmem>>, vector<64x32xbf16>
    %cst_95 = arith.constant dense<0.000000e+00> : vector<8x32xf32>
    %147 = tpu.matmul %145, %146, %cst_95 {dimension_numbers = #tpu.dot_dimension_numbers<[1], [0], [0], [1], [0, 0, 1, 1], [], []>} : vector<8x64xbf16>, vector<64x32xbf16>, vector<8x32xf32> -> vector<8x32xf32>
    %148 = arith.addf %147, %139 : vector<8x32xf32>
    %c0_96 = arith.constant 0 : index
    %c0_97 = arith.constant 0 : index
    %149 = vector.load %arg13[%c0_96, %c0_97] : memref<1x32xf32, #tpu.memory_space<vmem>>, vector<1x32xf32>
    %c0_98 = arith.constant 0 : index
    %c0_99 = arith.constant 0 : index
    %150 = vector.load %arg14[%c0_98, %c0_99] : memref<1x32xf32, #tpu.memory_space<vmem>>, vector<1x32xf32>
    %cst_100 = arith.constant dense<0.000000e+00> : vector<8xf32>
    %151 = vector.multi_reduction <add>, %148, %cst_100 [1] : vector<8x32xf32> to vector<8xf32>
    %152 = vector.shape_cast %151 : vector<8xf32> to vector<8x1xf32>
    %cst_101 = arith.constant 3.200000e+01 : f32
    %153 = vector.broadcast %cst_101 : f32 to vector<8x1xf32>
    %154 = arith.divf %152, %153 : vector<8x1xf32>
    %155 = vector.broadcast %154 : vector<8x1xf32> to vector<8x32xf32>
    %156 = arith.subf %148, %155 : vector<8x32xf32>
    %157 = arith.mulf %156, %156 : vector<8x32xf32>
    %cst_102 = arith.constant dense<0.000000e+00> : vector<8xf32>
    %158 = vector.multi_reduction <add>, %157, %cst_102 [1] : vector<8x32xf32> to vector<8xf32>
    %159 = vector.shape_cast %158 : vector<8xf32> to vector<8x1xf32>
    %cst_103 = arith.constant 3.200000e+01 : f32
    %160 = vector.broadcast %cst_103 : f32 to vector<8x1xf32>
    %161 = arith.divf %159, %160 : vector<8x1xf32>
    %162 = vector.broadcast %154 : vector<8x1xf32> to vector<8x32xf32>
    %163 = arith.subf %148, %162 : vector<8x32xf32>
    %cst_104 = arith.constant 9.99999974E-6 : f32
    %164 = vector.broadcast %cst_104 : f32 to vector<8x1xf32>
    %165 = arith.addf %161, %164 : vector<8x1xf32>
    %166 = math.rsqrt %165 : vector<8x1xf32>
    %167 = vector.broadcast %166 : vector<8x1xf32> to vector<8x32xf32>
    %168 = arith.mulf %163, %167 : vector<8x32xf32>
    %169 = vector.broadcast %149 : vector<1x32xf32> to vector<8x32xf32>
    %170 = arith.mulf %168, %169 : vector<8x32xf32>
    %171 = vector.broadcast %150 : vector<1x32xf32> to vector<8x32xf32>
    %172 = arith.addf %170, %171 : vector<8x32xf32>
    %c0_105 = arith.constant 0 : index
    %c0_106 = arith.constant 0 : index
    %c0_107 = arith.constant 0 : index
    %173 = vector.load %arg15[%c0_105, %c0_106, %c0_107] : memref<1x8x32xf32, #tpu.memory_space<vmem>>, vector<1x8x32xf32>
    %174 = vector.shape_cast %173 : vector<1x8x32xf32> to vector<8x32xf32>
    %175 = vector.shape_cast %172 : vector<8x32xf32> to vector<1x8x32xf32>
    tpu.vector_store %arg15[%c0_105, %c0_106, %c0_107], %175 {strides = array<i32>} : memref<1x8x32xf32, #tpu.memory_space<vmem>>, vector<1x8x32xf32>,
    return
  }
  func.func @transform_0(%arg0: i32, %arg1: i32) -> (i32, i32, i32) {
    %c0_i32 = arith.constant 0 : i32
    %c0_i32_0 = arith.constant 0 : i32
    return %arg0, %arg1, %c0_i32 : i32, i32, i32
  }
  func.func @transform_1(%arg0: i32, %arg1: i32) -> (i32, i32, i32) {
    %c0_i32 = arith.constant 0 : i32
    %c0_i32_0 = arith.constant 0 : i32
    %c0_i32_1 = arith.constant 0 : i32
    return %arg0, %c0_i32, %c0_i32_0 : i32, i32, i32
  }
  func.func @transform_2(%arg0: i32, %arg1: i32) -> (i32, i32, i32) {
    %c0_i32 = arith.constant 0 : i32
    %c0_i32_0 = arith.constant 0 : i32
    return %arg0, %arg1, %c0_i32 : i32, i32, i32
  }
  func.func @transform_3(%arg0: i32, %arg1: i32) -> (i32, i32) {
    %c0_i32 = arith.constant 0 : i32
    %c0_i32_0 = arith.constant 0 : i32
    %c0_i32_1 = arith.constant 0 : i32
    return %c0_i32, %c0_i32_0 : i32, i32
  }
  func.func @transform_4(%arg0: i32, %arg1: i32) -> (i32, i32) {
    %c0_i32 = arith.constant 0 : i32
    %c0_i32_0 = arith.constant 0 : i32
    %c0_i32_1 = arith.constant 0 : i32
    return %c0_i32, %c0_i32_0 : i32, i32
  }
  func.func @transform_5(%arg0: i32, %arg1: i32) -> (i32, i32) {
    %c0_i32 = arith.constant 0 : i32
    %c0_i32_0 = arith.constant 0 : i32
    %c0_i32_1 = arith.constant 0 : i32
    return %c0_i32, %c0_i32_0 : i32, i32
  }
  func.func @transform_6(%arg0: i32, %arg1: i32) -> (i32, i32) {
    %c0_i32 = arith.constant 0 : i32
    %c0_i32_0 = arith.constant 0 : i32
    %c0_i32_1 = arith.constant 0 : i32
    return %c0_i32, %c0_i32_0 : i32, i32
  }
  func.func @transform_7(%arg0: i32, %arg1: i32) -> (i32, i32) {
    %c0_i32 = arith.constant 0 : i32
    %c0_i32_0 = arith.constant 0 : i32
    %c0_i32_1 = arith.constant 0 : i32
    return %c0_i32, %c0_i32_0 : i32, i32
  }
  func.func @transform_8(%arg0: i32, %arg1: i32) -> (i32, i32) {
    %c0_i32 = arith.constant 0 : i32
    %c0_i32_0 = arith.constant 0 : i32
    %c0_i32_1 = arith.constant 0 : i32
    return %c0_i32, %c0_i32_0 : i32, i32
  }
  func.func @transform_9(%arg0: i32, %arg1: i32) -> (i32, i32) {
    %c0_i32 = arith.constant 0 : i32
    %c0_i32_0 = arith.constant 0 : i32
    %c0_i32_1 = arith.constant 0 : i32
    return %c0_i32, %c0_i32_0 : i32, i32
  }
  func.func @transform_10(%arg0: i32, %arg1: i32) -> (i32, i32) {
    %c0_i32 = arith.constant 0 : i32
    %c0_i32_0 = arith.constant 0 : i32
    %c0_i32_1 = arith.constant 0 : i32
    return %c0_i32, %c0_i32_0 : i32, i32
  }
  func.func @transform_11(%arg0: i32, %arg1: i32) -> (i32, i32) {
    %c0_i32 = arith.constant 0 : i32
    %c0_i32_0 = arith.constant 0 : i32
    %c0_i32_1 = arith.constant 0 : i32
    return %c0_i32, %c0_i32_0 : i32, i32
  }
  func.func @transform_12(%arg0: i32, %arg1: i32) -> (i32, i32) {
    %c0_i32 = arith.constant 0 : i32
    %c0_i32_0 = arith.constant 0 : i32
    %c0_i32_1 = arith.constant 0 : i32
    return %c0_i32, %c0_i32_0 : i32, i32
  }
  func.func @transform_13(%arg0: i32, %arg1: i32) -> (i32, i32, i32) {
    %c0_i32 = arith.constant 0 : i32
    %c0_i32_0 = arith.constant 0 : i32
    return %arg0, %arg1, %c0_i32 : i32, i32, i32
  }
  func.func @transform_14(%arg0: i32, %arg1: i32) -> (i32, i32, i32, i32) {
    %c0_i32 = arith.constant 0 : i32
    %c0_i32_0 = arith.constant 0 : i32
    %c0_i32_1 = arith.constant 0 : i32
    return %arg0, %c0_i32, %arg1, %c0_i32_0 : i32, i32, i32, i32
  }
}

module attributes {stable_mosaic.version = 11 : i64} {
  func.func @decoder_layer_kernel(%arg0: i32, %arg1: i32, %arg2: memref<1x8x32xf32, #tpu.memory_space<vmem>>, %arg3: memref<1x8x32xbf16, #tpu.memory_space<vmem>>, %arg4: memref<1x8x8xi8, #tpu.memory_space<vmem>>, %arg5: memref<32x32xbf16, #tpu.memory_space<vmem>>, %arg6: memref<32x32xbf16, #tpu.memory_space<vmem>>, %arg7: memref<32x32xbf16, #tpu.memory_space<vmem>>, %arg8: memref<32x32xbf16, #tpu.memory_space<vmem>>, %arg9: memref<1x32xf32, #tpu.memory_space<vmem>>, %arg10: memref<1x32xf32, #tpu.memory_space<vmem>>, %arg11: memref<32x64xbf16, #tpu.memory_space<vmem>>, %arg12: memref<64x32xbf16, #tpu.memory_space<vmem>>, %arg13: memref<1x32xf32, #tpu.memory_space<vmem>>, %arg14: memref<1x32xf32, #tpu.memory_space<vmem>>, %arg15: memref<1x8x32xf32, #tpu.memory_space<vmem>>, %arg16: memref<1x4x8x8xbf16, #tpu.memory_space<vmem>>, %arg17: memref<8x32xbf16, #tpu.memory_space<vmem>>, %arg18: memref<8x32xbf16, #tpu.memory_space<vmem>>, %arg19: memref<8x32xbf16, #tpu.memory_space<vmem>>, %arg20: memref<8x32xbf16, #tpu.memory_space<vmem>>) attributes {dimension_semantics = [#tpu.dimension_semantics<parallel>, #tpu.dimension_semantics<arbitrary>], iteration_bounds = array<i64: 2, 1>, scalar_prefetch = 0 : i64, scratch_operands = 4 : i64, tpu.core_type = #tpu.core_type<tc>, window_params = [{transform_indices = @transform_0, window_bounds = array<i64: 1, 8, 32>}, {transform_indices = @transform_1, window_bounds = array<i64: 1, 8, 32>}, {transform_indices = @transform_2, window_bounds = array<i64: 1, 8, 8>}, {pipeline_mode = #tpu.pipeline_mode<synchronous>, transform_indices = @transform_3, window_bounds = array<i64: 32, 32>}, {pipeline_mode = #tpu.pipeline_mode<synchronous>, transform_indices = @transform_4, window_bounds = array<i64: 32, 32>}, {pipeline_mode = #tpu.pipeline_mode<synchronous>, transform_indices = @transform_5, window_bounds = array<i64: 32, 32>}, {pipeline_mode = #tpu.pipeline_mode<synchronous>, transform_indices = @transform_6, window_bounds = array<i64: 32, 32>}, {pipeline_mode = #tpu.pipeline_mode<synchronous>, transform_indices = @transform_7, window_bounds = array<i64: 1, 32>}, {pipeline_mode = #tpu.pipeline_mode<synchronous>, transform_indices = @transform_8, window_bounds = array<i64: 1, 32>}, {pipeline_mode = #tpu.pipeline_mode<synchronous>, transform_indices = @transform_9, window_bounds = array<i64: 32, 64>}, {pipeline_mode = #tpu.pipeline_mode<synchronous>, transform_indices = @transform_10, window_bounds = array<i64: 64, 32>}, {pipeline_mode = #tpu.pipeline_mode<synchronous>, transform_indices = @transform_11, window_bounds = array<i64: 1, 32>}, {pipeline_mode = #tpu.pipeline_mode<synchronous>, transform_indices = @transform_12, window_bounds = array<i64: 1, 32>}, {transform_indices = @transform_13, window_bounds = array<i64: 1, 8, 32>}, {transform_indices = @transform_14, window_bounds = array<i64: 1, 4, 8, 8>}]} {
    %c0_i32 = arith.constant 0 : i32
    %0 = arith.cmpi eq, %arg1, %c0_i32 : i32
    %1 = arith.extui %0 : i1 to i32
    %c0_i32_0 = arith.constant 0 : i32
    %2 = arith.cmpi ne, %1, %c0_i32_0 : i32
    scf.if %2 {
      %c0_108 = arith.constant 0 : index
      %c0_109 = arith.constant 0 : index
      %c0_110 = arith.constant 0 : index
      %176 = vector.load %arg3[%c0_108, %c0_109, %c0_110] : memref<1x8x32xbf16, #tpu.memory_space<vmem>>, vector<1x8x32xbf16>
      %177 = vector.shape_cast %176 : vector<1x8x32xbf16> to vector<8x32xbf16>
      %c0_111 = arith.constant 0 : index
      %c0_112 = arith.constant 0 : index
      %178 = vector.load %arg6[%c0_111, %c0_112] : memref<32x32xbf16, #tpu.memory_space<vmem>>, vector<32x32xbf16>
      %cst_113 = arith.constant dense<0.000000e+00> : vector<8x32xf32>
      %179 = tpu.matmul %177, %178, %cst_113 {dimension_numbers = #tpu.dot_dimension_numbers<[1], [0], [0], [1], [0, 0, 1, 1], [], []>} : vector<8x32xbf16>, vector<32x32xbf16>, vector<8x32xf32> -> vector<8x32xf32>
      %180 = arith.truncf %179 : vector<8x32xf32> to vector<8x32xbf16>
      %c0_114 = arith.constant 0 : index
      %c0_115 = arith.constant 0 : index
      %181 = vector.load %arg17[%c0_114, %c0_115] : memref<8x32xbf16, #tpu.memory_space<vmem>>, vector<8x32xbf16>
      tpu.vector_store %arg17[%c0_114, %c0_115], %180 {strides = array<i32>} : memref<8x32xbf16, #tpu.memory_space<vmem>>, vector<8x32xbf16>,
      %c0_116 = arith.constant 0 : index
      %c0_117 = arith.constant 0 : index
      %182 = vector.load %arg7[%c0_116, %c0_117] : memref<32x32xbf16, #tpu.memory_space<vmem>>, vector<32x32xbf16>
      %cst_118 = arith.constant dense<0.000000e+00> : vector<8x32xf32>
      %183 = tpu.matmul %177, %182, %cst_118 {dimension_numbers = #tpu.dot_dimension_numbers<[1], [0], [0], [1], [0, 0, 1, 1], [], []>} : vector<8x32xbf16>, vector<32x32xbf16>, vector<8x32xf32> -> vector<8x32xf32>
      %184 = arith.truncf %183 : vector<8x32xf32> to vector<8x32xbf16>
      %c0_119 = arith.constant 0 : index
      %c0_120 = arith.constant 0 : index
      %185 = vector.load %arg18[%c0_119, %c0_120] : memref<8x32xbf16, #tpu.memory_space<vmem>>, vector<8x32xbf16>
      tpu.vector_store %arg18[%c0_119, %c0_120], %184 {strides = array<i32>} : memref<8x32xbf16, #tpu.memory_space<vmem>>, vector<8x32xbf16>,
    } else {
    }
    %c0 = arith.constant 0 : index
    %c0_1 = arith.constant 0 : index
    %c0_2 = arith.constant 0 : index
    %3 = vector.load %arg2[%c0, %c0_1, %c0_2] : memref<1x8x32xf32, #tpu.memory_space<vmem>>, vector<1x8x32xf32>
    %4 = vector.shape_cast %3 : vector<1x8x32xf32> to vector<8x32xf32>
    %5 = arith.truncf %4 : vector<8x32xf32> to vector<8x32xbf16>
    %c0_3 = arith.constant 0 : index
    %c0_4 = arith.constant 0 : index
    %6 = vector.load %arg5[%c0_3, %c0_4] : memref<32x32xbf16, #tpu.memory_space<vmem>>, vector<32x32xbf16>
    %cst = arith.constant dense<0.000000e+00> : vector<8x32xf32>
    %7 = tpu.matmul %5, %6, %cst {dimension_numbers = #tpu.dot_dimension_numbers<[1], [0], [0], [1], [0, 0, 1, 1], [], []>} : vector<8x32xbf16>, vector<32x32xbf16>, vector<8x32xf32> -> vector<8x32xf32>
    %8 = arith.truncf %7 : vector<8x32xf32> to vector<8x32xbf16>
    %c0_5 = arith.constant 0 : index
    %c0_6 = arith.constant 0 : index
    %9 = vector.load %arg19[%c0_5, %c0_6] : memref<8x32xbf16, #tpu.memory_space<vmem>>, vector<8x32xbf16>
    tpu.vector_store %arg19[%c0_5, %c0_6], %8 {strides = array<i32>} : memref<8x32xbf16, #tpu.memory_space<vmem>>, vector<8x32xbf16>,
    %c0_7 = arith.constant 0 : index
    %c0_8 = arith.constant 0 : index
    %c0_9 = arith.constant 0 : index
    %10 = vector.load %arg4[%c0_7, %c0_8, %c0_9] : memref<1x8x8xi8, #tpu.memory_space<vmem>>, vector<1x8x8xi8>
    %11 = vector.shape_cast %10 : vector<1x8x8xi8> to vector<8x8xi8>
    %c0_i8 = arith.constant 0 : i8
    %12 = vector.broadcast %c0_i8 : i8 to vector<8x8xi8>
    %13 = arith.cmpi ne, %11, %12 : vector<8x8xi8>
    %c0_10 = arith.constant 0 : index
    %c0_11 = arith.constant 0 : index
    %14 = vector.load %arg19[%c0_10, %c0_11] : memref<8x32xbf16, #tpu.memory_space<vmem>>, vector<8x8xbf16>
    %c0_12 = arith.constant 0 : index
    %c0_13 = arith.constant 0 : index
    %15 = vector.load %arg17[%c0_12, %c0_13] : memref<8x32xbf16, #tpu.memory_space<vmem>>, vector<8x8xbf16>
    %c0_14 = arith.constant 0 : index
    %c0_15 = arith.constant 0 : index
    %16 = vector.load %arg18[%c0_14, %c0_15] : memref<8x32xbf16, #tpu.memory_space<vmem>>, vector<8x8xbf16>
    "tpu.trace_start"() <{level = 10 : i32, message = "td,sd->ts"}> : () -> ()
    %cst_16 = arith.constant dense<0.000000e+00> : vector<8x8xf32>
    %17 = tpu.matmul %14, %15, %cst_16 {dimension_numbers = #tpu.dot_dimension_numbers<[1], [1], [0], [0], [0, 0, 1, 0], [], []>} : vector<8x8xbf16>, vector<8x8xbf16>, vector<8x8xf32> -> vector<8x8xf32>
    %cst_17 = arith.constant -1.000000e+09 : f32
    "tpu.trace_stop"() : () -> ()
    %18 = vector.broadcast %cst_17 : f32 to vector<8x8xf32>
    %19 = arith.select %13, %18, %17 : vector<8x8xi1>, vector<8x8xf32>
    %cst_18 = arith.constant dense<0xFF800000> : vector<8xf32>
    %20 = vector.multi_reduction <maximumf>, %19, %cst_18 [1] : vector<8x8xf32> to vector<8xf32>
    %21 = vector.shape_cast %20 : vector<8xf32> to vector<8x1xf32>
    %22 = vector.broadcast %21 : vector<8x1xf32> to vector<8x8xf32>
    %23 = arith.subf %19, %22 : vector<8x8xf32>
    %24 = math.exp %23 : vector<8x8xf32>
    %cst_19 = arith.constant dense<0.000000e+00> : vector<8xf32>
    %25 = vector.multi_reduction <add>, %24, %cst_19 [1] : vector<8x8xf32> to vector<8xf32>
    %26 = vector.shape_cast %25 : vector<8xf32> to vector<8x1xf32>
    %27 = tpu.reciprocal %26 : vector<8x1xf32> -> vector<8x1xf32>
    %28 = vector.broadcast %27 : vector<8x1xf32> to vector<8x8xf32>
    %29 = arith.mulf %24, %28 : vector<8x8xf32>
    %30 = arith.truncf %29 : vector<8x8xf32> to vector<8x8xbf16>
    %c0_20 = arith.constant 0 : index
    %c0_21 = arith.constant 0 : index
    %c0_22 = arith.constant 0 : index
    %c0_23 = arith.constant 0 : index
    %31 = vector.load %arg16[%c0_20, %c0_21, %c0_22, %c0_23] : memref<1x4x8x8xbf16, #tpu.memory_space<vmem>>, vector<1x1x8x8xbf16>
    %32 = vector.shape_cast %31 : vector<1x1x8x8xbf16> to vector<8x8xbf16>
    %33 = vector.shape_cast %30 : vector<8x8xbf16> to vector<1x1x8x8xbf16>
    tpu.vector_store %arg16[%c0_20, %c0_21, %c0_22, %c0_23], %33 {strides = array<i32>} : memref<1x4x8x8xbf16, #tpu.memory_space<vmem>>, vector<1x1x8x8xbf16>,
    %34 = arith.truncf %29 : vector<8x8xf32> to vector<8x8xbf16>
    %cst_24 = arith.constant dense<0.000000e+00> : vector<8x8xf32>
    %35 = tpu.matmul %34, %16, %cst_24 {dimension_numbers = #tpu.dot_dimension_numbers<[1], [0], [0], [1], [0, 0, 1, 1], [], []>} : vector<8x8xbf16>, vector<8x8xbf16>, vector<8x8xf32> -> vector<8x8xf32>
    %36 = arith.truncf %35 : vector<8x8xf32> to vector<8x8xbf16>
    %c0_25 = arith.constant 0 : index
    %c0_26 = arith.constant 0 : index
    %37 = vector.load %arg20[%c0_25, %c0_26] : memref<8x32xbf16, #tpu.memory_space<vmem>>, vector<8x8xbf16>
    tpu.vector_store %arg20[%c0_25, %c0_26], %36 {strides = array<i32>} : memref<8x32xbf16, #tpu.memory_space<vmem>>, vector<8x8xbf16>,
    %c0_27 = arith.constant 0 : index
    %c8 = arith.constant 8 : index
    %38 = vector.load %arg19[%c0_27, %c8] : memref<8x32xbf16, #tpu.memory_space<vmem>>, vector<8x8xbf16>
    %c0_28 = arith.constant 0 : index
    %c8_29 = arith.constant 8 : index
    %39 = vector.load %arg17[%c0_28, %c8_29] : memref<8x32xbf16, #tpu.memory_space<vmem>>, vector<8x8xbf16>
    %c0_30 = arith.constant 0 : index
    %c8_31 = arith.constant 8 : index
    %40 = vector.load %arg18[%c0_30, %c8_31] : memref<8x32xbf16, #tpu.memory_space<vmem>>, vector<8x8xbf16>
    "tpu.trace_start"() <{level = 10 : i32, message = "td,sd->ts"}> : () -> ()
    %cst_32 = arith.constant dense<0.000000e+00> : vector<8x8xf32>
    %41 = tpu.matmul %38, %39, %cst_32 {dimension_numbers = #tpu.dot_dimension_numbers<[1], [1], [0], [0], [0, 0, 1, 0], [], []>} : vector<8x8xbf16>, vector<8x8xbf16>, vector<8x8xf32> -> vector<8x8xf32>
    %cst_33 = arith.constant -1.000000e+09 : f32
    "tpu.trace_stop"() : () -> ()
    %42 = vector.broadcast %cst_33 : f32 to vector<8x8xf32>
    %43 = arith.select %13, %42, %41 : vector<8x8xi1>, vector<8x8xf32>
    %cst_34 = arith.constant dense<0xFF800000> : vector<8xf32>
    %44 = vector.multi_reduction <maximumf>, %43, %cst_34 [1] : vector<8x8xf32> to vector<8xf32>
    %45 = vector.shape_cast %44 : vector<8xf32> to vector<8x1xf32>
    %46 = vector.broadcast %45 : vector<8x1xf32> to vector<8x8xf32>
    %47 = arith.subf %43, %46 : vector<8x8xf32>
    %48 = math.exp %47 : vector<8x8xf32>
    %cst_35 = arith.constant dense<0.000000e+00> : vector<8xf32>
    %49 = vector.multi_reduction <add>, %48, %cst_35 [1] : vector<8x8xf32> to vector<8xf32>
    %50 = vector.shape_cast %49 : vector<8xf32> to vector<8x1xf32>
    %51 = tpu.reciprocal %50 : vector<8x1xf32> -> vector<8x1xf32>
    %52 = vector.broadcast %51 : vector<8x1xf32> to vector<8x8xf32>
    %53 = arith.mulf %48, %52 : vector<8x8xf32>
    %54 = arith.truncf %53 : vector<8x8xf32> to vector<8x8xbf16>
    %c0_36 = arith.constant 0 : index
    %c1 = arith.constant 1 : index
    %c0_37 = arith.constant 0 : index
    %c0_38 = arith.constant 0 : index
    %55 = vector.load %arg16[%c0_36, %c1, %c0_37, %c0_38] : memref<1x4x8x8xbf16, #tpu.memory_space<vmem>>, vector<1x1x8x8xbf16>
    %56 = vector.shape_cast %55 : vector<1x1x8x8xbf16> to vector<8x8xbf16>
    %57 = vector.shape_cast %54 : vector<8x8xbf16> to vector<1x1x8x8xbf16>
    tpu.vector_store %arg16[%c0_36, %c1, %c0_37, %c0_38], %57 {strides = array<i32>} : memref<1x4x8x8xbf16, #tpu.memory_space<vmem>>, vector<1x1x8x8xbf16>,
    %58 = arith.truncf %53 : vector<8x8xf32> to vector<8x8xbf16>
    %cst_39 = arith.constant dense<0.000000e+00> : vector<8x8xf32>
    %59 = tpu.matmul %58, %40, %cst_39 {dimension_numbers = #tpu.dot_dimension_numbers<[1], [0], [0], [1], [0, 0, 1, 1], [], []>} : vector<8x8xbf16>, vector<8x8xbf16>, vector<8x8xf32> -> vector<8x8xf32>
    %60 = arith.truncf %59 : vector<8x8xf32> to vector<8x8xbf16>
    %c0_40 = arith.constant 0 : index
    %c8_41 = arith.constant 8 : index
    %61 = vector.load %arg20[%c0_40, %c8_41] : memref<8x32xbf16, #tpu.memory_space<vmem>>, vector<8x8xbf16>
    tpu.vector_store %arg20[%c0_40, %c8_41], %60 {strides = array<i32>} : memref<8x32xbf16, #tpu.memory_space<vmem>>, vector<8x8xbf16>,
    %c0_42 = arith.constant 0 : index
    %c16 = arith.constant 16 : index
    %62 = vector.load %arg19[%c0_42, %c16] : memref<8x32xbf16, #tpu.memory_space<vmem>>, vector<8x8xbf16>
    %c0_43 = arith.constant 0 : index
    %c16_44 = arith.constant 16 : index
    %63 = vector.load %arg17[%c0_43, %c16_44] : memref<8x32xbf16, #tpu.memory_space<vmem>>, vector<8x8xbf16>
    %c0_45 = arith.constant 0 : index
    %c16_46 = arith.constant 16 : index
    %64 = vector.load %arg18[%c0_45, %c16_46] : memref<8x32xbf16, #tpu.memory_space<vmem>>, vector<8x8xbf16>
    "tpu.trace_start"() <{level = 10 : i32, message = "td,sd->ts"}> : () -> ()
    %cst_47 = arith.constant dense<0.000000e+00> : vector<8x8xf32>
    %65 = tpu.matmul %62, %63, %cst_47 {dimension_numbers = #tpu.dot_dimension_numbers<[1], [1], [0], [0], [0, 0, 1, 0], [], []>} : vector<8x8xbf16>, vector<8x8xbf16>, vector<8x8xf32> -> vector<8x8xf32>
    %cst_48 = arith.constant -1.000000e+09 : f32
    "tpu.trace_stop"() : () -> ()
    %66 = vector.broadcast %cst_48 : f32 to vector<8x8xf32>
    %67 = arith.select %13, %66, %65 : vector<8x8xi1>, vector<8x8xf32>
    %cst_49 = arith.constant dense<0xFF800000> : vector<8xf32>
    %68 = vector.multi_reduction <maximumf>, %67, %cst_49 [1] : vector<8x8xf32> to vector<8xf32>
    %69 = vector.shape_cast %68 : vector<8xf32> to vector<8x1xf32>
    %70 = vector.broadcast %69 : vector<8x1xf32> to vector<8x8xf32>
    %71 = arith.subf %67, %70 : vector<8x8xf32>
    %72 = math.exp %71 : vector<8x8xf32>
    %cst_50 = arith.constant dense<0.000000e+00> : vector<8xf32>
    %73 = vector.multi_reduction <add>, %72, %cst_50 [1] : vector<8x8xf32> to vector<8xf32>
    %74 = vector.shape_cast %73 : vector<8xf32> to vector<8x1xf32>
    %75 = tpu.reciprocal %74 : vector<8x1xf32> -> vector<8x1xf32>
    %76 = vector.broadcast %75 : vector<8x1xf32> to vector<8x8xf32>
    %77 = arith.mulf %72, %76 : vector<8x8xf32>
    %78 = arith.truncf %77 : vector<8x8xf32> to vector<8x8xbf16>
    %c0_51 = arith.constant 0 : index
    %c2 = arith.constant 2 : index
    %c0_52 = arith.constant 0 : index
    %c0_53 = arith.constant 0 : index
    %79 = vector.load %arg16[%c0_51, %c2, %c0_52, %c0_53] : memref<1x4x8x8xbf16, #tpu.memory_space<vmem>>, vector<1x1x8x8xbf16>
    %80 = vector.shape_cast %79 : vector<1x1x8x8xbf16> to vector<8x8xbf16>
    %81 = vector.shape_cast %78 : vector<8x8xbf16> to vector<1x1x8x8xbf16>
    tpu.vector_store %arg16[%c0_51, %c2, %c0_52, %c0_53], %81 {strides = array<i32>} : memref<1x4x8x8xbf16, #tpu.memory_space<vmem>>, vector<1x1x8x8xbf16>,
    %82 = arith.truncf %77 : vector<8x8xf32> to vector<8x8xbf16>
    %cst_54 = arith.constant dense<0.000000e+00> : vector<8x8xf32>
    %83 = tpu.matmul %82, %64, %cst_54 {dimension_numbers = #tpu.dot_dimension_numbers<[1], [0], [0], [1], [0, 0, 1, 1], [], []>} : vector<8x8xbf16>, vector<8x8xbf16>, vector<8x8xf32> -> vector<8x8xf32>
    %84 = arith.truncf %83 : vector<8x8xf32> to vector<8x8xbf16>
    %c0_55 = arith.constant 0 : index
    %c16_56 = arith.constant 16 : index
    %85 = vector.load %arg20[%c0_55, %c16_56] : memref<8x32xbf16, #tpu.memory_space<vmem>>, vector<8x8xbf16>
    tpu.vector_store %arg20[%c0_55, %c16_56], %84 {strides = array<i32>} : memref<8x32xbf16, #tpu.memory_space<vmem>>, vector<8x8xbf16>,
    %c0_57 = arith.constant 0 : index
    %c24 = arith.constant 24 : index
    %86 = vector.load %arg19[%c0_57, %c24] : memref<8x32xbf16, #tpu.memory_space<vmem>>, vector<8x8xbf16>
    %c0_58 = arith.constant 0 : index
    %c24_59 = arith.constant 24 : index
    %87 = vector.load %arg17[%c0_58, %c24_59] : memref<8x32xbf16, #tpu.memory_space<vmem>>, vector<8x8xbf16>
    %c0_60 = arith.constant 0 : index
    %c24_61 = arith.constant 24 : index
    %88 = vector.load %arg18[%c0_60, %c24_61] : memref<8x32xbf16, #tpu.memory_space<vmem>>, vector<8x8xbf16>
    "tpu.trace_start"() <{level = 10 : i32, message = "td,sd->ts"}> : () -> ()
    %cst_62 = arith.constant dense<0.000000e+00> : vector<8x8xf32>
    %89 = tpu.matmul %86, %87, %cst_62 {dimension_numbers = #tpu.dot_dimension_numbers<[1], [1], [0], [0], [0, 0, 1, 0], [], []>} : vector<8x8xbf16>, vector<8x8xbf16>, vector<8x8xf32> -> vector<8x8xf32>
    %cst_63 = arith.constant -1.000000e+09 : f32
    "tpu.trace_stop"() : () -> ()
    %90 = vector.broadcast %cst_63 : f32 to vector<8x8xf32>
    %91 = arith.select %13, %90, %89 : vector<8x8xi1>, vector<8x8xf32>
    %cst_64 = arith.constant dense<0xFF800000> : vector<8xf32>
    %92 = vector.multi_reduction <maximumf>, %91, %cst_64 [1] : vector<8x8xf32> to vector<8xf32>
    %93 = vector.shape_cast %92 : vector<8xf32> to vector<8x1xf32>
    %94 = vector.broadcast %93 : vector<8x1xf32> to vector<8x8xf32>
    %95 = arith.subf %91, %94 : vector<8x8xf32>
    %96 = math.exp %95 : vector<8x8xf32>
    %cst_65 = arith.constant dense<0.000000e+00> : vector<8xf32>
    %97 = vector.multi_reduction <add>, %96, %cst_65 [1] : vector<8x8xf32> to vector<8xf32>
    %98 = vector.shape_cast %97 : vector<8xf32> to vector<8x1xf32>
    %99 = tpu.reciprocal %98 : vector<8x1xf32> -> vector<8x1xf32>
    %100 = vector.broadcast %99 : vector<8x1xf32> to vector<8x8xf32>
    %101 = arith.mulf %96, %100 : vector<8x8xf32>
    %102 = arith.truncf %101 : vector<8x8xf32> to vector<8x8xbf16>
    %c0_66 = arith.constant 0 : index
    %c3 = arith.constant 3 : index
    %c0_67 = arith.constant 0 : index
    %c0_68 = arith.constant 0 : index
    %103 = vector.load %arg16[%c0_66, %c3, %c0_67, %c0_68] : memref<1x4x8x8xbf16, #tpu.memory_space<vmem>>, vector<1x1x8x8xbf16>
    %104 = vector.shape_cast %103 : vector<1x1x8x8xbf16> to vector<8x8xbf16>
    %105 = vector.shape_cast %102 : vector<8x8xbf16> to vector<1x1x8x8xbf16>
    tpu.vector_store %arg16[%c0_66, %c3, %c0_67, %c0_68], %105 {strides = array<i32>} : memref<1x4x8x8xbf16, #tpu.memory_space<vmem>>, vector<1x1x8x8xbf16>,
    %106 = arith.truncf %101 : vector<8x8xf32> to vector<8x8xbf16>
    %cst_69 = arith.constant dense<0.000000e+00> : vector<8x8xf32>
    %107 = tpu.matmul %106, %88, %cst_69 {dimension_numbers = #tpu.dot_dimension_numbers<[1], [0], [0], [1], [0, 0, 1, 1], [], []>} : vector<8x8xbf16>, vector<8x8xbf16>, vector<8x8xf32> -> vector<8x8xf32>
    %108 = arith.truncf %107 : vector<8x8xf32> to vector<8x8xbf16>
    %c0_70 = arith.constant 0 : index
    %c24_71 = arith.constant 24 : index
    %109 = vector.load %arg20[%c0_70, %c24_71] : memref<8x32xbf16, #tpu.memory_space<vmem>>, vector<8x8xbf16>
    tpu.vector_store %arg20[%c0_70, %c24_71], %108 {strides = array<i32>} : memref<8x32xbf16, #tpu.memory_space<vmem>>, vector<8x8xbf16>,
    %c0_72 = arith.constant 0 : index
    %c0_73 = arith.constant 0 : index
    %110 = vector.load %arg20[%c0_72, %c0_73] : memref<8x32xbf16, #tpu.memory_space<vmem>>, vector<8x32xbf16>
    %c0_74 = arith.constant 0 : index
    %c0_75 = arith.constant 0 : index
    %111 = vector.load %arg8[%c0_74, %c0_75] : memref<32x32xbf16, #tpu.memory_space<vmem>>, vector<32x32xbf16>
    %cst_76 = arith.constant dense<0.000000e+00> : vector<8x32xf32>
    %112 = tpu.matmul %110, %111, %cst_76 {dimension_numbers = #tpu.dot_dimension_numbers<[1], [0], [0], [1], [0, 0, 1, 1], [], []>} : vector<8x32xbf16>, vector<32x32xbf16>, vector<8x32xf32> -> vector<8x32xf32>
    %c0_77 = arith.constant 0 : index
    %c0_78 = arith.constant 0 : index
    %c0_79 = arith.constant 0 : index
    %113 = vector.load %arg2[%c0_77, %c0_78, %c0_79] : memref<1x8x32xf32, #tpu.memory_space<vmem>>, vector<1x8x32xf32>
    %114 = vector.shape_cast %113 : vector<1x8x32xf32> to vector<8x32xf32>
    %115 = arith.addf %112, %114 : vector<8x32xf32>
    %c0_80 = arith.constant 0 : index
    %c0_81 = arith.constant 0 : index
    %116 = vector.load %arg9[%c0_80, %c0_81] : memref<1x32xf32, #tpu.memory_space<vmem>>, vector<1x32xf32>
    %c0_82 = arith.constant 0 : index
    %c0_83 = arith.constant 0 : index
    %117 = vector.load %arg10[%c0_82, %c0_83] : memref<1x32xf32, #tpu.memory_space<vmem>>, vector<1x32xf32>
    %cst_84 = arith.constant dense<0.000000e+00> : vector<8xf32>
    %118 = vector.multi_reduction <add>, %115, %cst_84 [1] : vector<8x32xf32> to vector<8xf32>
    %119 = vector.shape_cast %118 : vector<8xf32> to vector<8x1xf32>
    %cst_85 = arith.constant 3.200000e+01 : f32
    %120 = vector.broadcast %cst_85 : f32 to vector<8x1xf32>
    %121 = arith.divf %119, %120 : vector<8x1xf32>
    %122 = vector.broadcast %121 : vector<8x1xf32> to vector<8x32xf32>
    %123 = arith.subf %115, %122 : vector<8x32xf32>
    %124 = arith.mulf %123, %123 : vector<8x32xf32>
    %cst_86 = arith.constant dense<0.000000e+00> : vector<8xf32>
    %125 = vector.multi_reduction <add>, %124, %cst_86 [1] : vector<8x32xf32> to vector<8xf32>
    %126 = vector.shape_cast %125 : vector<8xf32> to vector<8x1xf32>
    %cst_87 = arith.constant 3.200000e+01 : f32
    %127 = vector.broadcast %cst_87 : f32 to vector<8x1xf32>
    %128 = arith.divf %126, %127 : vector<8x1xf32>
    %129 = vector.broadcast %121 : vector<8x1xf32> to vector<8x32xf32>
    %130 = arith.subf %115, %129 : vector<8x32xf32>
    %cst_88 = arith.constant 9.99999974E-6 : f32
    %131 = vector.broadcast %cst_88 : f32 to vector<8x1xf32>
    %132 = arith.addf %128, %131 : vector<8x1xf32>
    %133 = math.rsqrt %132 : vector<8x1xf32>
    %134 = vector.broadcast %133 : vector<8x1xf32> to vector<8x32xf32>
    %135 = arith.mulf %130, %134 : vector<8x32xf32>
    %136 = vector.broadcast %116 : vector<1x32xf32> to vector<8x32xf32>
    %137 = arith.mulf %135, %136 : vector<8x32xf32>
    %138 = vector.broadcast %117 : vector<1x32xf32> to vector<8x32xf32>
    %139 = arith.addf %137, %138 : vector<8x32xf32>
    %140 = arith.truncf %139 : vector<8x32xf32> to vector<8x32xbf16>
    %c0_89 = arith.constant 0 : index
    %c0_90 = arith.constant 0 : index
    %141 = vector.load %arg11[%c0_89, %c0_90] : memref<32x64xbf16, #tpu.memory_space<vmem>>, vector<32x64xbf16>
    %cst_91 = arith.constant dense<0.000000e+00> : vector<8x64xf32>
    %142 = tpu.matmul %140, %141, %cst_91 {dimension_numbers = #tpu.dot_dimension_numbers<[1], [0], [0], [1], [0, 0, 1, 1], [], []>} : vector<8x32xbf16>, vector<32x64xbf16>, vector<8x64xf32> -> vector<8x64xf32>
    %cst_92 = arith.constant 0.000000e+00 : f32
    %143 = vector.broadcast %cst_92 : f32 to vector<8x64xf32>
    %144 = arith.maximumf %142, %143 : vector<8x64xf32>
    %145 = arith.truncf %144 : vector<8x64xf32> to vector<8x64xbf16>
    %c0_93 = arith.constant 0 : index
    %c0_94 = arith.constant 0 : index
    %146 = vector.load %arg12[%c0_93, %c0_94] : memref<64x32xbf16, #tpu.memory_space<vmem>>, vector<64x32xbf16>
    %cst_95 = arith.constant dense<0.000000e+00> : vector<8x32xf32>
    %147 = tpu.matmul %145, %146, %cst_95 {dimension_numbers = #tpu.dot_dimension_numbers<[1], [0], [0], [1], [0, 0, 1, 1], [], []>} : vector<8x64xbf16>, vector<64x32xbf16>, vector<8x32xf32> -> vector<8x32xf32>
    %148 = arith.addf %147, %139 : vector<8x32xf32>
    %c0_96 = arith.constant 0 : index
    %c0_97 = arith.constant 0 : index
    %149 = vector.load %arg13[%c0_96, %c0_97] : memref<1x32xf32, #tpu.memory_space<vmem>>, vector<1x32xf32>
    %c0_98 = arith.constant 0 : index
    %c0_99 = arith.constant 0 : index
    %150 = vector.load %arg14[%c0_98, %c0_99] : memref<1x32xf32, #tpu.memory_space<vmem>>, vector<1x32xf32>
    %cst_100 = arith.constant dense<0.000000e+00> : vector<8xf32>
    %151 = vector.multi_reduction <add>, %148, %cst_100 [1] : vector<8x32xf32> to vector<8xf32>
    %152 = vector.shape_cast %151 : vector<8xf32> to vector<8x1xf32>
    %cst_101 = arith.constant 3.200000e+01 : f32
    %153 = vector.broadcast %cst_101 : f32 to vector<8x1xf32>
    %154 = arith.divf %152, %153 : vector<8x1xf32>
    %155 = vector.broadcast %154 : vector<8x1xf32> to vector<8x32xf32>
    %156 = arith.subf %148, %155 : vector<8x32xf32>
    %157 = arith.mulf %156, %156 : vector<8x32xf32>
    %cst_102 = arith.constant dense<0.000000e+00> : vector<8xf32>
    %158 = vector.multi_reduction <add>, %157, %cst_102 [1] : vector<8x32xf32> to vector<8xf32>
    %159 = vector.shape_cast %158 : vector<8xf32> to vector<8x1xf32>
    %cst_103 = arith.constant 3.200000e+01 : f32
    %160 = vector.broadcast %cst_103 : f32 to vector<8x1xf32>
    %161 = arith.divf %159, %160 : vector<8x1xf32>
    %162 = vector.broadcast %154 : vector<8x1xf32> to vector<8x32xf32>
    %163 = arith.subf %148, %162 : vector<8x32xf32>
    %cst_104 = arith.constant 9.99999974E-6 : f32
    %164 = vector.broadcast %cst_104 : f32 to vector<8x1xf32>
    %165 = arith.addf %161, %164 : vector<8x1xf32>
    %166 = math.rsqrt %165 : vector<8x1xf32>
    %167 = vector.broadcast %166 : vector<8x1xf32> to vector<8x32xf32>
    %168 = arith.mulf %163, %167 : vector<8x32xf32>
    %169 = vector.broadcast %149 : vector<1x32xf32> to vector<8x32xf32>
    %170 = arith.mulf %168, %169 : vector<8x32xf32>
    %171 = vector.broadcast %150 : vector<1x32xf32> to vector<8x32xf32>
    %172 = arith.addf %170, %171 : vector<8x32xf32>
    %c0_105 = arith.constant 0 : index
    %c0_106 = arith.constant 0 : index
    %c0_107 = arith.constant 0 : index
    %173 = vector.load %arg15[%c0_105, %c0_106, %c0_107] : memref<1x8x32xf32, #tpu.memory_space<vmem>>, vector<1x8x32xf32>
    %174 = vector.shape_cast %173 : vector<1x8x32xf32> to vector<8x32xf32>
    %175 = vector.shape_cast %172 : vector<8x32xf32> to vector<1x8x32xf32>
    tpu.vector_store %arg15[%c0_105, %c0_106, %c0_107], %175 {strides = array<i32>} : memref<1x8x32xf32, #tpu.memory_space<vmem>>, vector<1x8x32xf32>,
    return
  }
  func.func @transform_0(%arg0: i32, %arg1: i32) -> (i32, i32, i32) {
    %c0_i32 = arith.constant 0 : i32
    %c0_i32_0 = arith.constant 0 : i32
    return %arg0, %arg1, %c0_i32 : i32, i32, i32
  }
  func.func @transform_1(%arg0: i32, %arg1: i32) -> (i32, i32, i32) {
    %c0_i32 = arith.constant 0 : i32
    %c0_i32_0 = arith.constant 0 : i32
    %c0_i32_1 = arith.constant 0 : i32
    return %arg0, %c0_i32, %c0_i32_0 : i32, i32, i32
  }
  func.func @transform_2(%arg0: i32, %arg1: i32) -> (i32, i32, i32) {
    %c0_i32 = arith.constant 0 : i32
    %c0_i32_0 = arith.constant 0 : i32
    return %arg0, %arg1, %c0_i32 : i32, i32, i32
  }
  func.func @transform_3(%arg0: i32, %arg1: i32) -> (i32, i32) {
    %c0_i32 = arith.constant 0 : i32
    %c0_i32_0 = arith.constant 0 : i32
    %c0_i32_1 = arith.constant 0 : i32
    return %c0_i32, %c0_i32_0 : i32, i32
  }
  func.func @transform_4(%arg0: i32, %arg1: i32) -> (i32, i32) {
    %c0_i32 = arith.constant 0 : i32
    %c0_i32_0 = arith.constant 0 : i32
    %c0_i32_1 = arith.constant 0 : i32
    return %c0_i32, %c0_i32_0 : i32, i32
  }
  func.func @transform_5(%arg0: i32, %arg1: i32) -> (i32, i32) {
    %c0_i32 = arith.constant 0 : i32
    %c0_i32_0 = arith.constant 0 : i32
    %c0_i32_1 = arith.constant 0 : i32
    return %c0_i32, %c0_i32_0 : i32, i32
  }
  func.func @transform_6(%arg0: i32, %arg1: i32) -> (i32, i32) {
    %c0_i32 = arith.constant 0 : i32
    %c0_i32_0 = arith.constant 0 : i32
    %c0_i32_1 = arith.constant 0 : i32
    return %c0_i32, %c0_i32_0 : i32, i32
  }
  func.func @transform_7(%arg0: i32, %arg1: i32) -> (i32, i32) {
    %c0_i32 = arith.constant 0 : i32
    %c0_i32_0 = arith.constant 0 : i32
    %c0_i32_1 = arith.constant 0 : i32
    return %c0_i32, %c0_i32_0 : i32, i32
  }
  func.func @transform_8(%arg0: i32, %arg1: i32) -> (i32, i32) {
    %c0_i32 = arith.constant 0 : i32
    %c0_i32_0 = arith.constant 0 : i32
    %c0_i32_1 = arith.constant 0 : i32
    return %c0_i32, %c0_i32_0 : i32, i32
  }
  func.func @transform_9(%arg0: i32, %arg1: i32) -> (i32, i32) {
    %c0_i32 = arith.constant 0 : i32
    %c0_i32_0 = arith.constant 0 : i32
    %c0_i32_1 = arith.constant 0 : i32
    return %c0_i32, %c0_i32_0 : i32, i32
  }
  func.func @transform_10(%arg0: i32, %arg1: i32) -> (i32, i32) {
    %c0_i32 = arith.constant 0 : i32
    %c0_i32_0 = arith.constant 0 : i32
    %c0_i32_1 = arith.constant 0 : i32
    return %c0_i32, %c0_i32_0 : i32, i32
  }
  func.func @transform_11(%arg0: i32, %arg1: i32) -> (i32, i32) {
    %c0_i32 = arith.constant 0 : i32
    %c0_i32_0 = arith.constant 0 : i32
    %c0_i32_1 = arith.constant 0 : i32
    return %c0_i32, %c0_i32_0 : i32, i32
  }
  func.func @transform_12(%arg0: i32, %arg1: i32) -> (i32, i32) {
    %c0_i32 = arith.constant 0 : i32
    %c0_i32_0 = arith.constant 0 : i32
    %c0_i32_1 = arith.constant 0 : i32
    return %c0_i32, %c0_i32_0 : i32, i32
  }
  func.func @transform_13(%arg0: i32, %arg1: i32) -> (i32, i32, i32) {
    %c0_i32 = arith.constant 0 : i32
    %c0_i32_0 = arith.constant 0 : i32
    return %arg0, %arg1, %c0_i32 : i32, i32, i32
  }
  func.func @transform_14(%arg0: i32, %arg1: i32) -> (i32, i32, i32, i32) {
    %c0_i32 = arith.constant 0 : i32
    %c0_i32_0 = arith.constant 0 : i32
    %c0_i32_1 = arith.constant 0 : i32
    return %arg0, %c0_i32, %arg1, %c0_i32_0 : i32, i32, i32, i32
  }
}

</mosaic_0001>

<bundles_post_ra>
// kernel: tpu_custom_call.1
= control target key start
LH: loop header
LB: loop body
LE: loop exit
PB: predicated region body
PF: predicated region fallthrough
CT: control target
= control target key end

     0   :  { %s2986_s0 = inlined_call_operand.vmem [shape: f32[2,8,32], index: 0, kind: input, shape index: {}]   ;;  %s2987_s1 = inlined_call_operand.hbm [shape: bf16[2,8,32], index: 1, kind: input, shape index: {}]   ;;  %s2988_s2 = inlined_call_operand.hbm [shape: s8[2,8,8], index: 2, kind: input, shape index: {}]   ;;  %s2989_s3 = inlined_call_operand.vmem [shape: bf16[32,32], index: 3, kind: input, shape index: {}]   ;;  %s2990_s4 = inlined_call_operand.vmem [shape: bf16[32,32], index: 4, kind: input, shape index: {}]   ;;  %s2991_s5 = inlined_call_operand.hbm [shape: bf16[32,32], index: 5, kind: input, shape index: {}]   ;;  %s2992_s6 = inlined_call_operand.hbm [shape: bf16[32,32], index: 6, kind: input, shape index: {}]   ;;  %s2993_s7 = inlined_call_operand.vmem [shape: f32[1,32], index: 7, kind: input, shape index: {}]   ;;  %s2994_s8 = inlined_call_operand.vmem [shape: f32[1,32], index: 8, kind: input, shape index: {}]   ;;  %s2995_s9 = inlined_call_operand.vmem [shape: bf16[32,64], index: 9, kind: input, shape index: {}]   ;;  %s2996_s10 = inlined_call_operand.vmem [shape: bf16[64,32], index: 10, kind: input, shape index: {}]   ;;  %s2997_s11 = inlined_call_operand.vmem [shape: f32[1,32], index: 11, kind: input, shape index: {}]   ;;  %s2998_s12 = inlined_call_operand.vmem [shape: f32[1,32], index: 12, kind: input, shape index: {}]   ;;  %s2999_s13 = inlined_call_operand.hbm [shape: f32[2,8,32], index: 13, kind: output, shape index: {0}]   ;;  %s3000_s14 = inlined_call_operand.hbm [shape: bf16[2,4,8,8], index: 14, kind: output, shape index: {1}]  }
   0x1   :  { %3010 = sst [smem:[#allocation26_spill]] %s2987_s1 }
   0x2   :  { %3011 = sst [smem:[#allocation27_spill]] %s2991_s5 }
   0x3   :  { %3012 = sst [smem:[#allocation28_spill]] %s2992_s6 }
   0x4   :  { %3013 = sst [smem:[#allocation29_spill]] %s2993_s7 }
   0x5   :  { %3014 = sst [smem:[#allocation30_spill]] %s2994_s8 }
   0x6   :  { %3015 = sst [smem:[#allocation31_spill]] %s2997_s11 }
   0x7   :  { %3016 = sst [smem:[#allocation32_spill]] %s2998_s12 }
   0x8   :  { %3017 = sst [smem:[#allocation33_spill]] %s2999_s13 }
   0x9   :  { %3018 = sst [smem:[#allocation34_spill]] %s3000_s14 }
   0xa   :  { %20 = vsyncpa [#allocation7], 0 }
   0xb   :  { %22 = vsyncpa [#allocation7 + $0x1], 0 }
   0xc   :  { %23 = vsyncpa [#allocation10], 0 }
   0xd   :  { %25 = vsyncpa [#allocation10 + $0x1], 0 }
   0xe   :  { %26 = vsyncpa [#allocation13], 0 }
   0xf   :  { %27 = vsyncpa [#allocation8], 0 }
  0x10   :  { %29 = vsyncpa [#allocation8 + $0x1], 0 }
  0x11   :  { %30 = vsyncpa [#allocation16], 0 }
  0x12   :  { %32 = vsyncpa [#allocation16 + $0x1], 0  ;;  %s2488_s29 = smov 0   ;;  %s2490_s30 = smov 0  }
  0x13   :  { %s2492_s15 = smov 0   ;;  %s2494_s16 = smov 0  }
  0x14   :  { %s2496_s17 = smov 0   ;;  %s2498_s18 = smov 0  }
  0x15 LB: > { %3019 = sst [smem:[#allocation23_spill]] %s2372_s29  ;;  %s2519_s19 = sadd.s32 4294967295, %s2392_s18   ;;  %s2392_s18 = sphi %s2498_s18, %s38_s18   ;;  %s2388_s17 = sphi %s2496_s17, %s3058_s17   ;;  %s2384_s16 = sphi %s2494_s16, %s3057_s16   ;;  %s2380_s15 = sphi %s2492_s15, %s3056_s15   ;;  %s2376_s30 = sphi %s2490_s30, %s3055_s30   ;;  %s2372_s29 = sphi %s2488_s29, %s3054_s29  }
  0x16   : > { %s1790_s20 = sadd.s32 4294967294, %s2392_s18   ;;  %p98_p0 = scmp.ne.s32.totalorder %s2376_s30, %s2372_s29 }
  0x17   : > { %p3004_p1 = scmp.eq.s32.totalorder %s2519_s19, 0  ;;  %p368_p3 = scmp.eq.s32.totalorder %s1790_s20, 1 }
  0x18   : > { %p1791_p5 = scmp.ge.s32.totalorder %s2392_s18, 1  ;;  %p403_p7 = scmp.lt.s32.totalorder %s2392_s18, 3 }
  0x19   : > { %p2528_p4 = por %p3004_p1, %p98_p0  ;;  %p2533_p6 = por %p368_p3, %p98_p0 }
  0x1a   : > { %p2538_p8 = pnand %p1791_p5, %p403_p7  ;;  %s2394_s24 = smov [#allocation11]  }
  0x1b   : > { %s3020_s21 = scalar_select %p2528_p4, 1, 0 }
  0x1c   : > { %s3021_s22 = scalar_select %p2533_p6, 1, 0 }
  0x1d   : > { %s3023_s23 = scalar_select %p2538_p8, 1, 0 }
  0x1e   : > { %3022 = sst [smem:[#allocation24_spill]] %s3021_s22  ;;  %s421_s25 = sshll.u32 %s2394_s24, 4  ;;  %s2542_s25 = int_to_ptr.vmem [resolvable:$true] %s421_s25 }
  0x1f   : > { %p2017_p9 = pneg %p2538_p8  ;;  %s2395_s27 = smov [#allocation12]  }
  0x20   : > { %s434_s28 = sshll.u32 %s2395_s27, 4  ;;  %s3025_s5 = sld [smem:[#allocation27_spill]]  ;;  %s2553_s28 = int_to_ptr.vmem [resolvable:$true] %s434_s28 }
  0x21   : > { %p2549_p11 = pnand %p2017_p9, %p3004_p1 }
  0x23   : > { %p2152_p13 = pneg %p2549_p11 }
  0x26   : > { %s2150_s24 = scalar_lea.hbm %s3025_s5, 256 }
  0x27   : > { %p2151_p12 = scmp.ne.s32.totalorder %s3025_s5, %s2150_s24  ;;  %p2157_p5 = scmp.lt.u32.totalorder %s2150_s24, %s3025_s5 }
  0x29   : > { %p2153_p0 = pnand %p2152_p13, %p2151_p12 }
  0x2b   : > { %p2154_p3 = pneg %p2153_p0 }
  0x2d   : > { %p2159_p7 = pnand %p2157_p5, %p2154_p3 }
  0x2f   : > { %2162 = shalt.err (!%p2159_p7)
}
  0x30   : > { %s2163_s22 = scalar_lea.vmem %s2542_s25, 256  ;;  %p2171_p2 = scmp.lt.s32.totalorder %s2542_s25, %s2542_s25 }
  0x31   : > { %p2164_p9 = scmp.ne.s32.totalorder %s2542_s25, %s2163_s22  ;;  %p2172_p12 = scmp.lt.s32.totalorder %s2163_s22, %s2163_s22 }
  0x33   : > { %p2166_p10 = pnand %p2164_p9, %p2152_p13  ;;  %p2173_p0 = por %p2172_p12, %p2171_p2 }
  0x35   : > { %p2167_p1 = pneg %p2166_p10 }
  0x37   : > { %p2174_p6 = pnand %p2173_p0, %p2167_p1 }
  0x39   : > { %2177 = shalt.err (!%p2174_p6)
}
  0x3a   : > { %s2396_s11 = smov 64   ;;  %s2397_s12 = smov 4  }
  0x3b   : > { %2020 = dma.hbm_to_vmem [thread:$0]  (!%p2549_p11), %s3025_s5, 256, %s2542_s25, [#allocation10], %s2396_s11, %s2396_s11, %s2397_s12  }
  0x3c   : > { %s3026_s6 = sld [smem:[#allocation28_spill]] }
  0x42   : > { %s2178_s24 = scalar_lea.hbm %s3026_s6, 256 }
  0x43   : > { %p2179_p2 = scmp.ne.s32.totalorder %s3026_s6, %s2178_s24  ;;  %p2185_p10 = scmp.lt.u32.totalorder %s2178_s24, %s3026_s6 }
  0x45   : > { %p2181_p1 = pnand %p2179_p2, %p2152_p13 }
  0x47   : > { %p2182_p6 = pneg %p2181_p1 }
  0x49   : > { %p2187_p3 = pnand %p2185_p10, %p2182_p6 }
  0x4b   : > { %2190 = shalt.err (!%p2187_p3)
}
  0x4c   : > { %s2191_s25 = scalar_lea.vmem %s2553_s28, 256  ;;  %p2199_p12 = scmp.lt.s32.totalorder %s2553_s28, %s2553_s28 }
  0x4d   : > { %p2192_p5 = scmp.ne.s32.totalorder %s2553_s28, %s2191_s25  ;;  %p2200_p0 = scmp.lt.s32.totalorder %s2191_s25, %s2191_s25 }
  0x4f   : > { %p2194_p7 = pnand %p2192_p5, %p2152_p13  ;;  %p2201_p2 = por %p2200_p0, %p2199_p12 }
  0x51   : > { %p2195_p9 = pneg %p2194_p7 }
  0x53   : > { %p2202_p1 = pnand %p2201_p2, %p2195_p9 }
  0x55   : > { %2205 = shalt.err (!%p2202_p1)
}
  0x56   : > { %2023 = dma.hbm_to_vmem [thread:$0]  (!%p2549_p11), %s3026_s6, 256, %s2553_s28, [#allocation13], %s2396_s11, %s2396_s11, %s2397_s12  }
  0x57   : > { %s50_s14 = sadd.s32 1, %s2388_s17  ;;  %s85_s13 = sadd.s32 1, %s2380_s15 }
  0x58   : > { %p52_p13 = scmp.ge.s32.totalorder %s50_s14, 2  ;;  %p92_p6 = scmp.ne.s32.totalorder %s2380_s15, %s2376_s30 }
  0x59   : > { %p93_p10 = scmp.eq.s32.totalorder %s2392_s18, 0  ;;  %p2040_p3 = scmp.lt.s32.totalorder %s2392_s18, 2 }
  0x5a   : > { %s3060_s14 = smov (%p52_p13, %s50_s14), 0  ;;  %p3028_p7 = scmp.eq.s32.totalorder %s2519_s19, 1 }
  0x5b   : > { %3027 = sst [smem:[#allocation25_spill]] %s3060_s14  ;;  %p94_p5 = por %p93_p10, %p92_p6 }
  0x5c   : > { %p2617_p9 = por %p3028_p7, %p92_p6  ;;  %s82_s29 = ssub.s32 %s2388_s17, %s3060_s14 }
  0x5d   : > { %s2624_s27 = sand.u32 1, %s2380_s15   ;;  %p83_p11 = scmp.eq.s32.totalorder %s82_s29, 0 }
  0x5e   : > { %s3029_s26 = scalar_select %p2617_p9, 1, 0 }
  0x5f   : > { %s1795_s28 = sshll.u32 %s2624_s27, 2  ;;  %s1796_s11 = sshll.u32 %s2388_s17, 6 }
  0x60   : > { %s2629_s12 = scalar_select %p83_p11, %s2380_s15, %s85_s13  }
  0x61   : > { %s3030_s1 = sld [smem:[#allocation26_spill]]  ;;  %s480_s25 = scalar_lea.vmem [#allocation6], %s1795_s28 }
  0x62   : > { %s487_s7 = sshll.u32 %s480_s25, 4  ;;  %p2638_p12 = pnand %p2040_p3, %p94_p5  ;;  %s2642_s7 = int_to_ptr.vmem [resolvable:$true] %s487_s7 }
  0x63   : > { %s477_s29 = scalar_lea.sflag [#allocation7], %s2624_s27 }
  0x64   : > { %p2208_p2 = pneg %p2638_p12 }
  0x67   : > { %s2634_s22 = scalar_lea.hbm %s3030_s1, %s1796_s11  ;;  %s2211_s24 = scalar_lea.hbm %s3030_s1, 128 }
  0x68   : > { %s2206_s20 = scalar_lea.hbm %s2634_s22, 64  ;;  %p2212_p6 = scmp.lt.u32.totalorder %s2634_s22, %s3030_s1 }
  0x69   : > { %p2207_p0 = scmp.ne.s32.totalorder %s2634_s22, %s2206_s20  ;;  %p2213_p10 = scmp.lt.u32.totalorder %s2211_s24, %s2206_s20 }
  0x6a   : > { %p2215_p5 = scmp.lt.u32.totalorder %s2206_s20, %s2634_s22 }
  0x6b   : > { %p2209_p1 = pnand %p2208_p2, %p2207_p0  ;;  %p2214_p3 = por %p2213_p10, %p2212_p6 }
  0x6d   : > { %p2210_p13 = pneg %p2209_p1  ;;  %p2216_p7 = por %p2215_p5, %p2214_p3 }
  0x6f   : > { %p2217_p11 = pnand %p2216_p7, %p2210_p13 }
  0x71   : > { %2220 = shalt.err (!%p2217_p11)
}
  0x72   : > { %s2221_s13 = scalar_lea.vmem %s2642_s7, 64  ;;  %s2398_s28 = smov [#allocation6]  }
  0x73   : > { %p2222_p0 = scmp.ne.s32.totalorder %s2642_s7, %s2221_s13  ;;  %s2226_s11 = sshll.u32 %s2398_s28, 4  ;;  %s2227_s11 = int_to_ptr.vmem [resolvable:$false] %s2226_s11 }
  0x74   : > { %s2228_s5 = scalar_lea.vmem %s2227_s11, 128  ;;  %p2229_p4 = scmp.lt.s32.totalorder %s2642_s7, %s2227_s11 }
  0x75   : > { %p2224_p1 = pnand %p2222_p0, %p2208_p2  ;;  %p2230_p6 = scmp.lt.s32.totalorder %s2228_s5, %s2221_s13 }
  0x77   : > { %p2225_p9 = pneg %p2224_p1  ;;  %p2231_p10 = por %p2230_p6, %p2229_p4 }
  0x79   : > { %p2232_p3 = pnand %p2231_p10, %p2225_p9 }
  0x7b   : > { %2235 = shalt.err (!%p2232_p3)
}
  0x7c   : > { %2027 = dma.hbm_to_vmem [thread:$0]  (!%p2638_p12), %s2634_s22, 64, %s2642_s7, %s477_s29  }
  0x7d   : > { %s1797_s20 = sshll.u32 %s2624_s27, 1  ;;  %s1798_s24 = sshll.u32 %s2388_s17, 5 }
  0x7e   : > { %s2676_s1 = scalar_lea.hbm %s2988_s2, %s1798_s24  ;;  %s498_s13 = scalar_lea.vmem [#allocation9], %s1797_s20 }
  0x7f   : > { %s506_s11 = sshll.u32 %s498_s13, 4  ;;  %s3032_s5 = sand.u32 1, %s2392_s18   ;;  %s507_s11 = int_to_ptr.vmem [resolvable:$true] %s506_s11 }
  0x80   : > { %s495_s6 = scalar_lea.sflag [#allocation10], %s3032_s5  ;;  %s2236_s14 = scalar_lea.hbm %s2676_s1, 32 }
  0x81   : > { %p2237_p4 = scmp.ne.s32.totalorder %s2676_s1, %s2236_s14  ;;  %s2241_s7 = scalar_lea.hbm %s2988_s2, 64 }
  0x82   : > { %p2242_p5 = scmp.lt.u32.totalorder %s2676_s1, %s2988_s2  ;;  %p2243_p7 = scmp.lt.u32.totalorder %s2241_s7, %s2236_s14 }
  0x83   : > { %p2239_p9 = pnand %p2237_p4, %p2208_p2  ;;  %p2245_p0 = scmp.lt.u32.totalorder %s2236_s14, %s2676_s1 }
  0x84   : > { %p2244_p11 = por %p2243_p7, %p2242_p5 }
  0x85   : > { %p2240_p13 = pneg %p2239_p9 }
  0x86   : > { %p2246_p1 = por %p2245_p0, %p2244_p11 }
  0x88   : > { %p2247_p6 = pnand %p2246_p1, %p2240_p13 }
  0x8a   : > { %2250 = shalt.err (!%p2247_p6)
}
  0x8b   : > { %s2251_s20 = scalar_lea.vmem %s507_s11, 32  ;;  %s2399_s25 = smov [#allocation9]  }
  0x8c   : > { %p2252_p10 = scmp.ne.s32.totalorder %s507_s11, %s2251_s20  ;;  %s2256_s28 = sshll.u32 %s2399_s25, 4  ;;  %s2257_s28 = int_to_ptr.vmem [resolvable:$false] %s2256_s28 }
  0x8d   : > { %s2258_s13 = scalar_lea.vmem %s2257_s28, 64  ;;  %p2259_p9 = scmp.lt.s32.totalorder %s507_s11, %s2257_s28 }
  0x8e   : > { %p2254_p3 = pnand %p2252_p10, %p2208_p2  ;;  %p2260_p8 = scmp.lt.s32.totalorder %s2258_s13, %s2251_s20 }
  0x90   : > { %p2255_p4 = pneg %p2254_p3  ;;  %p2261_p5 = por %p2260_p8, %p2259_p9 }
  0x92   : > { %p2262_p7 = pnand %p2261_p5, %p2255_p4 }
  0x94   : > { %2265 = shalt.err (!%p2262_p7)
}
  0x95   : > { %2030 = dma.hbm_to_vmem [thread:$0]  (!%p2638_p12), %s2676_s1, 32, %s507_s11, %s495_s6  }
  0x96   : > { %p3033_p13 = scmp.ne.s32.totalorder %s3023_s23, 0 }
  0x97   : > { %s2702_s14 = sand.u32 (!%p3033_p13), 1, %s2376_s30   ;;  %p3034_p2 = scmp.ne.s32.totalorder (!%p3033_p13), %s3020_s21, 0 }
  0x98   : > { %515 = sbr.rel (%p3033_p13) target bundleno = 2695 (0xa87), region = 72  ;;  %s1800_s5 = sshll.u32 (!%p3033_p13), %s2702_s14, 2 }
  0x99   : > { %s518_s27 = scalar_lea.sflag (!%p3033_p13), [#allocation7], %s2702_s14  ;;  %s521_s22 = scalar_lea.vmem (!%p3033_p13), [#allocation6], %s1800_s5 }
  0x9f   : > { %2347 = dma.done.wait (%p3034_p2), %s518_s27, 64  }
  0xa0   : > { %2349 = vsyncadd (%p3034_p2), %s518_s27, 4294967232  ;;  %s526_s1 = sand.u32 1, %s2519_s19   ;;  %s1801_s6 = sshll.u32 %s2702_s14, 1 }
  0xa1   : > { %s527_s23 = scalar_lea.sflag [#allocation10], %s526_s1  ;;  %s2712_s8 = scalar_lea.vmem [#allocation9], %s1801_s6 }
  0xa2   : > { %2351 = dma.done.wait (%p3034_p2), %s527_s23, 32  }
  0xa3   : > { %2353 = vsyncadd (%p3034_p2), %s527_s23, 4294967264  ;;  %p3035_p8 = scmp.eq.s32.totalorder %s2519_s19, 0 }
  0xa5   : > { %2355 = dma.done.wait (%p3035_p8), [#allocation10], 256   ;;  %p3036_p12 = pmov %p3035_p8 }
  0xa6   : > { %p3037_p11 = pmov %p3035_p8 }
  0xa7   : > { %2357 = vsyncadd (%p3036_p12), [#allocation10], 4294967040 }
  0xa8   : > { %2359 = dma.done.wait (%p3037_p11), [#allocation13], 256   ;;  %p3038_p0 = pmov %p3035_p8 }
  0xa9   : > { %v2400_v0 = vmov 0.0   ;;  %vm2401_vm0 = vmmov 0   ;;  %p600_p1 = scmp.lt.s32.totalorder %s2384_s16, 1  ;;  %v2107_v1 = vld [vmem:[%s2990_s4] sm:$0xff]   ;;  %v2108_v2 = vld [vmem:[%s2990_s4 + $0x8] sm:$0xff]   ;;  %vm631_vm1 = vcmask 261120  }
  0xaa   : > { %2361 = vsyncadd (%p3038_p0), [#allocation13], 4294967040  ;;  %1901 = vmatprep.subr.bf16.mxu0 %v2400_v0  ;;  %1905 = vmatprep.mubr.msk.bf16.mxu0 %vm2401_vm0, %v2400_v0  ;;  %v614_v3 = vld [vmem:[%s521_s22] sm:$0xf]  ;;  %v2109_v4 = vld [vmem:[%s2989_s3] sm:$0xff]   ;;  %vm676_vm2 = vcmask 257024  }
  0xab   : > { %1909 = vmatprep.subr.bf16.mxu1 %v2400_v0  ;;  %1913 = vmatprep.mubr.msk.bf16.mxu1 %vm2401_vm0, %v2400_v0  ;;  %s601_s21 = scalar_select %p600_p1, %s2384_s16, 1  ;;  %v2111_v5 = vld [vmem:[#allocation11] sm:$0xff]   ;;  %v2110_v6 = vld [vmem:[%s2989_s3 + $0x8] sm:$0xff]   ;;  %vm806_vm3 = vcmask 64512   ;;  %vm874_vm4 = vcmask 1043456   ;;  %v2405_v46 = vmov 0  }
  0xac   : > { %1902 = vmatpush3.bf16.msra.mxu0 %v2107_v1  ;;  %1910 = vmatpush3.bf16.msra.mxu1 %v2111_v5  ;;  %v2112_v9 = vld [vmem:[#allocation11 + $0x8] sm:$0xff]   ;;  %s2402_s22 = smov 112   ;;  %s2403_s6 = smov 120   ;;  %v801_v45 = vld [vmem:[%s2712_s8] sm:$0x3]  ;;  %vm869_vm7 = vcmask 60416  }
  0xad   : > { %s1806_s24 = sshll.u32 %s601_s21, 3  ;;  %1903 = vmatprep.subr.bf16.mxu0 %v2400_v0  ;;  %1911 = vmatprep.subr.bf16.mxu1 %v2400_v0  ;;  %s2404_s23 = smov 104   ;;  %vm802_vm5 = vnez %v801_v45  ;;  %vm1052_vm8 = vcmask 126016   ;;  %vm1186_vm9 = vcmask 191616   ;;  %vm1320_vm10 = vcmask 257216  }
  0xae   : > { %s606_s5 = scalar_lea.vmem %s2986_s0, %s1806_s24  ;;  %v853_v47 = vsel %vm802_vm5, 16843009, %v2405_v46  ;;  %s1805_s8 = sshll.u32 %s2702_s14, 4  ;;  %vm1507_vm11 = vcmask 523264  }
  0xaf   : > { %v2751_v7 = vld [vmem:[%s606_s5] sm:$0xff]  ;;  %v854_v48 = vunpack.c.0.s8 %v853_v47  ;;  %s2826_s21 = scalar_lea.vmem [#allocation15], %s1805_s8  ;;  %s2406_s11 = smov 8  }
  0xb0   : > { %1904 = vmatpush3.bf16.msra.mxu0 %v2108_v2  ;;  %v737_v8 = vpack.c.bf16 %v2751_v7, %v2751_v7  ;;  %1912 = vmatpush3.bf16.msra.mxu1 %v2112_v9  ;;  %s2407_s7 = smov 16   ;;  %s2408_s19 = smov 24  }
  0xb1   : > { %1917 = vmatprep.subr.bf16.mxu0 %v2400_v0  ;;  %1925 = vmatprep.subr.bf16.mxu1 %v2400_v0  ;;  %vm2800_vm6 = vcmp.ne.s32.totalorder %v854_v48, 0  ;;  %s3041_s8 = sld [smem:[#allocation29_spill]]  ;;  %s1864_s20 = sshll.u32 %s2384_s16, 8 }
  0xb2   : > { %s1615_s25 = sshll.u32 %s2826_s21, 4  ;;  %s3043_s5 = sld [smem:[#allocation34_spill]]  ;;  %s2899_s25 = int_to_ptr.vmem [resolvable:$true] %s1615_s25 }
  0xb3   : > { %1906 = vmatmul.mubr.msk.bf16.vlgmr.msra.gmra.mrb[0].mxu0 %vm631_vm1, %v614_v3  ;;  %1914 = vmatmul.mubr.msk.bf16.vlgmr.msra.gmra.mrb[0].mxu1 %vm631_vm1, %v614_v3  ;;  %s1587_s1 = scalar_lea.sflag [#allocation16], %s2702_s14  ;;  %p3044_p10 = scmp.ne.s32.totalorder %s3029_s26, 0 }
  0xb4   : > { %1918 = vmatpush3.bf16.msra.mxu0 %v2109_v4  ;;  %1921 = vmatprep.mubr.msk.bf16.mxu0 %vm2401_vm0, %v2400_v0 }
  0xb5   : > { %1919 = vmatprep.subr.bf16.mxu0 %v2400_v0  ;;  %1927 = vmatprep.mubr.msk.bf16.mxu1 %vm2401_vm0, %v2400_v0 }
  0xb8   : > { %1920 = vmatpush3.bf16.msra.mxu0 %v2110_v6  ;;  %s2897_s27 = scalar_lea.hbm %s3043_s5, %s1864_s20 }
  0xb9   : > { %1931 = vmatprep.subr.bf16.mxu0 %v2400_v0 }
  0xbb   : > { %1922 = vmatmul.mubr.msk.bf16.vlgmr.msra.gmra.mrb[4].mxu0 %vm631_vm1, %v737_v8 }
  0xbc   : > { %1933 = vmatprep.mubr.msk.bf16.mxu0 %vm2401_vm0, %v2400_v0 }
 0x186   : > { %v669_v10 = vpop.f32.mrb[0].mxu0  ;;  %v728_v29 = vpop.f32.mrb[0].mxu1 }
 0x187   : > { %v675_v11 = vpack.c.bf16 %v669_v10, %v669_v10  ;;  %v1907_v12 = vpop.f32.mrb[1].mxu0  ;;  %v734_v30 = vpack.c.bf16 %v728_v29, %v728_v29  ;;  %v1915_v31 = vpop.f32.mrb[1].mxu1 }
 0x188   : > { %v672_v13 = vpop.f32.mrb[2].mxu0  ;;  %v731_v32 = vpop.f32.mrb[2].mxu1 }
 0x189   : > { %677 = vst.msk [vmem:[#allocation2] sm:$0xf] %vm676_vm2, %v675_v11  ;;  %v1908_v14 = vpop.f32.mrb[3].mxu0  ;;  %735 = vst.msk [vmem:[#allocation3] sm:$0xf] %vm676_vm2, %v734_v30  ;;  %v1916_v33 = vpop.f32.mrb[3].mxu1 }
 0x18e   : > { %v792_v15 = vpop.f32.mrb[4].mxu0 }
 0x18f   : > { %v798_v16 = vpack.c.bf16 %v792_v15, %v792_v15  ;;  %v1923_v17 = vpop.f32.mrb[5].mxu0 }
 0x190   : > { %v795_v18 = vpop.f32.mrb[6].mxu0  ;;  %v804_v19 = vld [vmem:[#allocation2] sm:$0xf]  ;;  %v805_v34 = vld [vmem:[#allocation3] sm:$0xf] }
 0x191   : > { %800 = vst.msk [vmem:[#allocation4] sm:$0xf] %vm676_vm2, %v798_v16  ;;  %v1924_v20 = vpop.f32.mrb[7].mxu0  ;;  %v811_v21 = vsel %vm806_vm3, %v804_v19, 0  ;;  %v2113_v22 = vld [vmem:[#allocation2] ss:$0 sps:$4 sm:$0xff]  }
 0x192   : > { %1926 = vmatpush3.bf16.xpose.msra.mxu1 %v811_v21  ;;  %v2114_v23 = vld [vmem:[#allocation2] ss:$0 sps:$4 sm:$0xff]   ;;  %1065 = vrot.lane.b32.xlu1 %v2113_v22, %s2402_s22  ;;  %v876_v35 = vsel %vm874_vm4, %v805_v34, 0  ;;  %v2119_v17 = vld [vmem:[#allocation3] ss:$0 sps:$4 sm:$0xff]  }
 0x193   : > { %1937 = vmatprep.subr.bf16.mxu1 %v2400_v0  ;;  %931 = vrot.lane.b32.xlu0 %v2114_v23, %s2403_s6  ;;  %v2118_v28 = vld [vmem:[#allocation2] ss:$0 sps:$4 sm:$0xff]   ;;  %v2120_v34 = vld [vmem:[#allocation3] ss:$0 sps:$4 sm:$0xff]  }
 0x194   : > { %1932 = vmatpush3.bf16.msra.mxu0 %v876_v35 }
 0x195   : > { %1943 = vmatprep.subr.bf16.mxu0 %v2400_v0 }
 0x198   : > { %v803_v24 = vld [vmem:[#allocation4] sm:$0xf] }
 0x199   : > { %v2115_v25 = vld [vmem:[#allocation4] ss:$0 sps:$4 sm:$0xff]   ;;  %1928 = vmatmul.mubr.msk.bf16.vlgmr.msra.gmra.mrb[4].mxu1 %vm806_vm3, %v803_v24 }
 0x19a   : > { %v2116_v26 = vld [vmem:[#allocation4] ss:$0 sps:$4 sm:$0xff]   ;;  %1060 = vrot.lane.b32.xlu1 %v2115_v25, %s2402_s22  ;;  %1939 = vmatprep.mubr.msk.bf16.mxu1 %vm2401_vm0, %v2400_v0 }
 0x19b   : > { %926 = vrot.lane.b32.xlu0 %v2116_v26, %s2403_s6  ;;  %v2117_v27 = vld [vmem:[#allocation4] ss:$0 sps:$4 sm:$0xff]  }
 0x19e   : > { %1194 = vrot.lane.b32.xlu1 %v2117_v27, %s2404_s23 }
 0x19f   : > { %1199 = vrot.lane.b32.xlu0 %v2118_v28, %s2404_s23 }
 0x204   : > { %v1066_v38 = vpop.permute.xlu1 %1065 }
 0x205   : > { %v932_v36 = vpop.permute.xlu0 %931  ;;  %v1071_v40 = vsel %vm806_vm3, %v1066_v38, 0  ;;  %v2121_v38 = vld [vmem:[#allocation3] ss:$0 sps:$4 sm:$0xff]  }
 0x206   : > { %v937_v37 = vsel %vm806_vm3, %v932_v36, 0 }
 0x207   : > { %1938 = vmatpush3.bf16.xpose.msra.mxu1 %v937_v37 }
 0x208   : > { %1949 = vmatprep.subr.bf16.mxu1 %v2400_v0 }
 0x20c   : > { %v1061_v42 = vpop.permute.xlu1 %1060 }
 0x20d   : > { %v927_v39 = vpop.permute.xlu0 %926 }
 0x20e   : > { %1940 = vmatmul.mubr.msk.bf16.vlgmr.msra.gmra.mrb[8].mxu1 %vm806_vm3, %v927_v39 }
 0x20f   : > { %1950 = vmatpush3.bf16.xpose.msra.mxu1 %v1071_v40  ;;  %1951 = vmatprep.mubr.msk.bf16.mxu1 %vm2401_vm0, %v2400_v0 }
 0x210   : > { %1961 = vmatprep.subr.bf16.mxu1 %v2400_v0  ;;  %v1195_v44 = vpop.permute.xlu1 %1194 }
 0x211   : > { %v1200_v41 = vpop.permute.xlu0 %1199 }
 0x212   : > { %v1205_v43 = vsel %vm806_vm3, %v1200_v41, 0 }
 0x216   : > { %1952 = vmatmul.mubr.msk.bf16.vlgmr.msra.gmra.mrb[12].mxu1 %vm806_vm3, %v1061_v42 }
 0x217   : > { %1962 = vmatpush3.bf16.xpose.msra.mxu1 %v1205_v43  ;;  %1963 = vmatprep.mubr.msk.bf16.mxu1 %vm2401_vm0, %v2400_v0 }
 0x218   : > { %1973 = vmatprep.subr.bf16.mxu1 %v2400_v0 }
 0x21e   : > { %1964 = vmatmul.mubr.msk.bf16.vlgmr.msra.gmra.mrb[16].mxu1 %vm806_vm3, %v1195_v44 }
 0x21f   : > { %1977 = vmatprep.mubr.msk.bf16.mxu1 %vm2401_vm0, %v2400_v0 }
 0x26c   : > { %v847_v50 = vpop.f32.mrb[4].mxu1 }
 0x26d   : > { %v856_v51 = vsel %vm2800_vm6, -1e+09, %v847_v50  ;;  %v1929_v52 = vpop.f32.mrb[5].mxu1 }
 0x26e   : > { %v850_v53 = vpop.f32.mrb[6].mxu1  ;;  %v857_v54 = vsel %vm806_vm3, %v856_v51, -inf }
 0x26f   : > { %858 = vmax.xlane.f32.xlu0 %v857_v54  ;;  %v1930_v55 = vpop.f32.mrb[7].mxu1 }
 0x2e1   : > { %v973_v56 = vpop.f32.mrb[8].mxu1 }
 0x2e2   : > { %v979_v57 = vsel %vm2800_vm6, -1e+09, %v973_v56  ;;  %v1941_v58 = vpop.f32.mrb[9].mxu1 }
 0x2e3   : > { %v976_v59 = vpop.f32.mrb[10].mxu1  ;;  %v980_v60 = vsel %vm806_vm3, %v979_v57, -inf }
 0x2e4   : > { %981 = vmax.xlane.f32.xlu1 %v980_v60  ;;  %v1942_v61 = vpop.f32.mrb[11].mxu1 }
 0x2e9   : > { %v1107_v62 = vpop.f32.mrb[12].mxu1 }
 0x2ea   : > { %v1113_v63 = vsel %vm2800_vm6, -1e+09, %v1107_v62  ;;  %v1953_v1 = vpop.f32.mrb[13].mxu1 }
 0x2eb   : > { %v1110_v2 = vpop.f32.mrb[14].mxu1  ;;  %v1114_v3 = vsel %vm806_vm3, %v1113_v63, -inf }
 0x2ec   : > { %1115 = vmax.xlane.f32.xlu0 %v1114_v3  ;;  %v1954_v4 = vpop.f32.mrb[15].mxu1 }
 0x2ed   : > { %v2122_v4 = vld [vmem:[#allocation12] sm:$0xff]  }
 0x2ee   : > { %1974 = vmatpush3.bf16.msra.mxu1 %v2122_v4 }
 0x2ef   : > { %1975 = vmatprep.subr.bf16.mxu1 %v2400_v0 }
 0x2f1   : > { %v1241_v5 = vpop.f32.mrb[16].mxu1 }
 0x2f2   : > { %v1247_v6 = vsel %vm2800_vm6, -1e+09, %v1241_v5  ;;  %v1965_v8 = vpop.f32.mrb[17].mxu1  ;;  %v2123_v5 = vld [vmem:[#allocation12 + $0x8] sm:$0xff]  }
 0x2f3   : > { %v1244_v9 = vpop.f32.mrb[18].mxu1  ;;  %v1248_v10 = vsel %vm806_vm3, %v1247_v6, -inf  ;;  %1976 = vmatpush3.bf16.msra.mxu1 %v2123_v5 }
 0x2f4   : > { %1249 = vmax.xlane.f32.xlu0 %v1248_v10  ;;  %v1966_v11 = vpop.f32.mrb[19].mxu1  ;;  %1989 = vmatprep.subr.bf16.mxu1 %v2400_v0 }
 0x2fc   : > { %v859_v12 = vpop.xlane.xlu0 %858 }
 0x2fd   : > { %v860_v13 = vsub.f32 %v856_v51, %v859_v12 }
 0x2ff   : > { %v861_v14 = vmul.f32 1.442695, %v860_v13 }
 0x301   : > { %2130 = vpow2.f32 %v861_v14 }
 0x30b   : > { %v2131_v15 = vpop.eup %2130 }
 0x30c   : > { %v863_v16 = vsel %vm806_vm3, %v2131_v15, 0.0 }
 0x30d   : > { %864 = vadd.xlane.f32.xlu1 %v863_v16 }
 0x31e   : > { %997 = vrot.lane.b32.xlu1 %v2119_v17, %s2403_s6  ;;  %s2409_s6 = smov [#allocation15]  }
 0x371   : > { %v982_v18 = vpop.xlane.xlu1 %981 }
 0x372   : > { %v983_v19 = vsub.f32 %v979_v57, %v982_v18 }
 0x374   : > { %v984_v20 = vmul.f32 1.442695, %v983_v19 }
 0x376   : > { %2132 = vpow2.f32 %v984_v20 }
 0x379   : > { %v1116_v21 = vpop.xlane.xlu0 %1115 }
 0x37a   : > { %v1117_v22 = vsub.f32 %v1113_v63, %v1116_v21 }
 0x37c   : > { %v1118_v23 = vmul.f32 1.442695, %v1117_v22 }
 0x37e   : > { %2134 = vpow2.f32 %v1118_v23 }
 0x380   : > { %v2133_v24 = vpop.eup %2132 }
 0x381   : > { %v1250_v25 = vpop.xlane.xlu0 %1249  ;;  %v986_v26 = vsel %vm806_vm3, %v2133_v24, 0.0 }
 0x382   : > { %v1251_v27 = vsub.f32 %v1247_v6, %v1250_v25  ;;  %987 = vadd.xlane.f32.xlu0 %v986_v26 }
 0x384   : > { %v1252_v28 = vmul.f32 1.442695, %v1251_v27 }
 0x386   : > { %2136 = vpow2.f32 %v1252_v28 }
 0x388   : > { %v2135_v29 = vpop.eup %2134 }
 0x389   : > { %v1120_v30 = vsel %vm806_vm3, %v2135_v29, 0.0 }
 0x38a   : > { %1121 = vadd.xlane.f32.xlu1 %v1120_v30 }
 0x390   : > { %v2137_v31 = vpop.eup %2136 }
 0x391   : > { %v1254_v32 = vsel %vm806_vm3, %v2137_v31, 0.0 }
 0x392   : > { %1255 = vadd.xlane.f32.xlu0 %v1254_v32  ;;  %v2124_v32 = vld [vmem:[%s2995_s9] sm:$0xff]  }
 0x39a   : > { %v865_v33 = vpop.xlane.xlu1 %864 }
 0x39b   : > { %2138 = vrcp.f32 %v865_v33  ;;  %1265 = vrot.lane.b32.xlu1 %v2120_v34, %s2404_s23  ;;  %v2126_v33 = vld [vmem:[%s2996_s10] sm:$0xff]   ;;  %v2127_v34 = vld [vmem:[%s2996_s10 + $0x8] sm:$0xff]   ;;  %s2270_s23 = sshll.u32 %s2409_s6, 4  ;;  %s2271_s23 = int_to_ptr.vmem [resolvable:$false] %s2270_s23 }
 0x39c   : > { %p2273_p9 = scmp.lt.s32.totalorder %s2899_s25, %s2271_s23 }
 0x39e   : > { %v998_v37 = vpop.permute.xlu1 %997 }
 0x39f   : > { %v1003_v40 = vsel %vm874_vm4, %v998_v37, 0 }
 0x3a5   : > { %v2139_v35 = vpop.eup %2138 }
 0x3a6   : > { %v867_v36 = vmul.f32 %v2139_v35, %v2131_v15  ;;  %v2128_v35 = vld [vmem:[%s2996_s10 + $0x10] sm:$0xff]  }
 0x3a8   : > { %v868_v39 = vpack.c.bf16 %v867_v36, %v867_v36  ;;  %1131 = vrot.lane.b32.xlu0 %v2121_v38, %s2402_s22  ;;  %s2266_s22 = scalar_lea.vmem %s2899_s25, 256 }
 0x3a9   : > { %p2267_p6 = scmp.ne.s32.totalorder %s2899_s25, %s2266_s22 }
 0x3aa   : > { %1934 = vmatmul.mubr.msk.bf16.vlgmr.msra.gmra.mrb[8].mxu0 %vm806_vm3, %v868_v39  ;;  %870 = vst.msk [vmem:[%s2826_s21] sm:$0xf] %vm869_vm7, %v868_v39 }
 0x3ab   : > { %1944 = vmatpush3.bf16.msra.mxu0 %v1003_v40  ;;  %1945 = vmatprep.mubr.msk.bf16.mxu0 %vm2401_vm0, %v2400_v0  ;;  %v1842_v40 = vld [vmem:[%s3041_s8] ss:$0 sm:$0xff]  ;;  %p2268_p3 = pnand %p2267_p6, %p3044_p10 }
 0x3ac   : > { %1955 = vmatprep.subr.bf16.mxu0 %v2400_v0 }
 0x3ad   : > { %p2269_p4 = pneg %p2268_p3 }
 0x40f   : > { %v988_v41 = vpop.xlane.xlu0 %987 }
 0x410   : > { %2140 = vrcp.f32 %v988_v41 }
 0x417   : > { %v1122_v42 = vpop.xlane.xlu1 %1121 }
 0x418   : > { %2142 = vrcp.f32 %v1122_v42 }
 0x41a   : > { %v2141_v43 = vpop.eup %2140 }
 0x41b   : > { %v990_v44 = vmul.f32 %v2141_v43, %v2133_v24  ;;  %v1266_v51 = vpop.permute.xlu1 %1265 }
 0x41c   : > { %v1271_v53 = vsel %vm874_vm4, %v1266_v51, 0 }
 0x41d   : > { %v991_v45 = vpack.c.bf16 %v990_v44, %v990_v44 }
 0x41f   : > { %1946 = vmatmul.mubr.msk.bf16.vlgmr.msra.gmra.mrb[12].mxu0 %vm806_vm3, %v991_v45  ;;  %v1256_v46 = vpop.xlane.xlu0 %1255  ;;  %1821 = vst.msk [vmem:[%s2826_s21 + $0x4] sm:$0xf] %vm869_vm7, %v991_v45 }
 0x420   : > { %2144 = vrcp.f32 %v1256_v46  ;;  %1957 = vmatprep.mubr.msk.bf16.mxu0 %vm2401_vm0, %v2400_v0 }
 0x422   : > { %v2143_v47 = vpop.eup %2142 }
 0x423   : > { %v1124_v48 = vmul.f32 %v2143_v47, %v2135_v29  ;;  %v1132_v49 = vpop.permute.xlu0 %1131 }
 0x424   : > { %v1137_v50 = vsel %vm874_vm4, %v1132_v49, 0 }
 0x425   : > { %1956 = vmatpush3.bf16.msra.mxu0 %v1137_v50  ;;  %v1125_v52 = vpack.c.bf16 %v1124_v48, %v1124_v48 }
 0x426   : > { %1967 = vmatprep.subr.bf16.mxu0 %v2400_v0 }
 0x427   : > { %1828 = vst.msk [vmem:[%s2826_s21 + $0x8] sm:$0xf] %vm869_vm7, %v1125_v52 }
 0x428   : > { %1958 = vmatmul.mubr.msk.bf16.vlgmr.msra.gmra.mrb[16].mxu0 %vm806_vm3, %v1125_v52 }
 0x429   : > { %1968 = vmatpush3.bf16.msra.mxu0 %v1271_v53  ;;  %1969 = vmatprep.mubr.msk.bf16.mxu0 %vm2401_vm0, %v2400_v0 }
 0x42a   : > { %v2145_v54 = vpop.eup %2144  ;;  %1981 = vmatprep.subr.bf16.mxu0 %v2400_v0 }
 0x42b   : > { %v1258_v55 = vmul.f32 %v2145_v54, %v2137_v31 }
 0x42d   : > { %v1259_v56 = vpack.c.bf16 %v1258_v55, %v1258_v55 }
 0x42f   : > { %1835 = vst.msk [vmem:[%s2826_s21 + $0xc] sm:$0xf] %vm869_vm7, %v1259_v56  ;;  %s2272_s21 = scalar_lea.vmem %s2271_s23, 512 }
 0x430   : > { %1970 = vmatmul.mubr.msk.bf16.vlgmr.msra.gmra.mrb[20].mxu0 %vm806_vm3, %v1259_v56  ;;  %p2274_p5 = scmp.lt.s32.totalorder %s2272_s21, %s2266_s22 }
 0x431   : > { %1985 = vmatprep.mubr.msk.bf16.mxu0 %vm2401_vm0, %v2400_v0  ;;  %1982 = vmatpush3.bf16.msra.mxu0 %v2124_v32 }
 0x432   : > { %1983 = vmatprep.subr.bf16.mxu0 %v2400_v0  ;;  %p2275_p7 = por %p2274_p5, %p2273_p9 }
 0x434   : > { %p2276_p13 = pnand %p2275_p7, %p2269_p4 }
 0x47d   : > { %v912_v57 = vpop.f32.mrb[8].mxu0 }
 0x47e   : > { %v918_v58 = vpack.c.bf16 %v912_v57, %v912_v57  ;;  %v1935_v59 = vpop.f32.mrb[9].mxu0 }
 0x47f   : > { %v915_v60 = vpop.f32.mrb[10].mxu0 }
 0x480   : > { %919 = vst.msk [vmem:[#allocation5] sm:$0xf] %vm869_vm7, %v918_v58  ;;  %v1936_v61 = vpop.f32.mrb[11].mxu0 }
 0x4f2   : > { %v1039_v62 = vpop.f32.mrb[12].mxu0 }
 0x4f3   : > { %v1861_v63 = vpack.c.bf16 %v1039_v62, %v1039_v62  ;;  %v1947_v1 = vpop.f32.mrb[13].mxu0 }
 0x4f4   : > { %v1042_v2 = vpop.f32.mrb[14].mxu0 }
 0x4f5   : > { %1049 = vrot.lane.b32.xlu1 %v1861_v63, %s2406_s11  ;;  %v1948_v3 = vpop.f32.mrb[15].mxu0 }
 0x4fb   : > { %v1173_v6 = vpop.f32.mrb[16].mxu0 }
 0x4fc   : > { %v1862_v8 = vpack.c.bf16 %v1173_v6, %v1173_v6  ;;  %v1959_v9 = vpop.f32.mrb[17].mxu0 }
 0x4fd   : > { %v1176_v10 = vpop.f32.mrb[18].mxu0 }
 0x4fe   : > { %1183 = vrot.lane.b32.xlu0 %v1862_v8, %s2407_s7  ;;  %v1960_v11 = vpop.f32.mrb[19].mxu0 }
 0x503   : > { %v1307_v12 = vpop.f32.mrb[20].mxu0 }
 0x504   : > { %v1863_v13 = vpack.c.bf16 %v1307_v12, %v1307_v12  ;;  %v1971_v14 = vpop.f32.mrb[21].mxu0 }
 0x505   : > { %v1310_v15 = vpop.f32.mrb[22].mxu0 }
 0x506   : > { %1317 = vrot.lane.b32.xlu1 %v1863_v13, %s2408_s19  ;;  %v1972_v16 = vpop.f32.mrb[23].mxu0  ;;  %s3042_s19 = sld [smem:[#allocation30_spill]] }
 0x50c   : > { %v1843_v42 = vld [vmem:[%s3042_s19] ss:$0 sm:$0xff] }
 0x567   : > { %v1050_v17 = vpop.permute.xlu1 %1049 }
 0x568   : > { %1053 = vst.msk [vmem:[#allocation5] sm:$0xf] %vm1052_vm8, %v1050_v17 }
 0x570   : > { %v1184_v18 = vpop.permute.xlu0 %1183 }
 0x571   : > { %1187 = vst.msk [vmem:[#allocation5] sm:$0xf] %vm1186_vm9, %v1184_v18 }
 0x578   : > { %v1318_v19 = vpop.permute.xlu1 %1317 }
 0x579   : > { %1321 = vst.msk [vmem:[#allocation5] sm:$0xf] %vm1320_vm10, %v1318_v19 }
 0x580   : > { %v1322_v20 = vld [vmem:[#allocation5] sm:$0xf] }
 0x581   : > { %1978 = vmatmul.mubr.msk.bf16.vlgmr.msra.gmra.mrb[20].mxu1 %vm631_vm1, %v1322_v20 }
 0x582   : > { %1997 = vmatprep.mubr.msk.bf16.mxu1 %vm2401_vm0, %v2400_v0  ;;  %1990 = vmatpush3.bf16.msra.mxu1 %v2126_v33 }
 0x583   : > { %1991 = vmatprep.subr.bf16.mxu1 %v2400_v0 }
 0x586   : > { %1992 = vmatpush3.bf16.msra.mxu1 %v2127_v34 }
 0x587   : > { %1993 = vmatprep.subr.bf16.mxu1 %v2400_v0 }
 0x58a   : > { %1994 = vmatpush3.bf16.msra.mxu1 %v2128_v35 }
 0x58b   : > { %1995 = vmatprep.subr.bf16.mxu1 %v2400_v0  ;;  %v2129_v0 = vld [vmem:[%s2996_s10 + $0x18] sm:$0xff]  }
 0x58e   : > { %1996 = vmatpush3.bf16.msra.mxu1 %v2129_v0 }
 0x654   : > { %v1377_v21 = vpop.f32.mrb[20].mxu1 }
 0x655   : > { %v1378_v22 = vadd.f32 %v1377_v21, %v2751_v7  ;;  %v1979_v23 = vpop.f32.mrb[21].mxu1  ;;  %v2125_v7 = vld [vmem:[%s2995_s9 + $0x8] sm:$0xff]  }
 0x656   : > { %v1380_v24 = vpop.f32.mrb[22].mxu1  ;;  %1984 = vmatpush3.bf16.msra.mxu0 %v2125_v7 }
 0x657   : > { %v1980_v25 = vpop.f32.mrb[23].mxu1  ;;  %v1385_v26 = vsel %vm631_vm1, %v1378_v22, 0.0 }
 0x658   : > { %1386 = vadd.xlane.f32.xlu0 %v1385_v26 }
 0x6e5   : > { %v1387_v27 = vpop.xlane.xlu0 %1386 }
 0x6e6   : > { %v1389_v28 = vmul.f32 0.03125, %v1387_v27 }
 0x6e8   : > { %v1390_v29 = vsub.f32 %v1378_v22, %v1389_v28 }
 0x6ea   : > { %v1391_v30 = vmul.f32 %v1390_v29, %v1390_v29 }
 0x6ec   : > { %v1392_v31 = vsel %vm631_vm1, %v1391_v30, 0.0 }
 0x6ed   : > { %1393 = vadd.xlane.f32.xlu1 %v1392_v31 }
 0x77a   : > { %v1394_v36 = vpop.xlane.xlu1 %1393 }
 0x77b   : > { %v1395_v37 = vmul.f32 0.03125, %v1394_v36 }
 0x77d   : > { %v1396_v38 = vadd.f32 1e-05, %v1395_v37 }
 0x77f   : > { %2146 = vrsqrt.f32 %v1396_v38 }
 0x789   : > { %v2147_v39 = vpop.eup %2146 }
 0x78a   : > { %v1398_v41 = vmul.f32 %v2147_v39, %v1390_v29 }
 0x78c   : > { %v1405_v43 = vmul.f32 %v1842_v40, %v1398_v41 }
 0x78e   : > { %v1412_v44 = vadd.f32 %v1843_v42, %v1405_v43 }
 0x790   : > { %v1413_v45 = vpack.c.bf16 %v1412_v44, %v1412_v44 }
 0x792   : > { %1986 = vmatmul.mubr.msk.bf16.vlgmr.msra.gmra.mrb[24].mxu0 %vm631_vm1, %v1413_v45 }
 0x865   : > { %v1467_v46 = vpop.f32.mrb[24].mxu0 }
 0x866   : > { %v1473_v47 = vmax.f32 %v1467_v46, 0.0  ;;  %v1987_v48 = vpop.f32.mrb[25].mxu0 }
 0x867   : > { %v1470_v49 = vpop.f32.mrb[26].mxu0 }
 0x868   : > { %v1474_v50 = vpack.c.bf16 %v1473_v47, %v1473_v47  ;;  %v1988_v51 = vpop.f32.mrb[27].mxu0 }
 0x86a   : > { %1998 = vmatmul.mubr.msk.bf16.vlgmr.msra.gmra.mrb[24].mxu1 %vm1507_vm11, %v1474_v50 }
 0x93d   : > { %v1545_v52 = vpop.f32.mrb[24].mxu1 }
 0x93e   : > { %v1546_v53 = vadd.f32 %v1545_v52, %v1412_v44  ;;  %v1999_v54 = vpop.f32.mrb[25].mxu1 }
 0x93f   : > { %v1548_v55 = vpop.f32.mrb[26].mxu1 }
 0x940   : > { %v2000_v56 = vpop.f32.mrb[27].mxu1  ;;  %v1553_v57 = vsel %vm631_vm1, %v1546_v53, 0.0 }
 0x941   : > { %1554 = vadd.xlane.f32.xlu0 %v1553_v57 }
 0x9ce   : > { %v1555_v58 = vpop.xlane.xlu0 %1554 }
 0x9cf   : > { %v1556_v59 = vmul.f32 0.03125, %v1555_v58 }
 0x9d1   : > { %v1557_v60 = vsub.f32 %v1546_v53, %v1556_v59 }
 0x9d3   : > { %v1558_v61 = vmul.f32 %v1557_v60, %v1557_v60 }
 0x9d5   : > { %v1559_v62 = vsel %vm631_vm1, %v1558_v61, 0.0 }
 0x9d6   : > { %1560 = vadd.xlane.f32.xlu0 %v1559_v62 }
 0x9d7   : > { %2279 = shalt.err (!%p2276_p13)
}
 0x9d8   : > { %s2280_s8 = scalar_lea.hbm %s2897_s27, 256  ;;  %s2284_s19 = scalar_lea.hbm %s3043_s5, 512 }
 0x9d9   : > { %p2281_p2 = scmp.ne.s32.totalorder %s2897_s27, %s2280_s8  ;;  %p2285_p11 = scmp.lt.u32.totalorder %s2897_s27, %s3043_s5 }
 0x9da   : > { %p2286_p0 = scmp.lt.u32.totalorder %s2284_s19, %s2280_s8  ;;  %p2288_p6 = scmp.lt.u32.totalorder %s2280_s8, %s2897_s27 }
 0x9db   : > { %p2282_p8 = pnand %p2281_p2, %p3044_p10 }
 0x9dc   : > { %p2287_p1 = por %p2286_p0, %p2285_p11 }
 0x9dd   : > { %p2283_p12 = pneg %p2282_p8 }
 0x9de   : > { %p2289_p3 = por %p2288_p6, %p2287_p1 }
 0x9e0   : > { %p2290_p4 = pnand %p2289_p3, %p2283_p12 }
 0x9e2   : > { %2293 = shalt.err (!%p2290_p4)
}
 0x9e3   : > { %s2410_s20 = smov 64   ;;  %s2411_s28 = smov 4  }
 0x9e4   : > { %2014 = dma.vmem_to_hbm [thread:$0]  (%p3044_p10), %s2899_s25, 256, %s2897_s27, %s1587_s1, %s2410_s20, %s2410_s20, %s2411_s28  }
 0x9e5   : > { %s1804_s13 = sshll.u32 %s2702_s14, 3  ;;  %s3045_s23 = sld [smem:[#allocation31_spill]] }
 0x9e6   : > { %s3046_s11 = sld [smem:[#allocation32_spill]]  ;;  %s1856_s7 = sshll.u32 %s2384_s16, 7 }
 0x9e7   : > { %s592_s19 = scalar_lea.vmem [#allocation14], %s1804_s13  ;;  %s3047_s29 = sld [smem:[#allocation33_spill]] }
 0x9e8   : > { %s1601_s25 = sshll.u32 %s592_s19, 4  ;;  %s1582_s28 = scalar_lea.sflag [#allocation8], %s2702_s14  ;;  %s2938_s25 = int_to_ptr.vmem [resolvable:$true] %s1601_s25 }
 0x9e9   : > { %s2294_s22 = scalar_lea.vmem %s2938_s25, 128  ;;  %s2412_s16 = smov [#allocation14]  }
 0x9ea   : > { %p2295_p9 = scmp.ne.s32.totalorder %s2938_s25, %s2294_s22  ;;  %s2298_s13 = sshll.u32 %s2412_s16, 4  ;;  %s2299_s13 = int_to_ptr.vmem [resolvable:$false] %s2298_s13 }
 0x9eb   : > { %v1852_v4 = vld [vmem:[%s3045_s23] ss:$0 sm:$0xff]  ;;  %s2300_s6 = scalar_lea.vmem %s2299_s13, 256  ;;  %p2301_p13 = scmp.lt.s32.totalorder %s2938_s25, %s2299_s13 }
 0x9ec   : > { %v1853_v6 = vld [vmem:[%s3046_s11] ss:$0 sm:$0xff]  ;;  %p2296_p5 = pnand %p2295_p9, %p3044_p10  ;;  %p2302_p2 = scmp.lt.s32.totalorder %s2300_s6, %s2294_s22 }
 0x9ed   : > { %s3048_s24 = smov %s3047_s29  ;;  %s2936_s20 = scalar_lea.hbm %s3047_s29, %s1856_s7 }
 0x9ee   : > { %p2297_p7 = pneg %p2296_p5  ;;  %p2303_p8 = por %p2302_p2, %p2301_p13 }
 0x9f0   : > { %p2304_p12 = pnand %p2303_p8, %p2297_p7 }
 0xa63   : > { %v1561_v63 = vpop.xlane.xlu0 %1560 }
 0xa64   : > { %v1562_v1 = vmul.f32 0.03125, %v1561_v63 }
 0xa66   : > { %v1563_v2 = vadd.f32 1e-05, %v1562_v1 }
 0xa68   : > { %2148 = vrsqrt.f32 %v1563_v2 }
 0xa72   : > { %v2149_v3 = vpop.eup %2148 }
 0xa73   : > { %v1565_v5 = vmul.f32 %v2149_v3, %v1557_v60 }
 0xa75   : > { %v1572_v8 = vmul.f32 %v1852_v4, %v1565_v5 }
 0xa77   : > { %v1579_v9 = vadd.f32 %v1853_v6, %v1572_v8 }
 0xa79   : > { %1580 = vst.msk [vmem:[%s592_s19] sm:$0xff] %vm631_vm1, %v1579_v9 }
 0xa7a   : > { %2307 = shalt.err (!%p2304_p12)
}
 0xa7b   : > { %s2308_s14 = scalar_lea.hbm %s2936_s20, 128  ;;  %s2312_s8 = scalar_lea.hbm %s3048_s24, 256 }
 0xa7c   : > { %p2309_p11 = scmp.ne.s32.totalorder %s2936_s20, %s2308_s14  ;;  %p2313_p6 = scmp.lt.u32.totalorder %s2936_s20, %s3048_s24 }
 0xa7d   : > { %p2314_p3 = scmp.lt.u32.totalorder %s2312_s8, %s2308_s14  ;;  %p2316_p9 = scmp.lt.u32.totalorder %s2308_s14, %s2936_s20 }
 0xa7e   : > { %p2310_p0 = pnand %p2309_p11, %p3044_p10 }
 0xa7f   : > { %p2315_p4 = por %p2314_p3, %p2313_p6 }
 0xa80   : > { %p2311_p1 = pneg %p2310_p0 }
 0xa81   : > { %p2317_p5 = por %p2316_p9, %p2315_p4 }
 0xa83   : > { %p2318_p7 = pnand %p2317_p5, %p2311_p1 }
 0xa85   : > { %2321 = shalt.err (!%p2318_p7)
}
 0xa86   : > { %2013 = dma.vmem_to_hbm [thread:$0]  (%p3044_p10), %s2938_s25, 128, %s2936_s20, %s1582_s28  }
 0xa87 PF: > { %s3049_s19 = sld [smem:[#allocation23_spill]]  ;;  %s3050_s27 = sld [smem:[#allocation24_spill]] }
 0xa88   : > { %p3052_p2 = scmp.ge.s32.totalorder %s2392_s18, 2 }
 0xa8d   : > { %s1630_s1 = sand.u32 1, %s3049_s19   ;;  %p3051_p13 = scmp.ne.s32.totalorder %s3050_s27, 0 }
 0xa8e   : > { %s1631_s29 = scalar_lea.sflag [#allocation8], %s1630_s1 }
 0xa8f   : > { %p2032_p8 = pnand %p3052_p2, %p3051_p13 }
 0xa91   : > { %2363 = dma.done.wait (!%p2032_p8), %s1631_s29, 128  }
 0xa92   : > { %2365 = vsyncadd (!%p2032_p8), %s1631_s29, 4294967168  ;;  %s1640_s22 = scalar_lea.sflag [#allocation16], %s1630_s1 }
 0xa93   : > { %2367 = dma.done.wait (!%p2032_p8), %s1640_s22, 256  }
 0xa94   : > { %2369 = vsyncadd (!%p2032_p8), %s1640_s22, 4294967040  ;;  %s38_s18 = sadd.s32 1, %s2392_s18   ;;  %s3053_s26 = sld [smem:[#allocation25_spill]] }
 0xa95   : > { %p35_p12 = scmp.ge.s32.totalorder %s38_s18, 4   ;;  %s3054_s29 = smov %s2376_s30 }
 0xa96   : > { %s3055_s30 = smov %s2380_s15  ;;  %s3056_s15 = smov %s2629_s12 }
 0xa97   : > { %s3057_s16 = smov %s2388_s17  ;;  %37 = sbr.rel (!%p35_p12) target bundleno = 21 (0x15), region = 165 }
 0xa9a   : > { %s3058_s17 = smov %s3053_s26 }
 0xa9e   :  { %1645 = vsyncpa [#allocation7], 1 }
 0xa9f   :  { %1647 = vsyncpa [#allocation7 + $0x1], 1 }
 0xaa0   :  { %1648 = vsyncpa [#allocation10], 1 }
 0xaa1   :  { %1650 = vsyncpa [#allocation10 + $0x1], 1 }
 0xaa2   :  { %1651 = vsyncpa [#allocation13], 1 }
 0xaa3   :  { %1652 = vsyncpa [#allocation8], 1 }
 0xaa4   :  { %1654 = vsyncpa [#allocation8 + $0x1], 1 }
 0xaa5   :  { %1655 = vsyncpa [#allocation16], 1 }
 0xaa6   :  { %1657 = vsyncpa [#allocation16 + $0x1], 1 }

// kernel: tpu_custom_call.1
= control target key start
LH: loop header
LB: loop body
LE: loop exit
PB: predicated region body
PF: predicated region fallthrough
CT: control target
= control target key end

     0   :  { %s2986_s0 = inlined_call_operand.vmem [shape: f32[2,8,32], index: 0, kind: input, shape index: {}]   ;;  %s2987_s1 = inlined_call_operand.hbm [shape: bf16[2,8,32], index: 1, kind: input, shape index: {}]   ;;  %s2988_s2 = inlined_call_operand.hbm [shape: s8[2,8,8], index: 2, kind: input, shape index: {}]   ;;  %s2989_s3 = inlined_call_operand.vmem [shape: bf16[32,32], index: 3, kind: input, shape index: {}]   ;;  %s2990_s4 = inlined_call_operand.vmem [shape: bf16[32,32], index: 4, kind: input, shape index: {}]   ;;  %s2991_s5 = inlined_call_operand.hbm [shape: bf16[32,32], index: 5, kind: input, shape index: {}]   ;;  %s2992_s6 = inlined_call_operand.hbm [shape: bf16[32,32], index: 6, kind: input, shape index: {}]   ;;  %s2993_s7 = inlined_call_operand.vmem [shape: f32[1,32], index: 7, kind: input, shape index: {}]   ;;  %s2994_s8 = inlined_call_operand.vmem [shape: f32[1,32], index: 8, kind: input, shape index: {}]   ;;  %s2995_s9 = inlined_call_operand.vmem [shape: bf16[32,64], index: 9, kind: input, shape index: {}]   ;;  %s2996_s10 = inlined_call_operand.vmem [shape: bf16[64,32], index: 10, kind: input, shape index: {}]   ;;  %s2997_s11 = inlined_call_operand.vmem [shape: f32[1,32], index: 11, kind: input, shape index: {}]   ;;  %s2998_s12 = inlined_call_operand.vmem [shape: f32[1,32], index: 12, kind: input, shape index: {}]   ;;  %s2999_s13 = inlined_call_operand.hbm [shape: f32[2,8,32], index: 13, kind: output, shape index: {0}]   ;;  %s3000_s14 = inlined_call_operand.hbm [shape: bf16[2,4,8,8], index: 14, kind: output, shape index: {1}]  }
   0x1   :  { %3010 = sst [smem:[#allocation26_spill]] %s2987_s1 }
   0x2   :  { %3011 = sst [smem:[#allocation27_spill]] %s2991_s5 }
   0x3   :  { %3012 = sst [smem:[#allocation28_spill]] %s2992_s6 }
   0x4   :  { %3013 = sst [smem:[#allocation29_spill]] %s2993_s7 }
   0x5   :  { %3014 = sst [smem:[#allocation30_spill]] %s2994_s8 }
   0x6   :  { %3015 = sst [smem:[#allocation31_spill]] %s2997_s11 }
   0x7   :  { %3016 = sst [smem:[#allocation32_spill]] %s2998_s12 }
   0x8   :  { %3017 = sst [smem:[#allocation33_spill]] %s2999_s13 }
   0x9   :  { %3018 = sst [smem:[#allocation34_spill]] %s3000_s14 }
   0xa   :  { %20 = vsyncpa [#allocation7], 0 }
   0xb   :  { %22 = vsyncpa [#allocation7 + $0x1], 0 }
   0xc   :  { %23 = vsyncpa [#allocation10], 0 }
   0xd   :  { %25 = vsyncpa [#allocation10 + $0x1], 0 }
   0xe   :  { %26 = vsyncpa [#allocation13], 0 }
   0xf   :  { %27 = vsyncpa [#allocation8], 0 }
  0x10   :  { %29 = vsyncpa [#allocation8 + $0x1], 0 }
  0x11   :  { %30 = vsyncpa [#allocation16], 0 }
  0x12   :  { %32 = vsyncpa [#allocation16 + $0x1], 0  ;;  %s2488_s29 = smov 0   ;;  %s2490_s30 = smov 0  }
  0x13   :  { %s2492_s15 = smov 0   ;;  %s2494_s16 = smov 0  }
  0x14   :  { %s2496_s17 = smov 0   ;;  %s2498_s18 = smov 0  }
  0x15 LB: > { %3019 = sst [smem:[#allocation23_spill]] %s2372_s29  ;;  %s2519_s19 = sadd.s32 4294967295, %s2392_s18   ;;  %s2392_s18 = sphi %s2498_s18, %s38_s18   ;;  %s2388_s17 = sphi %s2496_s17, %s3058_s17   ;;  %s2384_s16 = sphi %s2494_s16, %s3057_s16   ;;  %s2380_s15 = sphi %s2492_s15, %s3056_s15   ;;  %s2376_s30 = sphi %s2490_s30, %s3055_s30   ;;  %s2372_s29 = sphi %s2488_s29, %s3054_s29  }
  0x16   : > { %s1790_s20 = sadd.s32 4294967294, %s2392_s18   ;;  %p98_p0 = scmp.ne.s32.totalorder %s2376_s30, %s2372_s29 }
  0x17   : > { %p3004_p1 = scmp.eq.s32.totalorder %s2519_s19, 0  ;;  %p368_p3 = scmp.eq.s32.totalorder %s1790_s20, 1 }
  0x18   : > { %p1791_p5 = scmp.ge.s32.totalorder %s2392_s18, 1  ;;  %p403_p7 = scmp.lt.s32.totalorder %s2392_s18, 3 }
  0x19   : > { %p2528_p4 = por %p3004_p1, %p98_p0  ;;  %p2533_p6 = por %p368_p3, %p98_p0 }
  0x1a   : > { %p2538_p8 = pnand %p1791_p5, %p403_p7  ;;  %s2394_s24 = smov [#allocation11]  }
  0x1b   : > { %s3020_s21 = scalar_select %p2528_p4, 1, 0 }
  0x1c   : > { %s3021_s22 = scalar_select %p2533_p6, 1, 0 }
  0x1d   : > { %s3023_s23 = scalar_select %p2538_p8, 1, 0 }
  0x1e   : > { %3022 = sst [smem:[#allocation24_spill]] %s3021_s22  ;;  %s421_s25 = sshll.u32 %s2394_s24, 4  ;;  %s2542_s25 = int_to_ptr.vmem [resolvable:$true] %s421_s25 }
  0x1f   : > { %p2017_p9 = pneg %p2538_p8  ;;  %s2395_s27 = smov [#allocation12]  }
  0x20   : > { %s434_s28 = sshll.u32 %s2395_s27, 4  ;;  %s3025_s5 = sld [smem:[#allocation27_spill]]  ;;  %s2553_s28 = int_to_ptr.vmem [resolvable:$true] %s434_s28 }
  0x21   : > { %p2549_p11 = pnand %p2017_p9, %p3004_p1 }
  0x23   : > { %p2152_p13 = pneg %p2549_p11 }
  0x26   : > { %s2150_s24 = scalar_lea.hbm %s3025_s5, 256 }
  0x27   : > { %p2151_p12 = scmp.ne.s32.totalorder %s3025_s5, %s2150_s24  ;;  %p2157_p5 = scmp.lt.u32.totalorder %s2150_s24, %s3025_s5 }
  0x29   : > { %p2153_p0 = pnand %p2152_p13, %p2151_p12 }
  0x2b   : > { %p2154_p3 = pneg %p2153_p0 }
  0x2d   : > { %p2159_p7 = pnand %p2157_p5, %p2154_p3 }
  0x2f   : > { %2162 = shalt.err (!%p2159_p7)
}
  0x30   : > { %s2163_s22 = scalar_lea.vmem %s2542_s25, 256  ;;  %p2171_p2 = scmp.lt.s32.totalorder %s2542_s25, %s2542_s25 }
  0x31   : > { %p2164_p9 = scmp.ne.s32.totalorder %s2542_s25, %s2163_s22  ;;  %p2172_p12 = scmp.lt.s32.totalorder %s2163_s22, %s2163_s22 }
  0x33   : > { %p2166_p10 = pnand %p2164_p9, %p2152_p13  ;;  %p2173_p0 = por %p2172_p12, %p2171_p2 }
  0x35   : > { %p2167_p1 = pneg %p2166_p10 }
  0x37   : > { %p2174_p6 = pnand %p2173_p0, %p2167_p1 }
  0x39   : > { %2177 = shalt.err (!%p2174_p6)
}
  0x3a   : > { %s2396_s11 = smov 64   ;;  %s2397_s12 = smov 4  }
  0x3b   : > { %2020 = dma.hbm_to_vmem [thread:$0]  (!%p2549_p11), %s3025_s5, 256, %s2542_s25, [#allocation10], %s2396_s11, %s2396_s11, %s2397_s12  }
  0x3c   : > { %s3026_s6 = sld [smem:[#allocation28_spill]] }
  0x42   : > { %s2178_s24 = scalar_lea.hbm %s3026_s6, 256 }
  0x43   : > { %p2179_p2 = scmp.ne.s32.totalorder %s3026_s6, %s2178_s24  ;;  %p2185_p10 = scmp.lt.u32.totalorder %s2178_s24, %s3026_s6 }
  0x45   : > { %p2181_p1 = pnand %p2179_p2, %p2152_p13 }
  0x47   : > { %p2182_p6 = pneg %p2181_p1 }
  0x49   : > { %p2187_p3 = pnand %p2185_p10, %p2182_p6 }
  0x4b   : > { %2190 = shalt.err (!%p2187_p3)
}
  0x4c   : > { %s2191_s25 = scalar_lea.vmem %s2553_s28, 256  ;;  %p2199_p12 = scmp.lt.s32.totalorder %s2553_s28, %s2553_s28 }
  0x4d   : > { %p2192_p5 = scmp.ne.s32.totalorder %s2553_s28, %s2191_s25  ;;  %p2200_p0 = scmp.lt.s32.totalorder %s2191_s25, %s2191_s25 }
  0x4f   : > { %p2194_p7 = pnand %p2192_p5, %p2152_p13  ;;  %p2201_p2 = por %p2200_p0, %p2199_p12 }
  0x51   : > { %p2195_p9 = pneg %p2194_p7 }
  0x53   : > { %p2202_p1 = pnand %p2201_p2, %p2195_p9 }
  0x55   : > { %2205 = shalt.err (!%p2202_p1)
}
  0x56   : > { %2023 = dma.hbm_to_vmem [thread:$0]  (!%p2549_p11), %s3026_s6, 256, %s2553_s28, [#allocation13], %s2396_s11, %s2396_s11, %s2397_s12  }
  0x57   : > { %s50_s14 = sadd.s32 1, %s2388_s17  ;;  %s85_s13 = sadd.s32 1, %s2380_s15 }
  0x58   : > { %p52_p13 = scmp.ge.s32.totalorder %s50_s14, 2  ;;  %p92_p6 = scmp.ne.s32.totalorder %s2380_s15, %s2376_s30 }
  0x59   : > { %p93_p10 = scmp.eq.s32.totalorder %s2392_s18, 0  ;;  %p2040_p3 = scmp.lt.s32.totalorder %s2392_s18, 2 }
  0x5a   : > { %s3060_s14 = smov (%p52_p13, %s50_s14), 0  ;;  %p3028_p7 = scmp.eq.s32.totalorder %s2519_s19, 1 }
  0x5b   : > { %3027 = sst [smem:[#allocation25_spill]] %s3060_s14  ;;  %p94_p5 = por %p93_p10, %p92_p6 }
  0x5c   : > { %p2617_p9 = por %p3028_p7, %p92_p6  ;;  %s82_s29 = ssub.s32 %s2388_s17, %s3060_s14 }
  0x5d   : > { %s2624_s27 = sand.u32 1, %s2380_s15   ;;  %p83_p11 = scmp.eq.s32.totalorder %s82_s29, 0 }
  0x5e   : > { %s3029_s26 = scalar_select %p2617_p9, 1, 0 }
  0x5f   : > { %s1795_s28 = sshll.u32 %s2624_s27, 2  ;;  %s1796_s11 = sshll.u32 %s2388_s17, 6 }
  0x60   : > { %s2629_s12 = scalar_select %p83_p11, %s2380_s15, %s85_s13  }
  0x61   : > { %s3030_s1 = sld [smem:[#allocation26_spill]]  ;;  %s480_s25 = scalar_lea.vmem [#allocation6], %s1795_s28 }
  0x62   : > { %s487_s7 = sshll.u32 %s480_s25, 4  ;;  %p2638_p12 = pnand %p2040_p3, %p94_p5  ;;  %s2642_s7 = int_to_ptr.vmem [resolvable:$true] %s487_s7 }
  0x63   : > { %s477_s29 = scalar_lea.sflag [#allocation7], %s2624_s27 }
  0x64   : > { %p2208_p2 = pneg %p2638_p12 }
  0x67   : > { %s2634_s22 = scalar_lea.hbm %s3030_s1, %s1796_s11  ;;  %s2211_s24 = scalar_lea.hbm %s3030_s1, 128 }
  0x68   : > { %s2206_s20 = scalar_lea.hbm %s2634_s22, 64  ;;  %p2212_p6 = scmp.lt.u32.totalorder %s2634_s22, %s3030_s1 }
  0x69   : > { %p2207_p0 = scmp.ne.s32.totalorder %s2634_s22, %s2206_s20  ;;  %p2213_p10 = scmp.lt.u32.totalorder %s2211_s24, %s2206_s20 }
  0x6a   : > { %p2215_p5 = scmp.lt.u32.totalorder %s2206_s20, %s2634_s22 }
  0x6b   : > { %p2209_p1 = pnand %p2208_p2, %p2207_p0  ;;  %p2214_p3 = por %p2213_p10, %p2212_p6 }
  0x6d   : > { %p2210_p13 = pneg %p2209_p1  ;;  %p2216_p7 = por %p2215_p5, %p2214_p3 }
  0x6f   : > { %p2217_p11 = pnand %p2216_p7, %p2210_p13 }
  0x71   : > { %2220 = shalt.err (!%p2217_p11)
}
  0x72   : > { %s2221_s13 = scalar_lea.vmem %s2642_s7, 64  ;;  %s2398_s28 = smov [#allocation6]  }
  0x73   : > { %p2222_p0 = scmp.ne.s32.totalorder %s2642_s7, %s2221_s13  ;;  %s2226_s11 = sshll.u32 %s2398_s28, 4  ;;  %s2227_s11 = int_to_ptr.vmem [resolvable:$false] %s2226_s11 }
  0x74   : > { %s2228_s5 = scalar_lea.vmem %s2227_s11, 128  ;;  %p2229_p4 = scmp.lt.s32.totalorder %s2642_s7, %s2227_s11 }
  0x75   : > { %p2224_p1 = pnand %p2222_p0, %p2208_p2  ;;  %p2230_p6 = scmp.lt.s32.totalorder %s2228_s5, %s2221_s13 }
  0x77   : > { %p2225_p9 = pneg %p2224_p1  ;;  %p2231_p10 = por %p2230_p6, %p2229_p4 }
  0x79   : > { %p2232_p3 = pnand %p2231_p10, %p2225_p9 }
  0x7b   : > { %2235 = shalt.err (!%p2232_p3)
}
  0x7c   : > { %2027 = dma.hbm_to_vmem [thread:$0]  (!%p2638_p12), %s2634_s22, 64, %s2642_s7, %s477_s29  }
  0x7d   : > { %s1797_s20 = sshll.u32 %s2624_s27, 1  ;;  %s1798_s24 = sshll.u32 %s2388_s17, 5 }
  0x7e   : > { %s2676_s1 = scalar_lea.hbm %s2988_s2, %s1798_s24  ;;  %s498_s13 = scalar_lea.vmem [#allocation9], %s1797_s20 }
  0x7f   : > { %s506_s11 = sshll.u32 %s498_s13, 4  ;;  %s3032_s5 = sand.u32 1, %s2392_s18   ;;  %s507_s11 = int_to_ptr.vmem [resolvable:$true] %s506_s11 }
  0x80   : > { %s495_s6 = scalar_lea.sflag [#allocation10], %s3032_s5  ;;  %s2236_s14 = scalar_lea.hbm %s2676_s1, 32 }
  0x81   : > { %p2237_p4 = scmp.ne.s32.totalorder %s2676_s1, %s2236_s14  ;;  %s2241_s7 = scalar_lea.hbm %s2988_s2, 64 }
  0x82   : > { %p2242_p5 = scmp.lt.u32.totalorder %s2676_s1, %s2988_s2  ;;  %p2243_p7 = scmp.lt.u32.totalorder %s2241_s7, %s2236_s14 }
  0x83   : > { %p2239_p9 = pnand %p2237_p4, %p2208_p2  ;;  %p2245_p0 = scmp.lt.u32.totalorder %s2236_s14, %s2676_s1 }
  0x84   : > { %p2244_p11 = por %p2243_p7, %p2242_p5 }
  0x85   : > { %p2240_p13 = pneg %p2239_p9 }
  0x86   : > { %p2246_p1 = por %p2245_p0, %p2244_p11 }
  0x88   : > { %p2247_p6 = pnand %p2246_p1, %p2240_p13 }
  0x8a   : > { %2250 = shalt.err (!%p2247_p6)
}
  0x8b   : > { %s2251_s20 = scalar_lea.vmem %s507_s11, 32  ;;  %s2399_s25 = smov [#allocation9]  }
  0x8c   : > { %p2252_p10 = scmp.ne.s32.totalorder %s507_s11, %s2251_s20  ;;  %s2256_s28 = sshll.u32 %s2399_s25, 4  ;;  %s2257_s28 = int_to_ptr.vmem [resolvable:$false] %s2256_s28 }
  0x8d   : > { %s2258_s13 = scalar_lea.vmem %s2257_s28, 64  ;;  %p2259_p9 = scmp.lt.s32.totalorder %s507_s11, %s2257_s28 }
  0x8e   : > { %p2254_p3 = pnand %p2252_p10, %p2208_p2  ;;  %p2260_p8 = scmp.lt.s32.totalorder %s2258_s13, %s2251_s20 }
  0x90   : > { %p2255_p4 = pneg %p2254_p3  ;;  %p2261_p5 = por %p2260_p8, %p2259_p9 }
  0x92   : > { %p2262_p7 = pnand %p2261_p5, %p2255_p4 }
  0x94   : > { %2265 = shalt.err (!%p2262_p7)
}
  0x95   : > { %2030 = dma.hbm_to_vmem [thread:$0]  (!%p2638_p12), %s2676_s1, 32, %s507_s11, %s495_s6  }
  0x96   : > { %p3033_p13 = scmp.ne.s32.totalorder %s3023_s23, 0 }
  0x97   : > { %s2702_s14 = sand.u32 (!%p3033_p13), 1, %s2376_s30   ;;  %p3034_p2 = scmp.ne.s32.totalorder (!%p3033_p13), %s3020_s21, 0 }
  0x98   : > { %515 = sbr.rel (%p3033_p13) target bundleno = 2695 (0xa87), region = 72  ;;  %s1800_s5 = sshll.u32 (!%p3033_p13), %s2702_s14, 2 }
  0x99   : > { %s518_s27 = scalar_lea.sflag (!%p3033_p13), [#allocation7], %s2702_s14  ;;  %s521_s22 = scalar_lea.vmem (!%p3033_p13), [#allocation6], %s1800_s5 }
  0x9f   : > { %2347 = dma.done.wait (%p3034_p2), %s518_s27, 64  }
  0xa0   : > { %2349 = vsyncadd (%p3034_p2), %s518_s27, 4294967232  ;;  %s526_s1 = sand.u32 1, %s2519_s19   ;;  %s1801_s6 = sshll.u32 %s2702_s14, 1 }
  0xa1   : > { %s527_s23 = scalar_lea.sflag [#allocation10], %s526_s1  ;;  %s2712_s8 = scalar_lea.vmem [#allocation9], %s1801_s6 }
  0xa2   : > { %2351 = dma.done.wait (%p3034_p2), %s527_s23, 32  }
  0xa3   : > { %2353 = vsyncadd (%p3034_p2), %s527_s23, 4294967264  ;;  %p3035_p8 = scmp.eq.s32.totalorder %s2519_s19, 0 }
  0xa5   : > { %2355 = dma.done.wait (%p3035_p8), [#allocation10], 256   ;;  %p3036_p12 = pmov %p3035_p8 }
  0xa6   : > { %p3037_p11 = pmov %p3035_p8 }
  0xa7   : > { %2357 = vsyncadd (%p3036_p12), [#allocation10], 4294967040 }
  0xa8   : > { %2359 = dma.done.wait (%p3037_p11), [#allocation13], 256   ;;  %p3038_p0 = pmov %p3035_p8 }
  0xa9   : > { %v2400_v0 = vmov 0.0   ;;  %vm2401_vm0 = vmmov 0   ;;  %p600_p1 = scmp.lt.s32.totalorder %s2384_s16, 1  ;;  %v2107_v1 = vld [vmem:[%s2990_s4] sm:$0xff]   ;;  %v2108_v2 = vld [vmem:[%s2990_s4 + $0x8] sm:$0xff]   ;;  %vm631_vm1 = vcmask 261120  }
  0xaa   : > { %2361 = vsyncadd (%p3038_p0), [#allocation13], 4294967040  ;;  %1901 = vmatprep.subr.bf16.mxu0 %v2400_v0  ;;  %1905 = vmatprep.mubr.msk.bf16.mxu0 %vm2401_vm0, %v2400_v0  ;;  %v614_v3 = vld [vmem:[%s521_s22] sm:$0xf]  ;;  %v2109_v4 = vld [vmem:[%s2989_s3] sm:$0xff]   ;;  %vm676_vm2 = vcmask 257024  }
  0xab   : > { %1909 = vmatprep.subr.bf16.mxu1 %v2400_v0  ;;  %1913 = vmatprep.mubr.msk.bf16.mxu1 %vm2401_vm0, %v2400_v0  ;;  %s601_s21 = scalar_select %p600_p1, %s2384_s16, 1  ;;  %v2111_v5 = vld [vmem:[#allocation11] sm:$0xff]   ;;  %v2110_v6 = vld [vmem:[%s2989_s3 + $0x8] sm:$0xff]   ;;  %vm806_vm3 = vcmask 64512   ;;  %vm874_vm4 = vcmask 1043456   ;;  %v2405_v46 = vmov 0  }
  0xac   : > { %1902 = vmatpush3.bf16.msra.mxu0 %v2107_v1  ;;  %1910 = vmatpush3.bf16.msra.mxu1 %v2111_v5  ;;  %v2112_v9 = vld [vmem:[#allocation11 + $0x8] sm:$0xff]   ;;  %s2402_s22 = smov 112   ;;  %s2403_s6 = smov 120   ;;  %v801_v45 = vld [vmem:[%s2712_s8] sm:$0x3]  ;;  %vm869_vm7 = vcmask 60416  }
  0xad   : > { %s1806_s24 = sshll.u32 %s601_s21, 3  ;;  %1903 = vmatprep.subr.bf16.mxu0 %v2400_v0  ;;  %1911 = vmatprep.subr.bf16.mxu1 %v2400_v0  ;;  %s2404_s23 = smov 104   ;;  %vm802_vm5 = vnez %v801_v45  ;;  %vm1052_vm8 = vcmask 126016   ;;  %vm1186_vm9 = vcmask 191616   ;;  %vm1320_vm10 = vcmask 257216  }
  0xae   : > { %s606_s5 = scalar_lea.vmem %s2986_s0, %s1806_s24  ;;  %v853_v47 = vsel %vm802_vm5, 16843009, %v2405_v46  ;;  %s1805_s8 = sshll.u32 %s2702_s14, 4  ;;  %vm1507_vm11 = vcmask 523264  }
  0xaf   : > { %v2751_v7 = vld [vmem:[%s606_s5] sm:$0xff]  ;;  %v854_v48 = vunpack.c.0.s8 %v853_v47  ;;  %s2826_s21 = scalar_lea.vmem [#allocation15], %s1805_s8  ;;  %s2406_s11 = smov 8  }
  0xb0   : > { %1904 = vmatpush3.bf16.msra.mxu0 %v2108_v2  ;;  %v737_v8 = vpack.c.bf16 %v2751_v7, %v2751_v7  ;;  %1912 = vmatpush3.bf16.msra.mxu1 %v2112_v9  ;;  %s2407_s7 = smov 16   ;;  %s2408_s19 = smov 24  }
  0xb1   : > { %1917 = vmatprep.subr.bf16.mxu0 %v2400_v0  ;;  %1925 = vmatprep.subr.bf16.mxu1 %v2400_v0  ;;  %vm2800_vm6 = vcmp.ne.s32.totalorder %v854_v48, 0  ;;  %s3041_s8 = sld [smem:[#allocation29_spill]]  ;;  %s1864_s20 = sshll.u32 %s2384_s16, 8 }
  0xb2   : > { %s1615_s25 = sshll.u32 %s2826_s21, 4  ;;  %s3043_s5 = sld [smem:[#allocation34_spill]]  ;;  %s2899_s25 = int_to_ptr.vmem [resolvable:$true] %s1615_s25 }
  0xb3   : > { %1906 = vmatmul.mubr.msk.bf16.vlgmr.msra.gmra.mrb[0].mxu0 %vm631_vm1, %v614_v3  ;;  %1914 = vmatmul.mubr.msk.bf16.vlgmr.msra.gmra.mrb[0].mxu1 %vm631_vm1, %v614_v3  ;;  %s1587_s1 = scalar_lea.sflag [#allocation16], %s2702_s14  ;;  %p3044_p10 = scmp.ne.s32.totalorder %s3029_s26, 0 }
  0xb4   : > { %1918 = vmatpush3.bf16.msra.mxu0 %v2109_v4  ;;  %1921 = vmatprep.mubr.msk.bf16.mxu0 %vm2401_vm0, %v2400_v0 }
  0xb5   : > { %1919 = vmatprep.subr.bf16.mxu0 %v2400_v0  ;;  %1927 = vmatprep.mubr.msk.bf16.mxu1 %vm2401_vm0, %v2400_v0 }
  0xb8   : > { %1920 = vmatpush3.bf16.msra.mxu0 %v2110_v6  ;;  %s2897_s27 = scalar_lea.hbm %s3043_s5, %s1864_s20 }
  0xb9   : > { %1931 = vmatprep.subr.bf16.mxu0 %v2400_v0 }
  0xbb   : > { %1922 = vmatmul.mubr.msk.bf16.vlgmr.msra.gmra.mrb[4].mxu0 %vm631_vm1, %v737_v8 }
  0xbc   : > { %1933 = vmatprep.mubr.msk.bf16.mxu0 %vm2401_vm0, %v2400_v0 }
 0x186   : > { %v669_v10 = vpop.f32.mrb[0].mxu0  ;;  %v728_v29 = vpop.f32.mrb[0].mxu1 }
 0x187   : > { %v675_v11 = vpack.c.bf16 %v669_v10, %v669_v10  ;;  %v1907_v12 = vpop.f32.mrb[1].mxu0  ;;  %v734_v30 = vpack.c.bf16 %v728_v29, %v728_v29  ;;  %v1915_v31 = vpop.f32.mrb[1].mxu1 }
 0x188   : > { %v672_v13 = vpop.f32.mrb[2].mxu0  ;;  %v731_v32 = vpop.f32.mrb[2].mxu1 }
 0x189   : > { %677 = vst.msk [vmem:[#allocation2] sm:$0xf] %vm676_vm2, %v675_v11  ;;  %v1908_v14 = vpop.f32.mrb[3].mxu0  ;;  %735 = vst.msk [vmem:[#allocation3] sm:$0xf] %vm676_vm2, %v734_v30  ;;  %v1916_v33 = vpop.f32.mrb[3].mxu1 }
 0x18e   : > { %v792_v15 = vpop.f32.mrb[4].mxu0 }
 0x18f   : > { %v798_v16 = vpack.c.bf16 %v792_v15, %v792_v15  ;;  %v1923_v17 = vpop.f32.mrb[5].mxu0 }
 0x190   : > { %v795_v18 = vpop.f32.mrb[6].mxu0  ;;  %v804_v19 = vld [vmem:[#allocation2] sm:$0xf]  ;;  %v805_v34 = vld [vmem:[#allocation3] sm:$0xf] }
 0x191   : > { %800 = vst.msk [vmem:[#allocation4] sm:$0xf] %vm676_vm2, %v798_v16  ;;  %v1924_v20 = vpop.f32.mrb[7].mxu0  ;;  %v811_v21 = vsel %vm806_vm3, %v804_v19, 0  ;;  %v2113_v22 = vld [vmem:[#allocation2] ss:$0 sps:$4 sm:$0xff]  }
 0x192   : > { %1926 = vmatpush3.bf16.xpose.msra.mxu1 %v811_v21  ;;  %v2114_v23 = vld [vmem:[#allocation2] ss:$0 sps:$4 sm:$0xff]   ;;  %1065 = vrot.lane.b32.xlu1 %v2113_v22, %s2402_s22  ;;  %v876_v35 = vsel %vm874_vm4, %v805_v34, 0  ;;  %v2119_v17 = vld [vmem:[#allocation3] ss:$0 sps:$4 sm:$0xff]  }
 0x193   : > { %1937 = vmatprep.subr.bf16.mxu1 %v2400_v0  ;;  %931 = vrot.lane.b32.xlu0 %v2114_v23, %s2403_s6  ;;  %v2118_v28 = vld [vmem:[#allocation2] ss:$0 sps:$4 sm:$0xff]   ;;  %v2120_v34 = vld [vmem:[#allocation3] ss:$0 sps:$4 sm:$0xff]  }
 0x194   : > { %1932 = vmatpush3.bf16.msra.mxu0 %v876_v35 }
 0x195   : > { %1943 = vmatprep.subr.bf16.mxu0 %v2400_v0 }
 0x198   : > { %v803_v24 = vld [vmem:[#allocation4] sm:$0xf] }
 0x199   : > { %v2115_v25 = vld [vmem:[#allocation4] ss:$0 sps:$4 sm:$0xff]   ;;  %1928 = vmatmul.mubr.msk.bf16.vlgmr.msra.gmra.mrb[4].mxu1 %vm806_vm3, %v803_v24 }
 0x19a   : > { %v2116_v26 = vld [vmem:[#allocation4] ss:$0 sps:$4 sm:$0xff]   ;;  %1060 = vrot.lane.b32.xlu1 %v2115_v25, %s2402_s22  ;;  %1939 = vmatprep.mubr.msk.bf16.mxu1 %vm2401_vm0, %v2400_v0 }
 0x19b   : > { %926 = vrot.lane.b32.xlu0 %v2116_v26, %s2403_s6  ;;  %v2117_v27 = vld [vmem:[#allocation4] ss:$0 sps:$4 sm:$0xff]  }
 0x19e   : > { %1194 = vrot.lane.b32.xlu1 %v2117_v27, %s2404_s23 }
 0x19f   : > { %1199 = vrot.lane.b32.xlu0 %v2118_v28, %s2404_s23 }
 0x204   : > { %v1066_v38 = vpop.permute.xlu1 %1065 }
 0x205   : > { %v932_v36 = vpop.permute.xlu0 %931  ;;  %v1071_v40 = vsel %vm806_vm3, %v1066_v38, 0  ;;  %v2121_v38 = vld [vmem:[#allocation3] ss:$0 sps:$4 sm:$0xff]  }
 0x206   : > { %v937_v37 = vsel %vm806_vm3, %v932_v36, 0 }
 0x207   : > { %1938 = vmatpush3.bf16.xpose.msra.mxu1 %v937_v37 }
 0x208   : > { %1949 = vmatprep.subr.bf16.mxu1 %v2400_v0 }
 0x20c   : > { %v1061_v42 = vpop.permute.xlu1 %1060 }
 0x20d   : > { %v927_v39 = vpop.permute.xlu0 %926 }
 0x20e   : > { %1940 = vmatmul.mubr.msk.bf16.vlgmr.msra.gmra.mrb[8].mxu1 %vm806_vm3, %v927_v39 }
 0x20f   : > { %1950 = vmatpush3.bf16.xpose.msra.mxu1 %v1071_v40  ;;  %1951 = vmatprep.mubr.msk.bf16.mxu1 %vm2401_vm0, %v2400_v0 }
 0x210   : > { %1961 = vmatprep.subr.bf16.mxu1 %v2400_v0  ;;  %v1195_v44 = vpop.permute.xlu1 %1194 }
 0x211   : > { %v1200_v41 = vpop.permute.xlu0 %1199 }
 0x212   : > { %v1205_v43 = vsel %vm806_vm3, %v1200_v41, 0 }
 0x216   : > { %1952 = vmatmul.mubr.msk.bf16.vlgmr.msra.gmra.mrb[12].mxu1 %vm806_vm3, %v1061_v42 }
 0x217   : > { %1962 = vmatpush3.bf16.xpose.msra.mxu1 %v1205_v43  ;;  %1963 = vmatprep.mubr.msk.bf16.mxu1 %vm2401_vm0, %v2400_v0 }
 0x218   : > { %1973 = vmatprep.subr.bf16.mxu1 %v2400_v0 }
 0x21e   : > { %1964 = vmatmul.mubr.msk.bf16.vlgmr.msra.gmra.mrb[16].mxu1 %vm806_vm3, %v1195_v44 }
 0x21f   : > { %1977 = vmatprep.mubr.msk.bf16.mxu1 %vm2401_vm0, %v2400_v0 }
 0x26c   : > { %v847_v50 = vpop.f32.mrb[4].mxu1 }
 0x26d   : > { %v856_v51 = vsel %vm2800_vm6, -1e+09, %v847_v50  ;;  %v1929_v52 = vpop.f32.mrb[5].mxu1 }
 0x26e   : > { %v850_v53 = vpop.f32.mrb[6].mxu1  ;;  %v857_v54 = vsel %vm806_vm3, %v856_v51, -inf }
 0x26f   : > { %858 = vmax.xlane.f32.xlu0 %v857_v54  ;;  %v1930_v55 = vpop.f32.mrb[7].mxu1 }
 0x2e1   : > { %v973_v56 = vpop.f32.mrb[8].mxu1 }
 0x2e2   : > { %v979_v57 = vsel %vm2800_vm6, -1e+09, %v973_v56  ;;  %v1941_v58 = vpop.f32.mrb[9].mxu1 }
 0x2e3   : > { %v976_v59 = vpop.f32.mrb[10].mxu1  ;;  %v980_v60 = vsel %vm806_vm3, %v979_v57, -inf }
 0x2e4   : > { %981 = vmax.xlane.f32.xlu1 %v980_v60  ;;  %v1942_v61 = vpop.f32.mrb[11].mxu1 }
 0x2e9   : > { %v1107_v62 = vpop.f32.mrb[12].mxu1 }
 0x2ea   : > { %v1113_v63 = vsel %vm2800_vm6, -1e+09, %v1107_v62  ;;  %v1953_v1 = vpop.f32.mrb[13].mxu1 }
 0x2eb   : > { %v1110_v2 = vpop.f32.mrb[14].mxu1  ;;  %v1114_v3 = vsel %vm806_vm3, %v1113_v63, -inf }
 0x2ec   : > { %1115 = vmax.xlane.f32.xlu0 %v1114_v3  ;;  %v1954_v4 = vpop.f32.mrb[15].mxu1 }
 0x2ed   : > { %v2122_v4 = vld [vmem:[#allocation12] sm:$0xff]  }
 0x2ee   : > { %1974 = vmatpush3.bf16.msra.mxu1 %v2122_v4 }
 0x2ef   : > { %1975 = vmatprep.subr.bf16.mxu1 %v2400_v0 }
 0x2f1   : > { %v1241_v5 = vpop.f32.mrb[16].mxu1 }
 0x2f2   : > { %v1247_v6 = vsel %vm2800_vm6, -1e+09, %v1241_v5  ;;  %v1965_v8 = vpop.f32.mrb[17].mxu1  ;;  %v2123_v5 = vld [vmem:[#allocation12 + $0x8] sm:$0xff]  }
 0x2f3   : > { %v1244_v9 = vpop.f32.mrb[18].mxu1  ;;  %v1248_v10 = vsel %vm806_vm3, %v1247_v6, -inf  ;;  %1976 = vmatpush3.bf16.msra.mxu1 %v2123_v5 }
 0x2f4   : > { %1249 = vmax.xlane.f32.xlu0 %v1248_v10  ;;  %v1966_v11 = vpop.f32.mrb[19].mxu1  ;;  %1989 = vmatprep.subr.bf16.mxu1 %v2400_v0 }
 0x2fc   : > { %v859_v12 = vpop.xlane.xlu0 %858 }
 0x2fd   : > { %v860_v13 = vsub.f32 %v856_v51, %v859_v12 }
 0x2ff   : > { %v861_v14 = vmul.f32 1.442695, %v860_v13 }
 0x301   : > { %2130 = vpow2.f32 %v861_v14 }
 0x30b   : > { %v2131_v15 = vpop.eup %2130 }
 0x30c   : > { %v863_v16 = vsel %vm806_vm3, %v2131_v15, 0.0 }
 0x30d   : > { %864 = vadd.xlane.f32.xlu1 %v863_v16 }
 0x31e   : > { %997 = vrot.lane.b32.xlu1 %v2119_v17, %s2403_s6  ;;  %s2409_s6 = smov [#allocation15]  }
 0x371   : > { %v982_v18 = vpop.xlane.xlu1 %981 }
 0x372   : > { %v983_v19 = vsub.f32 %v979_v57, %v982_v18 }
 0x374   : > { %v984_v20 = vmul.f32 1.442695, %v983_v19 }
 0x376   : > { %2132 = vpow2.f32 %v984_v20 }
 0x379   : > { %v1116_v21 = vpop.xlane.xlu0 %1115 }
 0x37a   : > { %v1117_v22 = vsub.f32 %v1113_v63, %v1116_v21 }
 0x37c   : > { %v1118_v23 = vmul.f32 1.442695, %v1117_v22 }
 0x37e   : > { %2134 = vpow2.f32 %v1118_v23 }
 0x380   : > { %v2133_v24 = vpop.eup %2132 }
 0x381   : > { %v1250_v25 = vpop.xlane.xlu0 %1249  ;;  %v986_v26 = vsel %vm806_vm3, %v2133_v24, 0.0 }
 0x382   : > { %v1251_v27 = vsub.f32 %v1247_v6, %v1250_v25  ;;  %987 = vadd.xlane.f32.xlu0 %v986_v26 }
 0x384   : > { %v1252_v28 = vmul.f32 1.442695, %v1251_v27 }
 0x386   : > { %2136 = vpow2.f32 %v1252_v28 }
 0x388   : > { %v2135_v29 = vpop.eup %2134 }
 0x389   : > { %v1120_v30 = vsel %vm806_vm3, %v2135_v29, 0.0 }
 0x38a   : > { %1121 = vadd.xlane.f32.xlu1 %v1120_v30 }
 0x390   : > { %v2137_v31 = vpop.eup %2136 }
 0x391   : > { %v1254_v32 = vsel %vm806_vm3, %v2137_v31, 0.0 }
 0x392   : > { %1255 = vadd.xlane.f32.xlu0 %v1254_v32  ;;  %v2124_v32 = vld [vmem:[%s2995_s9] sm:$0xff]  }
 0x39a   : > { %v865_v33 = vpop.xlane.xlu1 %864 }
 0x39b   : > { %2138 = vrcp.f32 %v865_v33  ;;  %1265 = vrot.lane.b32.xlu1 %v2120_v34, %s2404_s23  ;;  %v2126_v33 = vld [vmem:[%s2996_s10] sm:$0xff]   ;;  %v2127_v34 = vld [vmem:[%s2996_s10 + $0x8] sm:$0xff]   ;;  %s2270_s23 = sshll.u32 %s2409_s6, 4  ;;  %s2271_s23 = int_to_ptr.vmem [resolvable:$false] %s2270_s23 }
 0x39c   : > { %p2273_p9 = scmp.lt.s32.totalorder %s2899_s25, %s2271_s23 }
 0x39e   : > { %v998_v37 = vpop.permute.xlu1 %997 }
 0x39f   : > { %v1003_v40 = vsel %vm874_vm4, %v998_v37, 0 }
 0x3a5   : > { %v2139_v35 = vpop.eup %2138 }
 0x3a6   : > { %v867_v36 = vmul.f32 %v2139_v35, %v2131_v15  ;;  %v2128_v35 = vld [vmem:[%s2996_s10 + $0x10] sm:$0xff]  }
 0x3a8   : > { %v868_v39 = vpack.c.bf16 %v867_v36, %v867_v36  ;;  %1131 = vrot.lane.b32.xlu0 %v2121_v38, %s2402_s22  ;;  %s2266_s22 = scalar_lea.vmem %s2899_s25, 256 }
 0x3a9   : > { %p2267_p6 = scmp.ne.s32.totalorder %s2899_s25, %s2266_s22 }
 0x3aa   : > { %1934 = vmatmul.mubr.msk.bf16.vlgmr.msra.gmra.mrb[8].mxu0 %vm806_vm3, %v868_v39  ;;  %870 = vst.msk [vmem:[%s2826_s21] sm:$0xf] %vm869_vm7, %v868_v39 }
 0x3ab   : > { %1944 = vmatpush3.bf16.msra.mxu0 %v1003_v40  ;;  %1945 = vmatprep.mubr.msk.bf16.mxu0 %vm2401_vm0, %v2400_v0  ;;  %v1842_v40 = vld [vmem:[%s3041_s8] ss:$0 sm:$0xff]  ;;  %p2268_p3 = pnand %p2267_p6, %p3044_p10 }
 0x3ac   : > { %1955 = vmatprep.subr.bf16.mxu0 %v2400_v0 }
 0x3ad   : > { %p2269_p4 = pneg %p2268_p3 }
 0x40f   : > { %v988_v41 = vpop.xlane.xlu0 %987 }
 0x410   : > { %2140 = vrcp.f32 %v988_v41 }
 0x417   : > { %v1122_v42 = vpop.xlane.xlu1 %1121 }
 0x418   : > { %2142 = vrcp.f32 %v1122_v42 }
 0x41a   : > { %v2141_v43 = vpop.eup %2140 }
 0x41b   : > { %v990_v44 = vmul.f32 %v2141_v43, %v2133_v24  ;;  %v1266_v51 = vpop.permute.xlu1 %1265 }
 0x41c   : > { %v1271_v53 = vsel %vm874_vm4, %v1266_v51, 0 }
 0x41d   : > { %v991_v45 = vpack.c.bf16 %v990_v44, %v990_v44 }
 0x41f   : > { %1946 = vmatmul.mubr.msk.bf16.vlgmr.msra.gmra.mrb[12].mxu0 %vm806_vm3, %v991_v45  ;;  %v1256_v46 = vpop.xlane.xlu0 %1255  ;;  %1821 = vst.msk [vmem:[%s2826_s21 + $0x4] sm:$0xf] %vm869_vm7, %v991_v45 }
 0x420   : > { %2144 = vrcp.f32 %v1256_v46  ;;  %1957 = vmatprep.mubr.msk.bf16.mxu0 %vm2401_vm0, %v2400_v0 }
 0x422   : > { %v2143_v47 = vpop.eup %2142 }
 0x423   : > { %v1124_v48 = vmul.f32 %v2143_v47, %v2135_v29  ;;  %v1132_v49 = vpop.permute.xlu0 %1131 }
 0x424   : > { %v1137_v50 = vsel %vm874_vm4, %v1132_v49, 0 }
 0x425   : > { %1956 = vmatpush3.bf16.msra.mxu0 %v1137_v50  ;;  %v1125_v52 = vpack.c.bf16 %v1124_v48, %v1124_v48 }
 0x426   : > { %1967 = vmatprep.subr.bf16.mxu0 %v2400_v0 }
 0x427   : > { %1828 = vst.msk [vmem:[%s2826_s21 + $0x8] sm:$0xf] %vm869_vm7, %v1125_v52 }
 0x428   : > { %1958 = vmatmul.mubr.msk.bf16.vlgmr.msra.gmra.mrb[16].mxu0 %vm806_vm3, %v1125_v52 }
 0x429   : > { %1968 = vmatpush3.bf16.msra.mxu0 %v1271_v53  ;;  %1969 = vmatprep.mubr.msk.bf16.mxu0 %vm2401_vm0, %v2400_v0 }
 0x42a   : > { %v2145_v54 = vpop.eup %2144  ;;  %1981 = vmatprep.subr.bf16.mxu0 %v2400_v0 }
 0x42b   : > { %v1258_v55 = vmul.f32 %v2145_v54, %v2137_v31 }
 0x42d   : > { %v1259_v56 = vpack.c.bf16 %v1258_v55, %v1258_v55 }
 0x42f   : > { %1835 = vst.msk [vmem:[%s2826_s21 + $0xc] sm:$0xf] %vm869_vm7, %v1259_v56  ;;  %s2272_s21 = scalar_lea.vmem %s2271_s23, 512 }
 0x430   : > { %1970 = vmatmul.mubr.msk.bf16.vlgmr.msra.gmra.mrb[20].mxu0 %vm806_vm3, %v1259_v56  ;;  %p2274_p5 = scmp.lt.s32.totalorder %s2272_s21, %s2266_s22 }
 0x431   : > { %1985 = vmatprep.mubr.msk.bf16.mxu0 %vm2401_vm0, %v2400_v0  ;;  %1982 = vmatpush3.bf16.msra.mxu0 %v2124_v32 }
 0x432   : > { %1983 = vmatprep.subr.bf16.mxu0 %v2400_v0  ;;  %p2275_p7 = por %p2274_p5, %p2273_p9 }
 0x434   : > { %p2276_p13 = pnand %p2275_p7, %p2269_p4 }
 0x47d   : > { %v912_v57 = vpop.f32.mrb[8].mxu0 }
 0x47e   : > { %v918_v58 = vpack.c.bf16 %v912_v57, %v912_v57  ;;  %v1935_v59 = vpop.f32.mrb[9].mxu0 }
 0x47f   : > { %v915_v60 = vpop.f32.mrb[10].mxu0 }
 0x480   : > { %919 = vst.msk [vmem:[#allocation5] sm:$0xf] %vm869_vm7, %v918_v58  ;;  %v1936_v61 = vpop.f32.mrb[11].mxu0 }
 0x4f2   : > { %v1039_v62 = vpop.f32.mrb[12].mxu0 }
 0x4f3   : > { %v1861_v63 = vpack.c.bf16 %v1039_v62, %v1039_v62  ;;  %v1947_v1 = vpop.f32.mrb[13].mxu0 }
 0x4f4   : > { %v1042_v2 = vpop.f32.mrb[14].mxu0 }
 0x4f5   : > { %1049 = vrot.lane.b32.xlu1 %v1861_v63, %s2406_s11  ;;  %v1948_v3 = vpop.f32.mrb[15].mxu0 }
 0x4fb   : > { %v1173_v6 = vpop.f32.mrb[16].mxu0 }
 0x4fc   : > { %v1862_v8 = vpack.c.bf16 %v1173_v6, %v1173_v6  ;;  %v1959_v9 = vpop.f32.mrb[17].mxu0 }
 0x4fd   : > { %v1176_v10 = vpop.f32.mrb[18].mxu0 }
 0x4fe   : > { %1183 = vrot.lane.b32.xlu0 %v1862_v8, %s2407_s7  ;;  %v1960_v11 = vpop.f32.mrb[19].mxu0 }
 0x503   : > { %v1307_v12 = vpop.f32.mrb[20].mxu0 }
 0x504   : > { %v1863_v13 = vpack.c.bf16 %v1307_v12, %v1307_v12  ;;  %v1971_v14 = vpop.f32.mrb[21].mxu0 }
 0x505   : > { %v1310_v15 = vpop.f32.mrb[22].mxu0 }
 0x506   : > { %1317 = vrot.lane.b32.xlu1 %v1863_v13, %s2408_s19  ;;  %v1972_v16 = vpop.f32.mrb[23].mxu0  ;;  %s3042_s19 = sld [smem:[#allocation30_spill]] }
 0x50c   : > { %v1843_v42 = vld [vmem:[%s3042_s19] ss:$0 sm:$0xff] }
 0x567   : > { %v1050_v17 = vpop.permute.xlu1 %1049 }
 0x568   : > { %1053 = vst.msk [vmem:[#allocation5] sm:$0xf] %vm1052_vm8, %v1050_v17 }
 0x570   : > { %v1184_v18 = vpop.permute.xlu0 %1183 }
 0x571   : > { %1187 = vst.msk [vmem:[#allocation5] sm:$0xf] %vm1186_vm9, %v1184_v18 }
 0x578   : > { %v1318_v19 = vpop.permute.xlu1 %1317 }
 0x579   : > { %1321 = vst.msk [vmem:[#allocation5] sm:$0xf] %vm1320_vm10, %v1318_v19 }
 0x580   : > { %v1322_v20 = vld [vmem:[#allocation5] sm:$0xf] }
 0x581   : > { %1978 = vmatmul.mubr.msk.bf16.vlgmr.msra.gmra.mrb[20].mxu1 %vm631_vm1, %v1322_v20 }
 0x582   : > { %1997 = vmatprep.mubr.msk.bf16.mxu1 %vm2401_vm0, %v2400_v0  ;;  %1990 = vmatpush3.bf16.msra.mxu1 %v2126_v33 }
 0x583   : > { %1991 = vmatprep.subr.bf16.mxu1 %v2400_v0 }
 0x586   : > { %1992 = vmatpush3.bf16.msra.mxu1 %v2127_v34 }
 0x587   : > { %1993 = vmatprep.subr.bf16.mxu1 %v2400_v0 }
 0x58a   : > { %1994 = vmatpush3.bf16.msra.mxu1 %v2128_v35 }
 0x58b   : > { %1995 = vmatprep.subr.bf16.mxu1 %v2400_v0  ;;  %v2129_v0 = vld [vmem:[%s2996_s10 + $0x18] sm:$0xff]  }
 0x58e   : > { %1996 = vmatpush3.bf16.msra.mxu1 %v2129_v0 }
 0x654   : > { %v1377_v21 = vpop.f32.mrb[20].mxu1 }
 0x655   : > { %v1378_v22 = vadd.f32 %v1377_v21, %v2751_v7  ;;  %v1979_v23 = vpop.f32.mrb[21].mxu1  ;;  %v2125_v7 = vld [vmem:[%s2995_s9 + $0x8] sm:$0xff]  }
 0x656   : > { %v1380_v24 = vpop.f32.mrb[22].mxu1  ;;  %1984 = vmatpush3.bf16.msra.mxu0 %v2125_v7 }
 0x657   : > { %v1980_v25 = vpop.f32.mrb[23].mxu1  ;;  %v1385_v26 = vsel %vm631_vm1, %v1378_v22, 0.0 }
 0x658   : > { %1386 = vadd.xlane.f32.xlu0 %v1385_v26 }
 0x6e5   : > { %v1387_v27 = vpop.xlane.xlu0 %1386 }
 0x6e6   : > { %v1389_v28 = vmul.f32 0.03125, %v1387_v27 }
 0x6e8   : > { %v1390_v29 = vsub.f32 %v1378_v22, %v1389_v28 }
 0x6ea   : > { %v1391_v30 = vmul.f32 %v1390_v29, %v1390_v29 }
 0x6ec   : > { %v1392_v31 = vsel %vm631_vm1, %v1391_v30, 0.0 }
 0x6ed   : > { %1393 = vadd.xlane.f32.xlu1 %v1392_v31 }
 0x77a   : > { %v1394_v36 = vpop.xlane.xlu1 %1393 }
 0x77b   : > { %v1395_v37 = vmul.f32 0.03125, %v1394_v36 }
 0x77d   : > { %v1396_v38 = vadd.f32 1e-05, %v1395_v37 }
 0x77f   : > { %2146 = vrsqrt.f32 %v1396_v38 }
 0x789   : > { %v2147_v39 = vpop.eup %2146 }
 0x78a   : > { %v1398_v41 = vmul.f32 %v2147_v39, %v1390_v29 }
 0x78c   : > { %v1405_v43 = vmul.f32 %v1842_v40, %v1398_v41 }
 0x78e   : > { %v1412_v44 = vadd.f32 %v1843_v42, %v1405_v43 }
 0x790   : > { %v1413_v45 = vpack.c.bf16 %v1412_v44, %v1412_v44 }
 0x792   : > { %1986 = vmatmul.mubr.msk.bf16.vlgmr.msra.gmra.mrb[24].mxu0 %vm631_vm1, %v1413_v45 }
 0x865   : > { %v1467_v46 = vpop.f32.mrb[24].mxu0 }
 0x866   : > { %v1473_v47 = vmax.f32 %v1467_v46, 0.0  ;;  %v1987_v48 = vpop.f32.mrb[25].mxu0 }
 0x867   : > { %v1470_v49 = vpop.f32.mrb[26].mxu0 }
 0x868   : > { %v1474_v50 = vpack.c.bf16 %v1473_v47, %v1473_v47  ;;  %v1988_v51 = vpop.f32.mrb[27].mxu0 }
 0x86a   : > { %1998 = vmatmul.mubr.msk.bf16.vlgmr.msra.gmra.mrb[24].mxu1 %vm1507_vm11, %v1474_v50 }
 0x93d   : > { %v1545_v52 = vpop.f32.mrb[24].mxu1 }
 0x93e   : > { %v1546_v53 = vadd.f32 %v1545_v52, %v1412_v44  ;;  %v1999_v54 = vpop.f32.mrb[25].mxu1 }
 0x93f   : > { %v1548_v55 = vpop.f32.mrb[26].mxu1 }
 0x940   : > { %v2000_v56 = vpop.f32.mrb[27].mxu1  ;;  %v1553_v57 = vsel %vm631_vm1, %v1546_v53, 0.0 }
 0x941   : > { %1554 = vadd.xlane.f32.xlu0 %v1553_v57 }
 0x9ce   : > { %v1555_v58 = vpop.xlane.xlu0 %1554 }
 0x9cf   : > { %v1556_v59 = vmul.f32 0.03125, %v1555_v58 }
 0x9d1   : > { %v1557_v60 = vsub.f32 %v1546_v53, %v1556_v59 }
 0x9d3   : > { %v1558_v61 = vmul.f32 %v1557_v60, %v1557_v60 }
 0x9d5   : > { %v1559_v62 = vsel %vm631_vm1, %v1558_v61, 0.0 }
 0x9d6   : > { %1560 = vadd.xlane.f32.xlu0 %v1559_v62 }
 0x9d7   : > { %2279 = shalt.err (!%p2276_p13)
}
 0x9d8   : > { %s2280_s8 = scalar_lea.hbm %s2897_s27, 256  ;;  %s2284_s19 = scalar_lea.hbm %s3043_s5, 512 }
 0x9d9   : > { %p2281_p2 = scmp.ne.s32.totalorder %s2897_s27, %s2280_s8  ;;  %p2285_p11 = scmp.lt.u32.totalorder %s2897_s27, %s3043_s5 }
 0x9da   : > { %p2286_p0 = scmp.lt.u32.totalorder %s2284_s19, %s2280_s8  ;;  %p2288_p6 = scmp.lt.u32.totalorder %s2280_s8, %s2897_s27 }
 0x9db   : > { %p2282_p8 = pnand %p2281_p2, %p3044_p10 }
 0x9dc   : > { %p2287_p1 = por %p2286_p0, %p2285_p11 }
 0x9dd   : > { %p2283_p12 = pneg %p2282_p8 }
 0x9de   : > { %p2289_p3 = por %p2288_p6, %p2287_p1 }
 0x9e0   : > { %p2290_p4 = pnand %p2289_p3, %p2283_p12 }
 0x9e2   : > { %2293 = shalt.err (!%p2290_p4)
}
 0x9e3   : > { %s2410_s20 = smov 64   ;;  %s2411_s28 = smov 4  }
 0x9e4   : > { %2014 = dma.vmem_to_hbm [thread:$0]  (%p3044_p10), %s2899_s25, 256, %s2897_s27, %s1587_s1, %s2410_s20, %s2410_s20, %s2411_s28  }
 0x9e5   : > { %s1804_s13 = sshll.u32 %s2702_s14, 3  ;;  %s3045_s23 = sld [smem:[#allocation31_spill]] }
 0x9e6   : > { %s3046_s11 = sld [smem:[#allocation32_spill]]  ;;  %s1856_s7 = sshll.u32 %s2384_s16, 7 }
 0x9e7   : > { %s592_s19 = scalar_lea.vmem [#allocation14], %s1804_s13  ;;  %s3047_s29 = sld [smem:[#allocation33_spill]] }
 0x9e8   : > { %s1601_s25 = sshll.u32 %s592_s19, 4  ;;  %s1582_s28 = scalar_lea.sflag [#allocation8], %s2702_s14  ;;  %s2938_s25 = int_to_ptr.vmem [resolvable:$true] %s1601_s25 }
 0x9e9   : > { %s2294_s22 = scalar_lea.vmem %s2938_s25, 128  ;;  %s2412_s16 = smov [#allocation14]  }
 0x9ea   : > { %p2295_p9 = scmp.ne.s32.totalorder %s2938_s25, %s2294_s22  ;;  %s2298_s13 = sshll.u32 %s2412_s16, 4  ;;  %s2299_s13 = int_to_ptr.vmem [resolvable:$false] %s2298_s13 }
 0x9eb   : > { %v1852_v4 = vld [vmem:[%s3045_s23] ss:$0 sm:$0xff]  ;;  %s2300_s6 = scalar_lea.vmem %s2299_s13, 256  ;;  %p2301_p13 = scmp.lt.s32.totalorder %s2938_s25, %s2299_s13 }
 0x9ec   : > { %v1853_v6 = vld [vmem:[%s3046_s11] ss:$0 sm:$0xff]  ;;  %p2296_p5 = pnand %p2295_p9, %p3044_p10  ;;  %p2302_p2 = scmp.lt.s32.totalorder %s2300_s6, %s2294_s22 }
 0x9ed   : > { %s3048_s24 = smov %s3047_s29  ;;  %s2936_s20 = scalar_lea.hbm %s3047_s29, %s1856_s7 }
 0x9ee   : > { %p2297_p7 = pneg %p2296_p5  ;;  %p2303_p8 = por %p2302_p2, %p2301_p13 }
 0x9f0   : > { %p2304_p12 = pnand %p2303_p8, %p2297_p7 }
 0xa63   : > { %v1561_v63 = vpop.xlane.xlu0 %1560 }
 0xa64   : > { %v1562_v1 = vmul.f32 0.03125, %v1561_v63 }
 0xa66   : > { %v1563_v2 = vadd.f32 1e-05, %v1562_v1 }
 0xa68   : > { %2148 = vrsqrt.f32 %v1563_v2 }
 0xa72   : > { %v2149_v3 = vpop.eup %2148 }
 0xa73   : > { %v1565_v5 = vmul.f32 %v2149_v3, %v1557_v60 }
 0xa75   : > { %v1572_v8 = vmul.f32 %v1852_v4, %v1565_v5 }
 0xa77   : > { %v1579_v9 = vadd.f32 %v1853_v6, %v1572_v8 }
 0xa79   : > { %1580 = vst.msk [vmem:[%s592_s19] sm:$0xff] %vm631_vm1, %v1579_v9 }
 0xa7a   : > { %2307 = shalt.err (!%p2304_p12)
}
 0xa7b   : > { %s2308_s14 = scalar_lea.hbm %s2936_s20, 128  ;;  %s2312_s8 = scalar_lea.hbm %s3048_s24, 256 }
 0xa7c   : > { %p2309_p11 = scmp.ne.s32.totalorder %s2936_s20, %s2308_s14  ;;  %p2313_p6 = scmp.lt.u32.totalorder %s2936_s20, %s3048_s24 }
 0xa7d   : > { %p2314_p3 = scmp.lt.u32.totalorder %s2312_s8, %s2308_s14  ;;  %p2316_p9 = scmp.lt.u32.totalorder %s2308_s14, %s2936_s20 }
 0xa7e   : > { %p2310_p0 = pnand %p2309_p11, %p3044_p10 }
 0xa7f   : > { %p2315_p4 = por %p2314_p3, %p2313_p6 }
 0xa80   : > { %p2311_p1 = pneg %p2310_p0 }
 0xa81   : > { %p2317_p5 = por %p2316_p9, %p2315_p4 }
 0xa83   : > { %p2318_p7 = pnand %p2317_p5, %p2311_p1 }
 0xa85   : > { %2321 = shalt.err (!%p2318_p7)
}
 0xa86   : > { %2013 = dma.vmem_to_hbm [thread:$0]  (%p3044_p10), %s2938_s25, 128, %s2936_s20, %s1582_s28  }
 0xa87 PF: > { %s3049_s19 = sld [smem:[#allocation23_spill]]  ;;  %s3050_s27 = sld [smem:[#allocation24_spill]] }
 0xa88   : > { %p3052_p2 = scmp.ge.s32.totalorder %s2392_s18, 2 }
 0xa8d   : > { %s1630_s1 = sand.u32 1, %s3049_s19   ;;  %p3051_p13 = scmp.ne.s32.totalorder %s3050_s27, 0 }
 0xa8e   : > { %s1631_s29 = scalar_lea.sflag [#allocation8], %s1630_s1 }
 0xa8f   : > { %p2032_p8 = pnand %p3052_p2, %p3051_p13 }
 0xa91   : > { %2363 = dma.done.wait (!%p2032_p8), %s1631_s29, 128  }
 0xa92   : > { %2365 = vsyncadd (!%p2032_p8), %s1631_s29, 4294967168  ;;  %s1640_s22 = scalar_lea.sflag [#allocation16], %s1630_s1 }
 0xa93   : > { %2367 = dma.done.wait (!%p2032_p8), %s1640_s22, 256  }
 0xa94   : > { %2369 = vsyncadd (!%p2032_p8), %s1640_s22, 4294967040  ;;  %s38_s18 = sadd.s32 1, %s2392_s18   ;;  %s3053_s26 = sld [smem:[#allocation25_spill]] }
 0xa95   : > { %p35_p12 = scmp.ge.s32.totalorder %s38_s18, 4   ;;  %s3054_s29 = smov %s2376_s30 }
 0xa96   : > { %s3055_s30 = smov %s2380_s15  ;;  %s3056_s15 = smov %s2629_s12 }
 0xa97   : > { %s3057_s16 = smov %s2388_s17  ;;  %37 = sbr.rel (!%p35_p12) target bundleno = 21 (0x15), region = 165 }
 0xa9a   : > { %s3058_s17 = smov %s3053_s26 }
 0xa9e   :  { %1645 = vsyncpa [#allocation7], 1 }
 0xa9f   :  { %1647 = vsyncpa [#allocation7 + $0x1], 1 }
 0xaa0   :  { %1648 = vsyncpa [#allocation10], 1 }
 0xaa1   :  { %1650 = vsyncpa [#allocation10 + $0x1], 1 }
 0xaa2   :  { %1651 = vsyncpa [#allocation13], 1 }
 0xaa3   :  { %1652 = vsyncpa [#allocation8], 1 }
 0xaa4   :  { %1654 = vsyncpa [#allocation8 + $0x1], 1 }
 0xaa5   :  { %1655 = vsyncpa [#allocation16], 1 }
 0xaa6   :  { %1657 = vsyncpa [#allocation16 + $0x1], 1 }

</bundles_post_ra>
